<compile_context>
chip_gen: v6e
topology: v6e:2x2x1
jax: 0.10.0
libtpu: 0.0.40
codegen_flags: <defaults>
</compile_context>

<pallas_src>
import math
from functools import partial

import jax
import jax.numpy as jnp
from jax import lax
from jax.experimental import pallas as pl
from jax.experimental.pallas import tpu as pltpu


# ----------------------------------------------------------------------------
# Fused kernel: projections + attention + scramble + output projection.
# ----------------------------------------------------------------------------
def _attention_cross_kernel(x_ref, t1_ref, t2_ref, wq_ref, wkv_ref, wp_ref, bp_ref,
                            *rest, B, N, C, H, dh, scale, fuse_batches, need_mask):
    if need_mask:
        bmask_ref, o_ref, ctx_sc, xmid_sc = rest
    else:
        o_ref, ctx_sc, xmid_sc = rest
        bmask_ref = None

    f32 = jnp.float32
    BN = B * N

    xv = x_ref[...]          # (B*N, C)
    t1v = t1_ref[...]        # (B*N, C)
    t2v = t2_ref[...]        # (B*N, C)

    # ---------------- projections: lane-dense MXU matmuls -------------------
    # softmax scale folded into q (touches B*N*C elements once)
    q_all = jnp.dot(xv, wq_ref[...], preferred_element_type=f32) * scale      # (BN, C)
    kv0 = jnp.dot(xv, wkv_ref[...], preferred_element_type=f32)               # (BN, 2C)
    kv1 = jnp.dot(t1v, wkv_ref[...], preferred_element_type=f32)              # (BN, 2C)
    kv2 = jnp.dot(t2v, wkv_ref[...], preferred_element_type=f32)              # (BN, 2C)

    # q @ k^T without materializing a transpose (contract on the dh axis)
    dims = (((1,), (1,)), ((), ()))

    def head_attention(q, k0, k1, k2, v0, v1, v2, add_mask):
        # joint softmax over the three kv segments (x, x_t1, x_t2) -- identical
        # to softmax over the concatenated 3N keys, without any concatenation.
        s0 = lax.dot_general(q, k0, dims, preferred_element_type=f32)
        s1 = lax.dot_general(q, k1, dims, preferred_element_type=f32)
        s2 = lax.dot_general(q, k2, dims, preferred_element_type=f32)
        if add_mask is not None:                     # block-diagonal batch mask
            s0 = s0 + add_mask
            s1 = s1 + add_mask
            s2 = s2 + add_mask
        m = jnp.maximum(jnp.maximum(jnp.max(s0, axis=-1, keepdims=True),
                                    jnp.max(s1, axis=-1, keepdims=True)),
                        jnp.max(s2, axis=-1, keepdims=True))
        p0 = jnp.exp(s0 - m)
        p1 = jnp.exp(s1 - m)
        p2 = jnp.exp(s2 - m)
        denom = (jnp.sum(p0, axis=-1, keepdims=True)
                 + jnp.sum(p1, axis=-1, keepdims=True)
                 + jnp.sum(p2, axis=-1, keepdims=True))
        ctx = (jnp.dot(p0, v0, preferred_element_type=f32)
               + jnp.dot(p1, v1, preferred_element_type=f32)
               + jnp.dot(p2, v2, preferred_element_type=f32))
        # exact reciprocal keeps the 1e-4 validation comfortable
        return ctx * pl.reciprocal(denom, approx=False)

    # ---------------- attention, staged in the (h, b, n) flatten order -------
    # ctx_sc row M = (h*B + b)*N + n  holds (attn @ v)[0, b, h, n, :]
    if fuse_batches:
        # All batches of one head in a single pair of matmuls; cross-batch
        # scores are killed by the additive -1e30 mask (exp underflows to 0).
        add_mask = bmask_ref[...] if need_mask else None
        for h in range(H):
            lo = h * dh
            ctx = head_attention(
                q_all[:, lo:lo + dh],
                kv0[:, lo:lo + dh], kv1[:, lo:lo + dh], kv2[:, lo:lo + dh],
                kv0[:, C + lo:C + lo + dh], kv1[:, C + lo:C + lo + dh],
                kv2[:, C + lo:C + lo + dh], add_mask)
            ctx_sc[h * BN:(h + 1) * BN, :] = ctx          # contiguous (BN, dh) store
    else:
        # General path for larger B: per-(batch, head), still contiguous stores.
        for b in range(B):
            r0 = b * N
            for h in range(H):
                lo = h * dh
                ctx = head_attention(
                    q_all[r0:r0 + N, lo:lo + dh],
                    kv0[r0:r0 + N, lo:lo + dh], kv1[r0:r0 + N, lo:lo + dh],
                    kv2[r0:r0 + N, lo:lo + dh],
                    kv0[r0:r0 + N, C + lo:C + lo + dh],
                    kv1[r0:r0 + N, C + lo:C + lo + dh],
                    kv2[r0:r0 + N, C + lo:C + lo + dh], None)
                base = (h * B + b) * N
                ctx_sc[base:base + N, :] = ctx            # contiguous (N, dh) store

    # ---------------- scramble -> lane-dense x_mid, then project -------------
    # x_mid[r, hp*dh:(hp+1)*dh] = ctx_sc[r*H + hp, :]  (reference's
    # transpose(1,2).reshape(B,N,C)); realized with H sublane-strided reads.
    for hp in range(H):
        xmid_sc[:, hp * dh:(hp + 1) * dh] = ctx_sc[pl.ds(hp, BN, stride=H), :]

    o_ref[...] = (jnp.dot(xmid_sc[...], wp_ref[...], preferred_element_type=f32)
                  + bp_ref[...]).astype(o_ref.dtype)


# ----------------------------------------------------------------------------
# Wrapper: takes weights in PyTorch nn.Linear layout (out_features, in_features).
# ----------------------------------------------------------------------------
def attention_cross_pallas(x, x_t1, x_t2, wq, wkv, wp, bp, *, num_heads):
    B, N, C = x.shape
    H = num_heads
    dh = C // H
    scale = dh ** (-0.5)
    BN = B * N

    x2d = x.reshape(BN, C).astype(jnp.float32)        # free (contiguous) reshapes
    t1_2d = x_t1.reshape(BN, C).astype(jnp.float32)
    t2_2d = x_t2.reshape(BN, C).astype(jnp.float32)
    wq_t = jnp.asarray(wq, jnp.float32).T             # (C, C)   so kernel does x @ W
    wkv_t = jnp.asarray(wkv, jnp.float32).T           # (C, 2C)
    wp_t = jnp.asarray(wp, jnp.float32).T             # (C, C)
    bp2d = jnp.asarray(bp, jnp.float32).reshape(1, C)

    # Batch-fused attention only pays off / fits comfortably for small B.
    fuse_batches = (B <= 4) and (BN <= 512)
    need_mask = fuse_batches and (B > 1)

    operands = [x2d, t1_2d, t2_2d, wq_t, wkv_t, wp_t, bp2d]
    in_specs = [
        pl.BlockSpec((BN, C), lambda: (0, 0)),      # x
        pl.BlockSpec((BN, C), lambda: (0, 0)),      # x_t1
        pl.BlockSpec((BN, C), lambda: (0, 0)),      # x_t2
        pl.BlockSpec((C, C), lambda: (0, 0)),       # Wq^T
        pl.BlockSpec((C, 2 * C), lambda: (0, 0)),   # Wkv^T
        pl.BlockSpec((C, C), lambda: (0, 0)),       # Wp^T
        pl.BlockSpec((1, C), lambda: (0, 0)),       # bias
    ]
    if need_mask:
        bid = jnp.arange(BN, dtype=jnp.int32) // N
        bmask = jnp.where(bid[:, None] == bid[None, :],
                          jnp.float32(0.0), jnp.float32(-1e30))
        operands.append(bmask)
        in_specs.append(pl.BlockSpec((BN, BN), lambda: (0, 0)))

    kernel = partial(_attention_cross_kernel, B=B, N=N, C=C, H=H, dh=dh,
                     scale=scale, fuse_batches=fuse_batches, need_mask=need_mask)

    out2d = pl.pallas_call(
        kernel,
        out_shape=jax.ShapeDtypeStruct((BN, C), jnp.float32),
        in_specs=in_specs,
        out_specs=pl.BlockSpec((BN, C), lambda: (0, 0)),
        scratch_shapes=[
            pltpu.VMEM((H * BN, dh), jnp.float32),   # ctx rows in (h, b, n) order
            pltpu.VMEM((BN, C), jnp.float32),        # lane-dense x_mid
        ],
    )(*operands)

    return out2d.reshape(B, N, C)


# ----------------------------------------------------------------------------
# Pure-JAX reference replicating the PyTorch forward exactly (for validation).
# ----------------------------------------------------------------------------
def attention_cross_ref(x, x_t1, x_t2, wq, wkv, wp, bp, *, num_heads):
    B, N, C = x.shape
    H = num_heads
    dh = C // H
    scale = dh ** (-0.5)
    q = x @ wq.T                                              # (B, N, C)
    x_cat = jnp.concatenate([x, x_t1, x_t2], axis=1)          # (B, 3N, C)
    kv = x_cat @ wkv.T                                        # (B, 3N, 2C)
    q = q.reshape(B, N, 1, H, dh).transpose(2, 0, 3, 1, 4)        # (1,B,H,N,dh)
    kv = kv.reshape(B, 3 * N, 2, H, dh).transpose(2, 0, 3, 1, 4)  # (2,B,H,3N,dh)
    k, v = kv[0], kv[1]
    attn = jnp.einsum('obhnd,bhmd->obhnm', q, k) * scale
    attn = jax.nn.softmax(attn, axis=-1)
    ctx = jnp.einsum('obhnm,bhmd->obhnd', attn, v)            # (1,B,H,N,dh)
    ctx = jnp.transpose(ctx, (0, 2, 1, 3, 4)).reshape(B, N, C)
    return ctx @ wp.T + bp


if __name__ == "__main__":
    def run_case(key, B, N, C, H):
        kx, kt1, kt2, kq, kkv, kp, kb = jax.random.split(key, 7)
        x = jax.random.normal(kx, (B, N, C), dtype=jnp.float32)
        x_t1 = jax.random.normal(kt1, (B, N, C), dtype=jnp.float32)
        x_t2 = jax.random.normal(kt2, (B, N, C), dtype=jnp.float32)
        # deterministic synthetic parameters in PyTorch nn.Linear layout (out, in)
        wq = jax.random.normal(kq, (C, C), dtype=jnp.float32) * (1.0 / math.sqrt(C))
        wkv = jax.random.normal(kkv, (2 * C, C), dtype=jnp.float32) * (1.0 / math.sqrt(C))
        wp = jax.random.normal(kp, (C, C), dtype=jnp.float32) * (1.0 / math.sqrt(C))
        bp = jax.random.normal(kb, (C,), dtype=jnp.float32) * 0.01

        out = attention_cross_pallas(x, x_t1, x_t2, wq, wkv, wp, bp, num_heads=H)
        out = jax.block_until_ready(out)
        ref = attention_cross_ref(x, x_t1, x_t2, wq, wkv, wp, bp, num_heads=H)
        assert out.shape == (B, N, C)
        err = float(jnp.max(jnp.abs(out - ref)))
        assert jnp.allclose(out, ref, atol=1e-4, rtol=1e-4), err

    key = jax.random.PRNGKey(0)
    k1, k2, k3 = jax.random.split(key, 3)
    run_case(k1, B=2, N=8, C=32, H=8)    # dim_emb=32, num_heads=8 -> dim_each_head=4
    run_case(k2, B=2, N=12, C=32, H=8)   # N != num_heads: general scramble, fused-batch path
    run_case(k3, B=5, N=8, C=32, H=8)    # larger batch: exercises the per-(b,h) fallback path
    print("KERNEL_OK")
</pallas_src>

<mosaic_0001>
module attributes {stable_mosaic.version = 11 : i64} {
  func.func @_attention_cross_kernel(%arg0: memref<16x32xf32, #tpu.memory_space<vmem>>, %arg1: memref<16x32xf32, #tpu.memory_space<vmem>>, %arg2: memref<16x32xf32, #tpu.memory_space<vmem>>, %arg3: memref<32x32xf32, #tpu.memory_space<vmem>>, %arg4: memref<32x64xf32, #tpu.memory_space<vmem>>, %arg5: memref<32x32xf32, #tpu.memory_space<vmem>>, %arg6: memref<1x32xf32, #tpu.memory_space<vmem>>, %arg7: memref<16x16xf32, #tpu.memory_space<vmem>>, %arg8: memref<16x32xf32, #tpu.memory_space<vmem>>, %arg9: memref<128x4xf32, #tpu.memory_space<vmem>>, %arg10: memref<16x32xf32, #tpu.memory_space<vmem>>) attributes {dimension_semantics = [], scalar_prefetch = 0 : i64, scratch_operands = 2 : i64, tpu.core_type = #tpu.core_type<tc>} {
    %c0 = arith.constant 0 : index
    %c0_0 = arith.constant 0 : index
    %0 = vector.load %arg0[%c0, %c0_0] : memref<16x32xf32, #tpu.memory_space<vmem>>, vector<16x32xf32>
    %c0_1 = arith.constant 0 : index
    %c0_2 = arith.constant 0 : index
    %1 = vector.load %arg1[%c0_1, %c0_2] : memref<16x32xf32, #tpu.memory_space<vmem>>, vector<16x32xf32>
    %c0_3 = arith.constant 0 : index
    %c0_4 = arith.constant 0 : index
    %2 = vector.load %arg2[%c0_3, %c0_4] : memref<16x32xf32, #tpu.memory_space<vmem>>, vector<16x32xf32>
    %c0_5 = arith.constant 0 : index
    %c0_6 = arith.constant 0 : index
    %3 = vector.load %arg3[%c0_5, %c0_6] : memref<32x32xf32, #tpu.memory_space<vmem>>, vector<32x32xf32>
    %cst = arith.constant dense<0.000000e+00> : vector<16x32xf32>
    %4 = tpu.matmul %0, %3, %cst {dimension_numbers = #tpu.dot_dimension_numbers<[1], [0], [0], [1], [0, 0, 1, 1], [], []>} : vector<16x32xf32>, vector<32x32xf32>, vector<16x32xf32> -> vector<16x32xf32>
    %cst_7 = arith.constant 5.000000e-01 : f32
    %5 = vector.broadcast %cst_7 : f32 to vector<16x32xf32>
    %6 = arith.mulf %4, %5 : vector<16x32xf32>
    %c0_8 = arith.constant 0 : index
    %c0_9 = arith.constant 0 : index
    %7 = vector.load %arg4[%c0_8, %c0_9] : memref<32x64xf32, #tpu.memory_space<vmem>>, vector<32x64xf32>
    %cst_10 = arith.constant dense<0.000000e+00> : vector<16x64xf32>
    %8 = tpu.matmul %0, %7, %cst_10 {dimension_numbers = #tpu.dot_dimension_numbers<[1], [0], [0], [1], [0, 0, 1, 1], [], []>} : vector<16x32xf32>, vector<32x64xf32>, vector<16x64xf32> -> vector<16x64xf32>
    %c0_11 = arith.constant 0 : index
    %c0_12 = arith.constant 0 : index
    %9 = vector.load %arg4[%c0_11, %c0_12] : memref<32x64xf32, #tpu.memory_space<vmem>>, vector<32x64xf32>
    %cst_13 = arith.constant dense<0.000000e+00> : vector<16x64xf32>
    %10 = tpu.matmul %1, %9, %cst_13 {dimension_numbers = #tpu.dot_dimension_numbers<[1], [0], [0], [1], [0, 0, 1, 1], [], []>} : vector<16x32xf32>, vector<32x64xf32>, vector<16x64xf32> -> vector<16x64xf32>
    %c0_14 = arith.constant 0 : index
    %c0_15 = arith.constant 0 : index
    %11 = vector.load %arg4[%c0_14, %c0_15] : memref<32x64xf32, #tpu.memory_space<vmem>>, vector<32x64xf32>
    %cst_16 = arith.constant dense<0.000000e+00> : vector<16x64xf32>
    %12 = tpu.matmul %2, %11, %cst_16 {dimension_numbers = #tpu.dot_dimension_numbers<[1], [0], [0], [1], [0, 0, 1, 1], [], []>} : vector<16x32xf32>, vector<32x64xf32>, vector<16x64xf32> -> vector<16x64xf32>
    %c0_17 = arith.constant 0 : index
    %c0_18 = arith.constant 0 : index
    %13 = vector.load %arg7[%c0_17, %c0_18] : memref<16x16xf32, #tpu.memory_space<vmem>>, vector<16x16xf32>
    %14 = vector.extract_strided_slice %6 {offsets = [0, 0], sizes = [16, 4], strides = [1, 1]} : vector<16x32xf32> to vector<16x4xf32>
    %15 = vector.extract_strided_slice %8 {offsets = [0, 0], sizes = [16, 4], strides = [1, 1]} : vector<16x64xf32> to vector<16x4xf32>
    %16 = vector.extract_strided_slice %10 {offsets = [0, 0], sizes = [16, 4], strides = [1, 1]} : vector<16x64xf32> to vector<16x4xf32>
    %17 = vector.extract_strided_slice %12 {offsets = [0, 0], sizes = [16, 4], strides = [1, 1]} : vector<16x64xf32> to vector<16x4xf32>
    %18 = vector.extract_strided_slice %8 {offsets = [0, 32], sizes = [16, 4], strides = [1, 1]} : vector<16x64xf32> to vector<16x4xf32>
    %19 = vector.extract_strided_slice %10 {offsets = [0, 32], sizes = [16, 4], strides = [1, 1]} : vector<16x64xf32> to vector<16x4xf32>
    %20 = vector.extract_strided_slice %12 {offsets = [0, 32], sizes = [16, 4], strides = [1, 1]} : vector<16x64xf32> to vector<16x4xf32>
    %cst_19 = arith.constant dense<0.000000e+00> : vector<16x16xf32>
    %21 = tpu.matmul %14, %15, %cst_19 {dimension_numbers = #tpu.dot_dimension_numbers<[1], [1], [0], [0], [0, 0, 1, 0], [], []>} : vector<16x4xf32>, vector<16x4xf32>, vector<16x16xf32> -> vector<16x16xf32>
    %cst_20 = arith.constant dense<0.000000e+00> : vector<16x16xf32>
    %22 = tpu.matmul %14, %16, %cst_20 {dimension_numbers = #tpu.dot_dimension_numbers<[1], [1], [0], [0], [0, 0, 1, 0], [], []>} : vector<16x4xf32>, vector<16x4xf32>, vector<16x16xf32> -> vector<16x16xf32>
    %cst_21 = arith.constant dense<0.000000e+00> : vector<16x16xf32>
    %23 = tpu.matmul %14, %17, %cst_21 {dimension_numbers = #tpu.dot_dimension_numbers<[1], [1], [0], [0], [0, 0, 1, 0], [], []>} : vector<16x4xf32>, vector<16x4xf32>, vector<16x16xf32> -> vector<16x16xf32>
    %24 = arith.addf %21, %13 : vector<16x16xf32>
    %25 = arith.addf %22, %13 : vector<16x16xf32>
    %26 = arith.addf %23, %13 : vector<16x16xf32>
    %cst_22 = arith.constant dense<0xFF800000> : vector<16xf32>
    %27 = vector.multi_reduction <maximumf>, %24, %cst_22 [1] : vector<16x16xf32> to vector<16xf32>
    %28 = vector.shape_cast %27 : vector<16xf32> to vector<16x1xf32>
    %cst_23 = arith.constant dense<0xFF800000> : vector<16xf32>
    %29 = vector.multi_reduction <maximumf>, %25, %cst_23 [1] : vector<16x16xf32> to vector<16xf32>
    %30 = vector.shape_cast %29 : vector<16xf32> to vector<16x1xf32>
    %31 = arith.maximumf %28, %30 : vector<16x1xf32>
    %cst_24 = arith.constant dense<0xFF800000> : vector<16xf32>
    %32 = vector.multi_reduction <maximumf>, %26, %cst_24 [1] : vector<16x16xf32> to vector<16xf32>
    %33 = vector.shape_cast %32 : vector<16xf32> to vector<16x1xf32>
    %34 = arith.maximumf %31, %33 : vector<16x1xf32>
    %35 = vector.broadcast %34 : vector<16x1xf32> to vector<16x16xf32>
    %36 = arith.subf %24, %35 : vector<16x16xf32>
    %37 = math.exp %36 : vector<16x16xf32>
    %38 = vector.broadcast %34 : vector<16x1xf32> to vector<16x16xf32>
    %39 = arith.subf %25, %38 : vector<16x16xf32>
    %40 = math.exp %39 : vector<16x16xf32>
    %41 = vector.broadcast %34 : vector<16x1xf32> to vector<16x16xf32>
    %42 = arith.subf %26, %41 : vector<16x16xf32>
    %43 = math.exp %42 : vector<16x16xf32>
    %cst_25 = arith.constant dense<0.000000e+00> : vector<16xf32>
    %44 = vector.multi_reduction <add>, %37, %cst_25 [1] : vector<16x16xf32> to vector<16xf32>
    %45 = vector.shape_cast %44 : vector<16xf32> to vector<16x1xf32>
    %cst_26 = arith.constant dense<0.000000e+00> : vector<16xf32>
    %46 = vector.multi_reduction <add>, %40, %cst_26 [1] : vector<16x16xf32> to vector<16xf32>
    %47 = vector.shape_cast %46 : vector<16xf32> to vector<16x1xf32>
    %48 = arith.addf %45, %47 : vector<16x1xf32>
    %cst_27 = arith.constant dense<0.000000e+00> : vector<16xf32>
    %49 = vector.multi_reduction <add>, %43, %cst_27 [1] : vector<16x16xf32> to vector<16xf32>
    %50 = vector.shape_cast %49 : vector<16xf32> to vector<16x1xf32>
    %51 = arith.addf %48, %50 : vector<16x1xf32>
    %cst_28 = arith.constant dense<0.000000e+00> : vector<16x4xf32>
    %52 = tpu.matmul %37, %18, %cst_28 {dimension_numbers = #tpu.dot_dimension_numbers<[1], [0], [0], [1], [0, 0, 1, 1], [], []>} : vector<16x16xf32>, vector<16x4xf32>, vector<16x4xf32> -> vector<16x4xf32>
    %cst_29 = arith.constant dense<0.000000e+00> : vector<16x4xf32>
    %53 = tpu.matmul %40, %19, %cst_29 {dimension_numbers = #tpu.dot_dimension_numbers<[1], [0], [0], [1], [0, 0, 1, 1], [], []>} : vector<16x16xf32>, vector<16x4xf32>, vector<16x4xf32> -> vector<16x4xf32>
    %54 = arith.addf %52, %53 : vector<16x4xf32>
    %cst_30 = arith.constant dense<0.000000e+00> : vector<16x4xf32>
    %55 = tpu.matmul %43, %20, %cst_30 {dimension_numbers = #tpu.dot_dimension_numbers<[1], [0], [0], [1], [0, 0, 1, 1], [], []>} : vector<16x16xf32>, vector<16x4xf32>, vector<16x4xf32> -> vector<16x4xf32>
    %56 = arith.addf %54, %55 : vector<16x4xf32>
    %57 = tpu.reciprocal %51 : vector<16x1xf32> -> vector<16x1xf32>
    %58 = vector.broadcast %57 : vector<16x1xf32> to vector<16x4xf32>
    %59 = arith.mulf %56, %58 : vector<16x4xf32>
    %c0_31 = arith.constant 0 : index
    %c0_32 = arith.constant 0 : index
    %60 = vector.load %arg9[%c0_31, %c0_32] : memref<128x4xf32, #tpu.memory_space<vmem>>, vector<16x4xf32>
    tpu.vector_store %arg9[%c0_31, %c0_32], %59 {strides = array<i32>} : memref<128x4xf32, #tpu.memory_space<vmem>>, vector<16x4xf32>,
    %61 = vector.extract_strided_slice %6 {offsets = [0, 4], sizes = [16, 4], strides = [1, 1]} : vector<16x32xf32> to vector<16x4xf32>
    %62 = vector.extract_strided_slice %8 {offsets = [0, 4], sizes = [16, 4], strides = [1, 1]} : vector<16x64xf32> to vector<16x4xf32>
    %63 = vector.extract_strided_slice %10 {offsets = [0, 4], sizes = [16, 4], strides = [1, 1]} : vector<16x64xf32> to vector<16x4xf32>
    %64 = vector.extract_strided_slice %12 {offsets = [0, 4], sizes = [16, 4], strides = [1, 1]} : vector<16x64xf32> to vector<16x4xf32>
    %65 = vector.extract_strided_slice %8 {offsets = [0, 36], sizes = [16, 4], strides = [1, 1]} : vector<16x64xf32> to vector<16x4xf32>
    %66 = vector.extract_strided_slice %10 {offsets = [0, 36], sizes = [16, 4], strides = [1, 1]} : vector<16x64xf32> to vector<16x4xf32>
    %67 = vector.extract_strided_slice %12 {offsets = [0, 36], sizes = [16, 4], strides = [1, 1]} : vector<16x64xf32> to vector<16x4xf32>
    %cst_33 = arith.constant dense<0.000000e+00> : vector<16x16xf32>
    %68 = tpu.matmul %61, %62, %cst_33 {dimension_numbers = #tpu.dot_dimension_numbers<[1], [1], [0], [0], [0, 0, 1, 0], [], []>} : vector<16x4xf32>, vector<16x4xf32>, vector<16x16xf32> -> vector<16x16xf32>
    %cst_34 = arith.constant dense<0.000000e+00> : vector<16x16xf32>
    %69 = tpu.matmul %61, %63, %cst_34 {dimension_numbers = #tpu.dot_dimension_numbers<[1], [1], [0], [0], [0, 0, 1, 0], [], []>} : vector<16x4xf32>, vector<16x4xf32>, vector<16x16xf32> -> vector<16x16xf32>
    %cst_35 = arith.constant dense<0.000000e+00> : vector<16x16xf32>
    %70 = tpu.matmul %61, %64, %cst_35 {dimension_numbers = #tpu.dot_dimension_numbers<[1], [1], [0], [0], [0, 0, 1, 0], [], []>} : vector<16x4xf32>, vector<16x4xf32>, vector<16x16xf32> -> vector<16x16xf32>
    %71 = arith.addf %68, %13 : vector<16x16xf32>
    %72 = arith.addf %69, %13 : vector<16x16xf32>
    %73 = arith.addf %70, %13 : vector<16x16xf32>
    %cst_36 = arith.constant dense<0xFF800000> : vector<16xf32>
    %74 = vector.multi_reduction <maximumf>, %71, %cst_36 [1] : vector<16x16xf32> to vector<16xf32>
    %75 = vector.shape_cast %74 : vector<16xf32> to vector<16x1xf32>
    %cst_37 = arith.constant dense<0xFF800000> : vector<16xf32>
    %76 = vector.multi_reduction <maximumf>, %72, %cst_37 [1] : vector<16x16xf32> to vector<16xf32>
    %77 = vector.shape_cast %76 : vector<16xf32> to vector<16x1xf32>
    %78 = arith.maximumf %75, %77 : vector<16x1xf32>
    %cst_38 = arith.constant dense<0xFF800000> : vector<16xf32>
    %79 = vector.multi_reduction <maximumf>, %73, %cst_38 [1] : vector<16x16xf32> to vector<16xf32>
    %80 = vector.shape_cast %79 : vector<16xf32> to vector<16x1xf32>
    %81 = arith.maximumf %78, %80 : vector<16x1xf32>
    %82 = vector.broadcast %81 : vector<16x1xf32> to vector<16x16xf32>
    %83 = arith.subf %71, %82 : vector<16x16xf32>
    %84 = math.exp %83 : vector<16x16xf32>
    %85 = vector.broadcast %81 : vector<16x1xf32> to vector<16x16xf32>
    %86 = arith.subf %72, %85 : vector<16x16xf32>
    %87 = math.exp %86 : vector<16x16xf32>
    %88 = vector.broadcast %81 : vector<16x1xf32> to vector<16x16xf32>
    %89 = arith.subf %73, %88 : vector<16x16xf32>
    %90 = math.exp %89 : vector<16x16xf32>
    %cst_39 = arith.constant dense<0.000000e+00> : vector<16xf32>
    %91 = vector.multi_reduction <add>, %84, %cst_39 [1] : vector<16x16xf32> to vector<16xf32>
    %92 = vector.shape_cast %91 : vector<16xf32> to vector<16x1xf32>
    %cst_40 = arith.constant dense<0.000000e+00> : vector<16xf32>
    %93 = vector.multi_reduction <add>, %87, %cst_40 [1] : vector<16x16xf32> to vector<16xf32>
    %94 = vector.shape_cast %93 : vector<16xf32> to vector<16x1xf32>
    %95 = arith.addf %92, %94 : vector<16x1xf32>
    %cst_41 = arith.constant dense<0.000000e+00> : vector<16xf32>
    %96 = vector.multi_reduction <add>, %90, %cst_41 [1] : vector<16x16xf32> to vector<16xf32>
    %97 = vector.shape_cast %96 : vector<16xf32> to vector<16x1xf32>
    %98 = arith.addf %95, %97 : vector<16x1xf32>
    %cst_42 = arith.constant dense<0.000000e+00> : vector<16x4xf32>
    %99 = tpu.matmul %84, %65, %cst_42 {dimension_numbers = #tpu.dot_dimension_numbers<[1], [0], [0], [1], [0, 0, 1, 1], [], []>} : vector<16x16xf32>, vector<16x4xf32>, vector<16x4xf32> -> vector<16x4xf32>
    %cst_43 = arith.constant dense<0.000000e+00> : vector<16x4xf32>
    %100 = tpu.matmul %87, %66, %cst_43 {dimension_numbers = #tpu.dot_dimension_numbers<[1], [0], [0], [1], [0, 0, 1, 1], [], []>} : vector<16x16xf32>, vector<16x4xf32>, vector<16x4xf32> -> vector<16x4xf32>
    %101 = arith.addf %99, %100 : vector<16x4xf32>
    %cst_44 = arith.constant dense<0.000000e+00> : vector<16x4xf32>
    %102 = tpu.matmul %90, %67, %cst_44 {dimension_numbers = #tpu.dot_dimension_numbers<[1], [0], [0], [1], [0, 0, 1, 1], [], []>} : vector<16x16xf32>, vector<16x4xf32>, vector<16x4xf32> -> vector<16x4xf32>
    %103 = arith.addf %101, %102 : vector<16x4xf32>
    %104 = tpu.reciprocal %98 : vector<16x1xf32> -> vector<16x1xf32>
    %105 = vector.broadcast %104 : vector<16x1xf32> to vector<16x4xf32>
    %106 = arith.mulf %103, %105 : vector<16x4xf32>
    %c16 = arith.constant 16 : index
    %c0_45 = arith.constant 0 : index
    %107 = vector.load %arg9[%c16, %c0_45] : memref<128x4xf32, #tpu.memory_space<vmem>>, vector<16x4xf32>
    tpu.vector_store %arg9[%c16, %c0_45], %106 {strides = array<i32>} : memref<128x4xf32, #tpu.memory_space<vmem>>, vector<16x4xf32>,
    %108 = vector.extract_strided_slice %6 {offsets = [0, 8], sizes = [16, 4], strides = [1, 1]} : vector<16x32xf32> to vector<16x4xf32>
    %109 = vector.extract_strided_slice %8 {offsets = [0, 8], sizes = [16, 4], strides = [1, 1]} : vector<16x64xf32> to vector<16x4xf32>
    %110 = vector.extract_strided_slice %10 {offsets = [0, 8], sizes = [16, 4], strides = [1, 1]} : vector<16x64xf32> to vector<16x4xf32>
    %111 = vector.extract_strided_slice %12 {offsets = [0, 8], sizes = [16, 4], strides = [1, 1]} : vector<16x64xf32> to vector<16x4xf32>
    %112 = vector.extract_strided_slice %8 {offsets = [0, 40], sizes = [16, 4], strides = [1, 1]} : vector<16x64xf32> to vector<16x4xf32>
    %113 = vector.extract_strided_slice %10 {offsets = [0, 40], sizes = [16, 4], strides = [1, 1]} : vector<16x64xf32> to vector<16x4xf32>
    %114 = vector.extract_strided_slice %12 {offsets = [0, 40], sizes = [16, 4], strides = [1, 1]} : vector<16x64xf32> to vector<16x4xf32>
    %cst_46 = arith.constant dense<0.000000e+00> : vector<16x16xf32>
    %115 = tpu.matmul %108, %109, %cst_46 {dimension_numbers = #tpu.dot_dimension_numbers<[1], [1], [0], [0], [0, 0, 1, 0], [], []>} : vector<16x4xf32>, vector<16x4xf32>, vector<16x16xf32> -> vector<16x16xf32>
    %cst_47 = arith.constant dense<0.000000e+00> : vector<16x16xf32>
    %116 = tpu.matmul %108, %110, %cst_47 {dimension_numbers = #tpu.dot_dimension_numbers<[1], [1], [0], [0], [0, 0, 1, 0], [], []>} : vector<16x4xf32>, vector<16x4xf32>, vector<16x16xf32> -> vector<16x16xf32>
    %cst_48 = arith.constant dense<0.000000e+00> : vector<16x16xf32>
    %117 = tpu.matmul %108, %111, %cst_48 {dimension_numbers = #tpu.dot_dimension_numbers<[1], [1], [0], [0], [0, 0, 1, 0], [], []>} : vector<16x4xf32>, vector<16x4xf32>, vector<16x16xf32> -> vector<16x16xf32>
    %118 = arith.addf %115, %13 : vector<16x16xf32>
    %119 = arith.addf %116, %13 : vector<16x16xf32>
    %120 = arith.addf %117, %13 : vector<16x16xf32>
    %cst_49 = arith.constant dense<0xFF800000> : vector<16xf32>
    %121 = vector.multi_reduction <maximumf>, %118, %cst_49 [1] : vector<16x16xf32> to vector<16xf32>
    %122 = vector.shape_cast %121 : vector<16xf32> to vector<16x1xf32>
    %cst_50 = arith.constant dense<0xFF800000> : vector<16xf32>
    %123 = vector.multi_reduction <maximumf>, %119, %cst_50 [1] : vector<16x16xf32> to vector<16xf32>
    %124 = vector.shape_cast %123 : vector<16xf32> to vector<16x1xf32>
    %125 = arith.maximumf %122, %124 : vector<16x1xf32>
    %cst_51 = arith.constant dense<0xFF800000> : vector<16xf32>
    %126 = vector.multi_reduction <maximumf>, %120, %cst_51 [1] : vector<16x16xf32> to vector<16xf32>
    %127 = vector.shape_cast %126 : vector<16xf32> to vector<16x1xf32>
    %128 = arith.maximumf %125, %127 : vector<16x1xf32>
    %129 = vector.broadcast %128 : vector<16x1xf32> to vector<16x16xf32>
    %130 = arith.subf %118, %129 : vector<16x16xf32>
    %131 = math.exp %130 : vector<16x16xf32>
    %132 = vector.broadcast %128 : vector<16x1xf32> to vector<16x16xf32>
    %133 = arith.subf %119, %132 : vector<16x16xf32>
    %134 = math.exp %133 : vector<16x16xf32>
    %135 = vector.broadcast %128 : vector<16x1xf32> to vector<16x16xf32>
    %136 = arith.subf %120, %135 : vector<16x16xf32>
    %137 = math.exp %136 : vector<16x16xf32>
    %cst_52 = arith.constant dense<0.000000e+00> : vector<16xf32>
    %138 = vector.multi_reduction <add>, %131, %cst_52 [1] : vector<16x16xf32> to vector<16xf32>
    %139 = vector.shape_cast %138 : vector<16xf32> to vector<16x1xf32>
    %cst_53 = arith.constant dense<0.000000e+00> : vector<16xf32>
    %140 = vector.multi_reduction <add>, %134, %cst_53 [1] : vector<16x16xf32> to vector<16xf32>
    %141 = vector.shape_cast %140 : vector<16xf32> to vector<16x1xf32>
    %142 = arith.addf %139, %141 : vector<16x1xf32>
    %cst_54 = arith.constant dense<0.000000e+00> : vector<16xf32>
    %143 = vector.multi_reduction <add>, %137, %cst_54 [1] : vector<16x16xf32> to vector<16xf32>
    %144 = vector.shape_cast %143 : vector<16xf32> to vector<16x1xf32>
    %145 = arith.addf %142, %144 : vector<16x1xf32>
    %cst_55 = arith.constant dense<0.000000e+00> : vector<16x4xf32>
    %146 = tpu.matmul %131, %112, %cst_55 {dimension_numbers = #tpu.dot_dimension_numbers<[1], [0], [0], [1], [0, 0, 1, 1], [], []>} : vector<16x16xf32>, vector<16x4xf32>, vector<16x4xf32> -> vector<16x4xf32>
    %cst_56 = arith.constant dense<0.000000e+00> : vector<16x4xf32>
    %147 = tpu.matmul %134, %113, %cst_56 {dimension_numbers = #tpu.dot_dimension_numbers<[1], [0], [0], [1], [0, 0, 1, 1], [], []>} : vector<16x16xf32>, vector<16x4xf32>, vector<16x4xf32> -> vector<16x4xf32>
    %148 = arith.addf %146, %147 : vector<16x4xf32>
    %cst_57 = arith.constant dense<0.000000e+00> : vector<16x4xf32>
    %149 = tpu.matmul %137, %114, %cst_57 {dimension_numbers = #tpu.dot_dimension_numbers<[1], [0], [0], [1], [0, 0, 1, 1], [], []>} : vector<16x16xf32>, vector<16x4xf32>, vector<16x4xf32> -> vector<16x4xf32>
    %150 = arith.addf %148, %149 : vector<16x4xf32>
    %151 = tpu.reciprocal %145 : vector<16x1xf32> -> vector<16x1xf32>
    %152 = vector.broadcast %151 : vector<16x1xf32> to vector<16x4xf32>
    %153 = arith.mulf %150, %152 : vector<16x4xf32>
    %c32 = arith.constant 32 : index
    %c0_58 = arith.constant 0 : index
    %154 = vector.load %arg9[%c32, %c0_58] : memref<128x4xf32, #tpu.memory_space<vmem>>, vector<16x4xf32>
    tpu.vector_store %arg9[%c32, %c0_58], %153 {strides = array<i32>} : memref<128x4xf32, #tpu.memory_space<vmem>>, vector<16x4xf32>,
    %155 = vector.extract_strided_slice %6 {offsets = [0, 12], sizes = [16, 4], strides = [1, 1]} : vector<16x32xf32> to vector<16x4xf32>
    %156 = vector.extract_strided_slice %8 {offsets = [0, 12], sizes = [16, 4], strides = [1, 1]} : vector<16x64xf32> to vector<16x4xf32>
    %157 = vector.extract_strided_slice %10 {offsets = [0, 12], sizes = [16, 4], strides = [1, 1]} : vector<16x64xf32> to vector<16x4xf32>
    %158 = vector.extract_strided_slice %12 {offsets = [0, 12], sizes = [16, 4], strides = [1, 1]} : vector<16x64xf32> to vector<16x4xf32>
    %159 = vector.extract_strided_slice %8 {offsets = [0, 44], sizes = [16, 4], strides = [1, 1]} : vector<16x64xf32> to vector<16x4xf32>
    %160 = vector.extract_strided_slice %10 {offsets = [0, 44], sizes = [16, 4], strides = [1, 1]} : vector<16x64xf32> to vector<16x4xf32>
    %161 = vector.extract_strided_slice %12 {offsets = [0, 44], sizes = [16, 4], strides = [1, 1]} : vector<16x64xf32> to vector<16x4xf32>
    %cst_59 = arith.constant dense<0.000000e+00> : vector<16x16xf32>
    %162 = tpu.matmul %155, %156, %cst_59 {dimension_numbers = #tpu.dot_dimension_numbers<[1], [1], [0], [0], [0, 0, 1, 0], [], []>} : vector<16x4xf32>, vector<16x4xf32>, vector<16x16xf32> -> vector<16x16xf32>
    %cst_60 = arith.constant dense<0.000000e+00> : vector<16x16xf32>
    %163 = tpu.matmul %155, %157, %cst_60 {dimension_numbers = #tpu.dot_dimension_numbers<[1], [1], [0], [0], [0, 0, 1, 0], [], []>} : vector<16x4xf32>, vector<16x4xf32>, vector<16x16xf32> -> vector<16x16xf32>
    %cst_61 = arith.constant dense<0.000000e+00> : vector<16x16xf32>
    %164 = tpu.matmul %155, %158, %cst_61 {dimension_numbers = #tpu.dot_dimension_numbers<[1], [1], [0], [0], [0, 0, 1, 0], [], []>} : vector<16x4xf32>, vector<16x4xf32>, vector<16x16xf32> -> vector<16x16xf32>
    %165 = arith.addf %162, %13 : vector<16x16xf32>
    %166 = arith.addf %163, %13 : vector<16x16xf32>
    %167 = arith.addf %164, %13 : vector<16x16xf32>
    %cst_62 = arith.constant dense<0xFF800000> : vector<16xf32>
    %168 = vector.multi_reduction <maximumf>, %165, %cst_62 [1] : vector<16x16xf32> to vector<16xf32>
    %169 = vector.shape_cast %168 : vector<16xf32> to vector<16x1xf32>
    %cst_63 = arith.constant dense<0xFF800000> : vector<16xf32>
    %170 = vector.multi_reduction <maximumf>, %166, %cst_63 [1] : vector<16x16xf32> to vector<16xf32>
    %171 = vector.shape_cast %170 : vector<16xf32> to vector<16x1xf32>
    %172 = arith.maximumf %169, %171 : vector<16x1xf32>
    %cst_64 = arith.constant dense<0xFF800000> : vector<16xf32>
    %173 = vector.multi_reduction <maximumf>, %167, %cst_64 [1] : vector<16x16xf32> to vector<16xf32>
    %174 = vector.shape_cast %173 : vector<16xf32> to vector<16x1xf32>
    %175 = arith.maximumf %172, %174 : vector<16x1xf32>
    %176 = vector.broadcast %175 : vector<16x1xf32> to vector<16x16xf32>
    %177 = arith.subf %165, %176 : vector<16x16xf32>
    %178 = math.exp %177 : vector<16x16xf32>
    %179 = vector.broadcast %175 : vector<16x1xf32> to vector<16x16xf32>
    %180 = arith.subf %166, %179 : vector<16x16xf32>
    %181 = math.exp %180 : vector<16x16xf32>
    %182 = vector.broadcast %175 : vector<16x1xf32> to vector<16x16xf32>
    %183 = arith.subf %167, %182 : vector<16x16xf32>
    %184 = math.exp %183 : vector<16x16xf32>
    %cst_65 = arith.constant dense<0.000000e+00> : vector<16xf32>
    %185 = vector.multi_reduction <add>, %178, %cst_65 [1] : vector<16x16xf32> to vector<16xf32>
    %186 = vector.shape_cast %185 : vector<16xf32> to vector<16x1xf32>
    %cst_66 = arith.constant dense<0.000000e+00> : vector<16xf32>
    %187 = vector.multi_reduction <add>, %181, %cst_66 [1] : vector<16x16xf32> to vector<16xf32>
    %188 = vector.shape_cast %187 : vector<16xf32> to vector<16x1xf32>
    %189 = arith.addf %186, %188 : vector<16x1xf32>
    %cst_67 = arith.constant dense<0.000000e+00> : vector<16xf32>
    %190 = vector.multi_reduction <add>, %184, %cst_67 [1] : vector<16x16xf32> to vector<16xf32>
    %191 = vector.shape_cast %190 : vector<16xf32> to vector<16x1xf32>
    %192 = arith.addf %189, %191 : vector<16x1xf32>
    %cst_68 = arith.constant dense<0.000000e+00> : vector<16x4xf32>
    %193 = tpu.matmul %178, %159, %cst_68 {dimension_numbers = #tpu.dot_dimension_numbers<[1], [0], [0], [1], [0, 0, 1, 1], [], []>} : vector<16x16xf32>, vector<16x4xf32>, vector<16x4xf32> -> vector<16x4xf32>
    %cst_69 = arith.constant dense<0.000000e+00> : vector<16x4xf32>
    %194 = tpu.matmul %181, %160, %cst_69 {dimension_numbers = #tpu.dot_dimension_numbers<[1], [0], [0], [1], [0, 0, 1, 1], [], []>} : vector<16x16xf32>, vector<16x4xf32>, vector<16x4xf32> -> vector<16x4xf32>
    %195 = arith.addf %193, %194 : vector<16x4xf32>
    %cst_70 = arith.constant dense<0.000000e+00> : vector<16x4xf32>
    %196 = tpu.matmul %184, %161, %cst_70 {dimension_numbers = #tpu.dot_dimension_numbers<[1], [0], [0], [1], [0, 0, 1, 1], [], []>} : vector<16x16xf32>, vector<16x4xf32>, vector<16x4xf32> -> vector<16x4xf32>
    %197 = arith.addf %195, %196 : vector<16x4xf32>
    %198 = tpu.reciprocal %192 : vector<16x1xf32> -> vector<16x1xf32>
    %199 = vector.broadcast %198 : vector<16x1xf32> to vector<16x4xf32>
    %200 = arith.mulf %197, %199 : vector<16x4xf32>
    %c48 = arith.constant 48 : index
    %c0_71 = arith.constant 0 : index
    %201 = vector.load %arg9[%c48, %c0_71] : memref<128x4xf32, #tpu.memory_space<vmem>>, vector<16x4xf32>
    tpu.vector_store %arg9[%c48, %c0_71], %200 {strides = array<i32>} : memref<128x4xf32, #tpu.memory_space<vmem>>, vector<16x4xf32>,
    %202 = vector.extract_strided_slice %6 {offsets = [0, 16], sizes = [16, 4], strides = [1, 1]} : vector<16x32xf32> to vector<16x4xf32>
    %203 = vector.extract_strided_slice %8 {offsets = [0, 16], sizes = [16, 4], strides = [1, 1]} : vector<16x64xf32> to vector<16x4xf32>
    %204 = vector.extract_strided_slice %10 {offsets = [0, 16], sizes = [16, 4], strides = [1, 1]} : vector<16x64xf32> to vector<16x4xf32>
    %205 = vector.extract_strided_slice %12 {offsets = [0, 16], sizes = [16, 4], strides = [1, 1]} : vector<16x64xf32> to vector<16x4xf32>
    %206 = vector.extract_strided_slice %8 {offsets = [0, 48], sizes = [16, 4], strides = [1, 1]} : vector<16x64xf32> to vector<16x4xf32>
    %207 = vector.extract_strided_slice %10 {offsets = [0, 48], sizes = [16, 4], strides = [1, 1]} : vector<16x64xf32> to vector<16x4xf32>
    %208 = vector.extract_strided_slice %12 {offsets = [0, 48], sizes = [16, 4], strides = [1, 1]} : vector<16x64xf32> to vector<16x4xf32>
    %cst_72 = arith.constant dense<0.000000e+00> : vector<16x16xf32>
    %209 = tpu.matmul %202, %203, %cst_72 {dimension_numbers = #tpu.dot_dimension_numbers<[1], [1], [0], [0], [0, 0, 1, 0], [], []>} : vector<16x4xf32>, vector<16x4xf32>, vector<16x16xf32> -> vector<16x16xf32>
    %cst_73 = arith.constant dense<0.000000e+00> : vector<16x16xf32>
    %210 = tpu.matmul %202, %204, %cst_73 {dimension_numbers = #tpu.dot_dimension_numbers<[1], [1], [0], [0], [0, 0, 1, 0], [], []>} : vector<16x4xf32>, vector<16x4xf32>, vector<16x16xf32> -> vector<16x16xf32>
    %cst_74 = arith.constant dense<0.000000e+00> : vector<16x16xf32>
    %211 = tpu.matmul %202, %205, %cst_74 {dimension_numbers = #tpu.dot_dimension_numbers<[1], [1], [0], [0], [0, 0, 1, 0], [], []>} : vector<16x4xf32>, vector<16x4xf32>, vector<16x16xf32> -> vector<16x16xf32>
    %212 = arith.addf %209, %13 : vector<16x16xf32>
    %213 = arith.addf %210, %13 : vector<16x16xf32>
    %214 = arith.addf %211, %13 : vector<16x16xf32>
    %cst_75 = arith.constant dense<0xFF800000> : vector<16xf32>
    %215 = vector.multi_reduction <maximumf>, %212, %cst_75 [1] : vector<16x16xf32> to vector<16xf32>
    %216 = vector.shape_cast %215 : vector<16xf32> to vector<16x1xf32>
    %cst_76 = arith.constant dense<0xFF800000> : vector<16xf32>
    %217 = vector.multi_reduction <maximumf>, %213, %cst_76 [1] : vector<16x16xf32> to vector<16xf32>
    %218 = vector.shape_cast %217 : vector<16xf32> to vector<16x1xf32>
    %219 = arith.maximumf %216, %218 : vector<16x1xf32>
    %cst_77 = arith.constant dense<0xFF800000> : vector<16xf32>
    %220 = vector.multi_reduction <maximumf>, %214, %cst_77 [1] : vector<16x16xf32> to vector<16xf32>
    %221 = vector.shape_cast %220 : vector<16xf32> to vector<16x1xf32>
    %222 = arith.maximumf %219, %221 : vector<16x1xf32>
    %223 = vector.broadcast %222 : vector<16x1xf32> to vector<16x16xf32>
    %224 = arith.subf %212, %223 : vector<16x16xf32>
    %225 = math.exp %224 : vector<16x16xf32>
    %226 = vector.broadcast %222 : vector<16x1xf32> to vector<16x16xf32>
    %227 = arith.subf %213, %226 : vector<16x16xf32>
    %228 = math.exp %227 : vector<16x16xf32>
    %229 = vector.broadcast %222 : vector<16x1xf32> to vector<16x16xf32>
    %230 = arith.subf %214, %229 : vector<16x16xf32>
    %231 = math.exp %230 : vector<16x16xf32>
    %cst_78 = arith.constant dense<0.000000e+00> : vector<16xf32>
    %232 = vector.multi_reduction <add>, %225, %cst_78 [1] : vector<16x16xf32> to vector<16xf32>
    %233 = vector.shape_cast %232 : vector<16xf32> to vector<16x1xf32>
    %cst_79 = arith.constant dense<0.000000e+00> : vector<16xf32>
    %234 = vector.multi_reduction <add>, %228, %cst_79 [1] : vector<16x16xf32> to vector<16xf32>
    %235 = vector.shape_cast %234 : vector<16xf32> to vector<16x1xf32>
    %236 = arith.addf %233, %235 : vector<16x1xf32>
    %cst_80 = arith.constant dense<0.000000e+00> : vector<16xf32>
    %237 = vector.multi_reduction <add>, %231, %cst_80 [1] : vector<16x16xf32> to vector<16xf32>
    %238 = vector.shape_cast %237 : vector<16xf32> to vector<16x1xf32>
    %239 = arith.addf %236, %238 : vector<16x1xf32>
    %cst_81 = arith.constant dense<0.000000e+00> : vector<16x4xf32>
    %240 = tpu.matmul %225, %206, %cst_81 {dimension_numbers = #tpu.dot_dimension_numbers<[1], [0], [0], [1], [0, 0, 1, 1], [], []>} : vector<16x16xf32>, vector<16x4xf32>, vector<16x4xf32> -> vector<16x4xf32>
    %cst_82 = arith.constant dense<0.000000e+00> : vector<16x4xf32>
    %241 = tpu.matmul %228, %207, %cst_82 {dimension_numbers = #tpu.dot_dimension_numbers<[1], [0], [0], [1], [0, 0, 1, 1], [], []>} : vector<16x16xf32>, vector<16x4xf32>, vector<16x4xf32> -> vector<16x4xf32>
    %242 = arith.addf %240, %241 : vector<16x4xf32>
    %cst_83 = arith.constant dense<0.000000e+00> : vector<16x4xf32>
    %243 = tpu.matmul %231, %208, %cst_83 {dimension_numbers = #tpu.dot_dimension_numbers<[1], [0], [0], [1], [0, 0, 1, 1], [], []>} : vector<16x16xf32>, vector<16x4xf32>, vector<16x4xf32> -> vector<16x4xf32>
    %244 = arith.addf %242, %243 : vector<16x4xf32>
    %245 = tpu.reciprocal %239 : vector<16x1xf32> -> vector<16x1xf32>
    %246 = vector.broadcast %245 : vector<16x1xf32> to vector<16x4xf32>
    %247 = arith.mulf %244, %246 : vector<16x4xf32>
    %c64 = arith.constant 64 : index
    %c0_84 = arith.constant 0 : index
    %248 = vector.load %arg9[%c64, %c0_84] : memref<128x4xf32, #tpu.memory_space<vmem>>, vector<16x4xf32>
    tpu.vector_store %arg9[%c64, %c0_84], %247 {strides = array<i32>} : memref<128x4xf32, #tpu.memory_space<vmem>>, vector<16x4xf32>,
    %249 = vector.extract_strided_slice %6 {offsets = [0, 20], sizes = [16, 4], strides = [1, 1]} : vector<16x32xf32> to vector<16x4xf32>
    %250 = vector.extract_strided_slice %8 {offsets = [0, 20], sizes = [16, 4], strides = [1, 1]} : vector<16x64xf32> to vector<16x4xf32>
    %251 = vector.extract_strided_slice %10 {offsets = [0, 20], sizes = [16, 4], strides = [1, 1]} : vector<16x64xf32> to vector<16x4xf32>
    %252 = vector.extract_strided_slice %12 {offsets = [0, 20], sizes = [16, 4], strides = [1, 1]} : vector<16x64xf32> to vector<16x4xf32>
    %253 = vector.extract_strided_slice %8 {offsets = [0, 52], sizes = [16, 4], strides = [1, 1]} : vector<16x64xf32> to vector<16x4xf32>
    %254 = vector.extract_strided_slice %10 {offsets = [0, 52], sizes = [16, 4], strides = [1, 1]} : vector<16x64xf32> to vector<16x4xf32>
    %255 = vector.extract_strided_slice %12 {offsets = [0, 52], sizes = [16, 4], strides = [1, 1]} : vector<16x64xf32> to vector<16x4xf32>
    %cst_85 = arith.constant dense<0.000000e+00> : vector<16x16xf32>
    %256 = tpu.matmul %249, %250, %cst_85 {dimension_numbers = #tpu.dot_dimension_numbers<[1], [1], [0], [0], [0, 0, 1, 0], [], []>} : vector<16x4xf32>, vector<16x4xf32>, vector<16x16xf32> -> vector<16x16xf32>
    %cst_86 = arith.constant dense<0.000000e+00> : vector<16x16xf32>
    %257 = tpu.matmul %249, %251, %cst_86 {dimension_numbers = #tpu.dot_dimension_numbers<[1], [1], [0], [0], [0, 0, 1, 0], [], []>} : vector<16x4xf32>, vector<16x4xf32>, vector<16x16xf32> -> vector<16x16xf32>
    %cst_87 = arith.constant dense<0.000000e+00> : vector<16x16xf32>
    %258 = tpu.matmul %249, %252, %cst_87 {dimension_numbers = #tpu.dot_dimension_numbers<[1], [1], [0], [0], [0, 0, 1, 0], [], []>} : vector<16x4xf32>, vector<16x4xf32>, vector<16x16xf32> -> vector<16x16xf32>
    %259 = arith.addf %256, %13 : vector<16x16xf32>
    %260 = arith.addf %257, %13 : vector<16x16xf32>
    %261 = arith.addf %258, %13 : vector<16x16xf32>
    %cst_88 = arith.constant dense<0xFF800000> : vector<16xf32>
    %262 = vector.multi_reduction <maximumf>, %259, %cst_88 [1] : vector<16x16xf32> to vector<16xf32>
    %263 = vector.shape_cast %262 : vector<16xf32> to vector<16x1xf32>
    %cst_89 = arith.constant dense<0xFF800000> : vector<16xf32>
    %264 = vector.multi_reduction <maximumf>, %260, %cst_89 [1] : vector<16x16xf32> to vector<16xf32>
    %265 = vector.shape_cast %264 : vector<16xf32> to vector<16x1xf32>
    %266 = arith.maximumf %263, %265 : vector<16x1xf32>
    %cst_90 = arith.constant dense<0xFF800000> : vector<16xf32>
    %267 = vector.multi_reduction <maximumf>, %261, %cst_90 [1] : vector<16x16xf32> to vector<16xf32>
    %268 = vector.shape_cast %267 : vector<16xf32> to vector<16x1xf32>
    %269 = arith.maximumf %266, %268 : vector<16x1xf32>
    %270 = vector.broadcast %269 : vector<16x1xf32> to vector<16x16xf32>
    %271 = arith.subf %259, %270 : vector<16x16xf32>
    %272 = math.exp %271 : vector<16x16xf32>
    %273 = vector.broadcast %269 : vector<16x1xf32> to vector<16x16xf32>
    %274 = arith.subf %260, %273 : vector<16x16xf32>
    %275 = math.exp %274 : vector<16x16xf32>
    %276 = vector.broadcast %269 : vector<16x1xf32> to vector<16x16xf32>
    %277 = arith.subf %261, %276 : vector<16x16xf32>
    %278 = math.exp %277 : vector<16x16xf32>
    %cst_91 = arith.constant dense<0.000000e+00> : vector<16xf32>
    %279 = vector.multi_reduction <add>, %272, %cst_91 [1] : vector<16x16xf32> to vector<16xf32>
    %280 = vector.shape_cast %279 : vector<16xf32> to vector<16x1xf32>
    %cst_92 = arith.constant dense<0.000000e+00> : vector<16xf32>
    %281 = vector.multi_reduction <add>, %275, %cst_92 [1] : vector<16x16xf32> to vector<16xf32>
    %282 = vector.shape_cast %281 : vector<16xf32> to vector<16x1xf32>
    %283 = arith.addf %280, %282 : vector<16x1xf32>
    %cst_93 = arith.constant dense<0.000000e+00> : vector<16xf32>
    %284 = vector.multi_reduction <add>, %278, %cst_93 [1] : vector<16x16xf32> to vector<16xf32>
    %285 = vector.shape_cast %284 : vector<16xf32> to vector<16x1xf32>
    %286 = arith.addf %283, %285 : vector<16x1xf32>
    %cst_94 = arith.constant dense<0.000000e+00> : vector<16x4xf32>
    %287 = tpu.matmul %272, %253, %cst_94 {dimension_numbers = #tpu.dot_dimension_numbers<[1], [0], [0], [1], [0, 0, 1, 1], [], []>} : vector<16x16xf32>, vector<16x4xf32>, vector<16x4xf32> -> vector<16x4xf32>
    %cst_95 = arith.constant dense<0.000000e+00> : vector<16x4xf32>
    %288 = tpu.matmul %275, %254, %cst_95 {dimension_numbers = #tpu.dot_dimension_numbers<[1], [0], [0], [1], [0, 0, 1, 1], [], []>} : vector<16x16xf32>, vector<16x4xf32>, vector<16x4xf32> -> vector<16x4xf32>
    %289 = arith.addf %287, %288 : vector<16x4xf32>
    %cst_96 = arith.constant dense<0.000000e+00> : vector<16x4xf32>
    %290 = tpu.matmul %278, %255, %cst_96 {dimension_numbers = #tpu.dot_dimension_numbers<[1], [0], [0], [1], [0, 0, 1, 1], [], []>} : vector<16x16xf32>, vector<16x4xf32>, vector<16x4xf32> -> vector<16x4xf32>
    %291 = arith.addf %289, %290 : vector<16x4xf32>
    %292 = tpu.reciprocal %286 : vector<16x1xf32> -> vector<16x1xf32>
    %293 = vector.broadcast %292 : vector<16x1xf32> to vector<16x4xf32>
    %294 = arith.mulf %291, %293 : vector<16x4xf32>
    %c80 = arith.constant 80 : index
    %c0_97 = arith.constant 0 : index
    %295 = vector.load %arg9[%c80, %c0_97] : memref<128x4xf32, #tpu.memory_space<vmem>>, vector<16x4xf32>
    tpu.vector_store %arg9[%c80, %c0_97], %294 {strides = array<i32>} : memref<128x4xf32, #tpu.memory_space<vmem>>, vector<16x4xf32>,
    %296 = vector.extract_strided_slice %6 {offsets = [0, 24], sizes = [16, 4], strides = [1, 1]} : vector<16x32xf32> to vector<16x4xf32>
    %297 = vector.extract_strided_slice %8 {offsets = [0, 24], sizes = [16, 4], strides = [1, 1]} : vector<16x64xf32> to vector<16x4xf32>
    %298 = vector.extract_strided_slice %10 {offsets = [0, 24], sizes = [16, 4], strides = [1, 1]} : vector<16x64xf32> to vector<16x4xf32>
    %299 = vector.extract_strided_slice %12 {offsets = [0, 24], sizes = [16, 4], strides = [1, 1]} : vector<16x64xf32> to vector<16x4xf32>
    %300 = vector.extract_strided_slice %8 {offsets = [0, 56], sizes = [16, 4], strides = [1, 1]} : vector<16x64xf32> to vector<16x4xf32>
    %301 = vector.extract_strided_slice %10 {offsets = [0, 56], sizes = [16, 4], strides = [1, 1]} : vector<16x64xf32> to vector<16x4xf32>
    %302 = vector.extract_strided_slice %12 {offsets = [0, 56], sizes = [16, 4], strides = [1, 1]} : vector<16x64xf32> to vector<16x4xf32>
    %cst_98 = arith.constant dense<0.000000e+00> : vector<16x16xf32>
    %303 = tpu.matmul %296, %297, %cst_98 {dimension_numbers = #tpu.dot_dimension_numbers<[1], [1], [0], [0], [0, 0, 1, 0], [], []>} : vector<16x4xf32>, vector<16x4xf32>, vector<16x16xf32> -> vector<16x16xf32>
    %cst_99 = arith.constant dense<0.000000e+00> : vector<16x16xf32>
    %304 = tpu.matmul %296, %298, %cst_99 {dimension_numbers = #tpu.dot_dimension_numbers<[1], [1], [0], [0], [0, 0, 1, 0], [], []>} : vector<16x4xf32>, vector<16x4xf32>, vector<16x16xf32> -> vector<16x16xf32>
    %cst_100 = arith.constant dense<0.000000e+00> : vector<16x16xf32>
    %305 = tpu.matmul %296, %299, %cst_100 {dimension_numbers = #tpu.dot_dimension_numbers<[1], [1], [0], [0], [0, 0, 1, 0], [], []>} : vector<16x4xf32>, vector<16x4xf32>, vector<16x16xf32> -> vector<16x16xf32>
    %306 = arith.addf %303, %13 : vector<16x16xf32>
    %307 = arith.addf %304, %13 : vector<16x16xf32>
    %308 = arith.addf %305, %13 : vector<16x16xf32>
    %cst_101 = arith.constant dense<0xFF800000> : vector<16xf32>
    %309 = vector.multi_reduction <maximumf>, %306, %cst_101 [1] : vector<16x16xf32> to vector<16xf32>
    %310 = vector.shape_cast %309 : vector<16xf32> to vector<16x1xf32>
    %cst_102 = arith.constant dense<0xFF800000> : vector<16xf32>
    %311 = vector.multi_reduction <maximumf>, %307, %cst_102 [1] : vector<16x16xf32> to vector<16xf32>
    %312 = vector.shape_cast %311 : vector<16xf32> to vector<16x1xf32>
    %313 = arith.maximumf %310, %312 : vector<16x1xf32>
    %cst_103 = arith.constant dense<0xFF800000> : vector<16xf32>
    %314 = vector.multi_reduction <maximumf>, %308, %cst_103 [1] : vector<16x16xf32> to vector<16xf32>
    %315 = vector.shape_cast %314 : vector<16xf32> to vector<16x1xf32>
    %316 = arith.maximumf %313, %315 : vector<16x1xf32>
    %317 = vector.broadcast %316 : vector<16x1xf32> to vector<16x16xf32>
    %318 = arith.subf %306, %317 : vector<16x16xf32>
    %319 = math.exp %318 : vector<16x16xf32>
    %320 = vector.broadcast %316 : vector<16x1xf32> to vector<16x16xf32>
    %321 = arith.subf %307, %320 : vector<16x16xf32>
    %322 = math.exp %321 : vector<16x16xf32>
    %323 = vector.broadcast %316 : vector<16x1xf32> to vector<16x16xf32>
    %324 = arith.subf %308, %323 : vector<16x16xf32>
    %325 = math.exp %324 : vector<16x16xf32>
    %cst_104 = arith.constant dense<0.000000e+00> : vector<16xf32>
    %326 = vector.multi_reduction <add>, %319, %cst_104 [1] : vector<16x16xf32> to vector<16xf32>
    %327 = vector.shape_cast %326 : vector<16xf32> to vector<16x1xf32>
    %cst_105 = arith.constant dense<0.000000e+00> : vector<16xf32>
    %328 = vector.multi_reduction <add>, %322, %cst_105 [1] : vector<16x16xf32> to vector<16xf32>
    %329 = vector.shape_cast %328 : vector<16xf32> to vector<16x1xf32>
    %330 = arith.addf %327, %329 : vector<16x1xf32>
    %cst_106 = arith.constant dense<0.000000e+00> : vector<16xf32>
    %331 = vector.multi_reduction <add>, %325, %cst_106 [1] : vector<16x16xf32> to vector<16xf32>
    %332 = vector.shape_cast %331 : vector<16xf32> to vector<16x1xf32>
    %333 = arith.addf %330, %332 : vector<16x1xf32>
    %cst_107 = arith.constant dense<0.000000e+00> : vector<16x4xf32>
    %334 = tpu.matmul %319, %300, %cst_107 {dimension_numbers = #tpu.dot_dimension_numbers<[1], [0], [0], [1], [0, 0, 1, 1], [], []>} : vector<16x16xf32>, vector<16x4xf32>, vector<16x4xf32> -> vector<16x4xf32>
    %cst_108 = arith.constant dense<0.000000e+00> : vector<16x4xf32>
    %335 = tpu.matmul %322, %301, %cst_108 {dimension_numbers = #tpu.dot_dimension_numbers<[1], [0], [0], [1], [0, 0, 1, 1], [], []>} : vector<16x16xf32>, vector<16x4xf32>, vector<16x4xf32> -> vector<16x4xf32>
    %336 = arith.addf %334, %335 : vector<16x4xf32>
    %cst_109 = arith.constant dense<0.000000e+00> : vector<16x4xf32>
    %337 = tpu.matmul %325, %302, %cst_109 {dimension_numbers = #tpu.dot_dimension_numbers<[1], [0], [0], [1], [0, 0, 1, 1], [], []>} : vector<16x16xf32>, vector<16x4xf32>, vector<16x4xf32> -> vector<16x4xf32>
    %338 = arith.addf %336, %337 : vector<16x4xf32>
    %339 = tpu.reciprocal %333 : vector<16x1xf32> -> vector<16x1xf32>
    %340 = vector.broadcast %339 : vector<16x1xf32> to vector<16x4xf32>
    %341 = arith.mulf %338, %340 : vector<16x4xf32>
    %c96 = arith.constant 96 : index
    %c0_110 = arith.constant 0 : index
    %342 = vector.load %arg9[%c96, %c0_110] : memref<128x4xf32, #tpu.memory_space<vmem>>, vector<16x4xf32>
    tpu.vector_store %arg9[%c96, %c0_110], %341 {strides = array<i32>} : memref<128x4xf32, #tpu.memory_space<vmem>>, vector<16x4xf32>,
    %343 = vector.extract_strided_slice %6 {offsets = [0, 28], sizes = [16, 4], strides = [1, 1]} : vector<16x32xf32> to vector<16x4xf32>
    %344 = vector.extract_strided_slice %8 {offsets = [0, 28], sizes = [16, 4], strides = [1, 1]} : vector<16x64xf32> to vector<16x4xf32>
    %345 = vector.extract_strided_slice %10 {offsets = [0, 28], sizes = [16, 4], strides = [1, 1]} : vector<16x64xf32> to vector<16x4xf32>
    %346 = vector.extract_strided_slice %12 {offsets = [0, 28], sizes = [16, 4], strides = [1, 1]} : vector<16x64xf32> to vector<16x4xf32>
    %347 = vector.extract_strided_slice %8 {offsets = [0, 60], sizes = [16, 4], strides = [1, 1]} : vector<16x64xf32> to vector<16x4xf32>
    %348 = vector.extract_strided_slice %10 {offsets = [0, 60], sizes = [16, 4], strides = [1, 1]} : vector<16x64xf32> to vector<16x4xf32>
    %349 = vector.extract_strided_slice %12 {offsets = [0, 60], sizes = [16, 4], strides = [1, 1]} : vector<16x64xf32> to vector<16x4xf32>
    %cst_111 = arith.constant dense<0.000000e+00> : vector<16x16xf32>
    %350 = tpu.matmul %343, %344, %cst_111 {dimension_numbers = #tpu.dot_dimension_numbers<[1], [1], [0], [0], [0, 0, 1, 0], [], []>} : vector<16x4xf32>, vector<16x4xf32>, vector<16x16xf32> -> vector<16x16xf32>
    %cst_112 = arith.constant dense<0.000000e+00> : vector<16x16xf32>
    %351 = tpu.matmul %343, %345, %cst_112 {dimension_numbers = #tpu.dot_dimension_numbers<[1], [1], [0], [0], [0, 0, 1, 0], [], []>} : vector<16x4xf32>, vector<16x4xf32>, vector<16x16xf32> -> vector<16x16xf32>
    %cst_113 = arith.constant dense<0.000000e+00> : vector<16x16xf32>
    %352 = tpu.matmul %343, %346, %cst_113 {dimension_numbers = #tpu.dot_dimension_numbers<[1], [1], [0], [0], [0, 0, 1, 0], [], []>} : vector<16x4xf32>, vector<16x4xf32>, vector<16x16xf32> -> vector<16x16xf32>
    %353 = arith.addf %350, %13 : vector<16x16xf32>
    %354 = arith.addf %351, %13 : vector<16x16xf32>
    %355 = arith.addf %352, %13 : vector<16x16xf32>
    %cst_114 = arith.constant dense<0xFF800000> : vector<16xf32>
    %356 = vector.multi_reduction <maximumf>, %353, %cst_114 [1] : vector<16x16xf32> to vector<16xf32>
    %357 = vector.shape_cast %356 : vector<16xf32> to vector<16x1xf32>
    %cst_115 = arith.constant dense<0xFF800000> : vector<16xf32>
    %358 = vector.multi_reduction <maximumf>, %354, %cst_115 [1] : vector<16x16xf32> to vector<16xf32>
    %359 = vector.shape_cast %358 : vector<16xf32> to vector<16x1xf32>
    %360 = arith.maximumf %357, %359 : vector<16x1xf32>
    %cst_116 = arith.constant dense<0xFF800000> : vector<16xf32>
    %361 = vector.multi_reduction <maximumf>, %355, %cst_116 [1] : vector<16x16xf32> to vector<16xf32>
    %362 = vector.shape_cast %361 : vector<16xf32> to vector<16x1xf32>
    %363 = arith.maximumf %360, %362 : vector<16x1xf32>
    %364 = vector.broadcast %363 : vector<16x1xf32> to vector<16x16xf32>
    %365 = arith.subf %353, %364 : vector<16x16xf32>
    %366 = math.exp %365 : vector<16x16xf32>
    %367 = vector.broadcast %363 : vector<16x1xf32> to vector<16x16xf32>
    %368 = arith.subf %354, %367 : vector<16x16xf32>
    %369 = math.exp %368 : vector<16x16xf32>
    %370 = vector.broadcast %363 : vector<16x1xf32> to vector<16x16xf32>
    %371 = arith.subf %355, %370 : vector<16x16xf32>
    %372 = math.exp %371 : vector<16x16xf32>
    %cst_117 = arith.constant dense<0.000000e+00> : vector<16xf32>
    %373 = vector.multi_reduction <add>, %366, %cst_117 [1] : vector<16x16xf32> to vector<16xf32>
    %374 = vector.shape_cast %373 : vector<16xf32> to vector<16x1xf32>
    %cst_118 = arith.constant dense<0.000000e+00> : vector<16xf32>
    %375 = vector.multi_reduction <add>, %369, %cst_118 [1] : vector<16x16xf32> to vector<16xf32>
    %376 = vector.shape_cast %375 : vector<16xf32> to vector<16x1xf32>
    %377 = arith.addf %374, %376 : vector<16x1xf32>
    %cst_119 = arith.constant dense<0.000000e+00> : vector<16xf32>
    %378 = vector.multi_reduction <add>, %372, %cst_119 [1] : vector<16x16xf32> to vector<16xf32>
    %379 = vector.shape_cast %378 : vector<16xf32> to vector<16x1xf32>
    %380 = arith.addf %377, %379 : vector<16x1xf32>
    %cst_120 = arith.constant dense<0.000000e+00> : vector<16x4xf32>
    %381 = tpu.matmul %366, %347, %cst_120 {dimension_numbers = #tpu.dot_dimension_numbers<[1], [0], [0], [1], [0, 0, 1, 1], [], []>} : vector<16x16xf32>, vector<16x4xf32>, vector<16x4xf32> -> vector<16x4xf32>
    %cst_121 = arith.constant dense<0.000000e+00> : vector<16x4xf32>
    %382 = tpu.matmul %369, %348, %cst_121 {dimension_numbers = #tpu.dot_dimension_numbers<[1], [0], [0], [1], [0, 0, 1, 1], [], []>} : vector<16x16xf32>, vector<16x4xf32>, vector<16x4xf32> -> vector<16x4xf32>
    %383 = arith.addf %381, %382 : vector<16x4xf32>
    %cst_122 = arith.constant dense<0.000000e+00> : vector<16x4xf32>
    %384 = tpu.matmul %372, %349, %cst_122 {dimension_numbers = #tpu.dot_dimension_numbers<[1], [0], [0], [1], [0, 0, 1, 1], [], []>} : vector<16x16xf32>, vector<16x4xf32>, vector<16x4xf32> -> vector<16x4xf32>
    %385 = arith.addf %383, %384 : vector<16x4xf32>
    %386 = tpu.reciprocal %380 : vector<16x1xf32> -> vector<16x1xf32>
    %387 = vector.broadcast %386 : vector<16x1xf32> to vector<16x4xf32>
    %388 = arith.mulf %385, %387 : vector<16x4xf32>
    %c112 = arith.constant 112 : index
    %c0_123 = arith.constant 0 : index
    %389 = vector.load %arg9[%c112, %c0_123] : memref<128x4xf32, #tpu.memory_space<vmem>>, vector<16x4xf32>
    tpu.vector_store %arg9[%c112, %c0_123], %388 {strides = array<i32>} : memref<128x4xf32, #tpu.memory_space<vmem>>, vector<16x4xf32>,
    %c0_124 = arith.constant 0 : index
    %c0_125 = arith.constant 0 : index
    %390 = tpu.strided_load %arg9[%c0_124, %c0_125] {strides = array<i32: 8, 1>} : memref<128x4xf32, #tpu.memory_space<vmem>>, vector<16x4xf32>
    %c0_126 = arith.constant 0 : index
    %c0_127 = arith.constant 0 : index
    %391 = vector.load %arg10[%c0_126, %c0_127] : memref<16x32xf32, #tpu.memory_space<vmem>>, vector<16x4xf32>
    tpu.vector_store %arg10[%c0_126, %c0_127], %390 {strides = array<i32>} : memref<16x32xf32, #tpu.memory_space<vmem>>, vector<16x4xf32>,
    %c1 = arith.constant 1 : index
    %c0_128 = arith.constant 0 : index
    %392 = tpu.strided_load %arg9[%c1, %c0_128] {strides = array<i32: 8, 1>} : memref<128x4xf32, #tpu.memory_space<vmem>>, vector<16x4xf32>
    %c0_129 = arith.constant 0 : index
    %c4 = arith.constant 4 : index
    %393 = vector.load %arg10[%c0_129, %c4] : memref<16x32xf32, #tpu.memory_space<vmem>>, vector<16x4xf32>
    tpu.vector_store %arg10[%c0_129, %c4], %392 {strides = array<i32>} : memref<16x32xf32, #tpu.memory_space<vmem>>, vector<16x4xf32>,
    %c2 = arith.constant 2 : index
    %c0_130 = arith.constant 0 : index
    %394 = tpu.strided_load %arg9[%c2, %c0_130] {strides = array<i32: 8, 1>} : memref<128x4xf32, #tpu.memory_space<vmem>>, vector<16x4xf32>
    %c0_131 = arith.constant 0 : index
    %c8 = arith.constant 8 : index
    %395 = vector.load %arg10[%c0_131, %c8] : memref<16x32xf32, #tpu.memory_space<vmem>>, vector<16x4xf32>
    tpu.vector_store %arg10[%c0_131, %c8], %394 {strides = array<i32>} : memref<16x32xf32, #tpu.memory_space<vmem>>, vector<16x4xf32>,
    %c3 = arith.constant 3 : index
    %c0_132 = arith.constant 0 : index
    %396 = tpu.strided_load %arg9[%c3, %c0_132] {strides = array<i32: 8, 1>} : memref<128x4xf32, #tpu.memory_space<vmem>>, vector<16x4xf32>
    %c0_133 = arith.constant 0 : index
    %c12 = arith.constant 12 : index
    %397 = vector.load %arg10[%c0_133, %c12] : memref<16x32xf32, #tpu.memory_space<vmem>>, vector<16x4xf32>
    tpu.vector_store %arg10[%c0_133, %c12], %396 {strides = array<i32>} : memref<16x32xf32, #tpu.memory_space<vmem>>, vector<16x4xf32>,
    %c4_134 = arith.constant 4 : index
    %c0_135 = arith.constant 0 : index
    %398 = tpu.strided_load %arg9[%c4_134, %c0_135] {strides = array<i32: 8, 1>} : memref<128x4xf32, #tpu.memory_space<vmem>>, vector<16x4xf32>
    %c0_136 = arith.constant 0 : index
    %c16_137 = arith.constant 16 : index
    %399 = vector.load %arg10[%c0_136, %c16_137] : memref<16x32xf32, #tpu.memory_space<vmem>>, vector<16x4xf32>
    tpu.vector_store %arg10[%c0_136, %c16_137], %398 {strides = array<i32>} : memref<16x32xf32, #tpu.memory_space<vmem>>, vector<16x4xf32>,
    %c5 = arith.constant 5 : index
    %c0_138 = arith.constant 0 : index
    %400 = tpu.strided_load %arg9[%c5, %c0_138] {strides = array<i32: 8, 1>} : memref<128x4xf32, #tpu.memory_space<vmem>>, vector<16x4xf32>
    %c0_139 = arith.constant 0 : index
    %c20 = arith.constant 20 : index
    %401 = vector.load %arg10[%c0_139, %c20] : memref<16x32xf32, #tpu.memory_space<vmem>>, vector<16x4xf32>
    tpu.vector_store %arg10[%c0_139, %c20], %400 {strides = array<i32>} : memref<16x32xf32, #tpu.memory_space<vmem>>, vector<16x4xf32>,
    %c6 = arith.constant 6 : index
    %c0_140 = arith.constant 0 : index
    %402 = tpu.strided_load %arg9[%c6, %c0_140] {strides = array<i32: 8, 1>} : memref<128x4xf32, #tpu.memory_space<vmem>>, vector<16x4xf32>
    %c0_141 = arith.constant 0 : index
    %c24 = arith.constant 24 : index
    %403 = vector.load %arg10[%c0_141, %c24] : memref<16x32xf32, #tpu.memory_space<vmem>>, vector<16x4xf32>
    tpu.vector_store %arg10[%c0_141, %c24], %402 {strides = array<i32>} : memref<16x32xf32, #tpu.memory_space<vmem>>, vector<16x4xf32>,
    %c7 = arith.constant 7 : index
    %c0_142 = arith.constant 0 : index
    %404 = tpu.strided_load %arg9[%c7, %c0_142] {strides = array<i32: 8, 1>} : memref<128x4xf32, #tpu.memory_space<vmem>>, vector<16x4xf32>
    %c0_143 = arith.constant 0 : index
    %c28 = arith.constant 28 : index
    %405 = vector.load %arg10[%c0_143, %c28] : memref<16x32xf32, #tpu.memory_space<vmem>>, vector<16x4xf32>
    tpu.vector_store %arg10[%c0_143, %c28], %404 {strides = array<i32>} : memref<16x32xf32, #tpu.memory_space<vmem>>, vector<16x4xf32>,
    %c0_144 = arith.constant 0 : index
    %c0_145 = arith.constant 0 : index
    %406 = vector.load %arg10[%c0_144, %c0_145] : memref<16x32xf32, #tpu.memory_space<vmem>>, vector<16x32xf32>
    %c0_146 = arith.constant 0 : index
    %c0_147 = arith.constant 0 : index
    %407 = vector.load %arg5[%c0_146, %c0_147] : memref<32x32xf32, #tpu.memory_space<vmem>>, vector<32x32xf32>
    %cst_148 = arith.constant dense<0.000000e+00> : vector<16x32xf32>
    %408 = tpu.matmul %406, %407, %cst_148 {dimension_numbers = #tpu.dot_dimension_numbers<[1], [0], [0], [1], [0, 0, 1, 1], [], []>} : vector<16x32xf32>, vector<32x32xf32>, vector<16x32xf32> -> vector<16x32xf32>
    %c0_149 = arith.constant 0 : index
    %c0_150 = arith.constant 0 : index
    %409 = vector.load %arg6[%c0_149, %c0_150] : memref<1x32xf32, #tpu.memory_space<vmem>>, vector<1x32xf32>
    %410 = vector.broadcast %409 : vector<1x32xf32> to vector<16x32xf32>
    %411 = arith.addf %408, %410 : vector<16x32xf32>
    %c0_151 = arith.constant 0 : index
    %c0_152 = arith.constant 0 : index
    %412 = vector.load %arg8[%c0_151, %c0_152] : memref<16x32xf32, #tpu.memory_space<vmem>>, vector<16x32xf32>
    tpu.vector_store %arg8[%c0_151, %c0_152], %411 {strides = array<i32>} : memref<16x32xf32, #tpu.memory_space<vmem>>, vector<16x32xf32>,
    return
  }
}

</mosaic_0001>

<bundles_post_ra>
// kernel: tpu_custom_call.1
= control target key start
LH: loop header
LB: loop body
LE: loop exit
PB: predicated region body
PF: predicated region fallthrough
CT: control target
= control target key end

     0   :  { %13 = vsyncpa [#allocation5], 0  ;;  %s7513_s0 = inlined_call_operand.hbm [shape: f32[16,32], index: 0, kind: input, shape index: {}]   ;;  %s7514_s1 = inlined_call_operand.hbm [shape: f32[16,32], index: 1, kind: input, shape index: {}]   ;;  %s7515_s2 = inlined_call_operand.hbm [shape: f32[16,32], index: 2, kind: input, shape index: {}]   ;;  %s7516_s3 = inlined_call_operand.hbm [shape: f32[32,32], index: 3, kind: input, shape index: {}]   ;;  %s7517_s4 = inlined_call_operand.hbm [shape: f32[32,64], index: 4, kind: input, shape index: {}]   ;;  %s7518_s5 = inlined_call_operand.hbm [shape: f32[32,32], index: 5, kind: input, shape index: {}]   ;;  %s7519_s6 = inlined_call_operand.vmem [shape: f32[1,32], index: 6, kind: input, shape index: {}]   ;;  %s7520_s7 = inlined_call_operand.hbm [shape: f32[16,16], index: 7, kind: input, shape index: {}]   ;;  %s7521_s8 = inlined_call_operand.hbm [shape: f32[16,32], index: 8, kind: output, shape index: {}]  }
   0x1   :  { %14 = vsyncpa [#allocation8], 0 }
   0x2   :  { %15 = vsyncpa [#allocation11], 0 }
   0x3   :  { %16 = vsyncpa [#allocation14], 0 }
   0x4   :  { %17 = vsyncpa [#allocation6], 0  ;;  %s6517_s27 = smov [#allocation7]   ;;  %s6518_s29 = smov [#allocation10]  }
   0x5   :  { %s35_s28 = sshll.u32 %s6517_s27, 4  ;;  %s59_s30 = sshll.u32 %s6518_s29, 4  ;;  %s36_s28 = int_to_ptr.vmem [resolvable:$true] %s35_s28  ;;  %s60_s30 = int_to_ptr.vmem [resolvable:$true] %s59_s30 }
   0x6   :  { %s6355_s9 = scalar_lea.vmem %s36_s28, 256  ;;  %p6360_p1 = scmp.lt.s32.totalorder %s36_s28, %s36_s28 }
   0x7   :  { %p6356_p0 = scmp.ne.s32.totalorder %s36_s28, %s6355_s9  ;;  %p6361_p2 = scmp.lt.s32.totalorder %s6355_s9, %s6355_s9 }
   0x9   :  { %p6362_p3 = por %p6361_p2, %p6360_p1 }
   0xb   :  { %p6363_p4 = pnand %p6362_p3, %p6356_p0 }
   0xd   :  { %6366 = shalt.err (!%p6363_p4)
}
   0xe   :  { %s6519_s10 = smov 128   ;;  %s6520_s11 = smov 8  }
   0xf   :  { %41 = dma.hbm_to_vmem [thread:$0]  %s7514_s1, 256, %s36_s28, [#allocation8], %s6519_s10, %s6519_s10, %s6520_s11  }
  0x10   :  { %s6375_s14 = scalar_lea.vmem %s60_s30, 512  ;;  %p6380_p6 = scmp.lt.s32.totalorder %s60_s30, %s60_s30 }
  0x11   :  { %p6376_p5 = scmp.ne.s32.totalorder %s60_s30, %s6375_s14  ;;  %p6381_p7 = scmp.lt.s32.totalorder %s6375_s14, %s6375_s14 }
  0x13   :  { %p6382_p8 = por %p6381_p7, %p6380_p6 }
  0x15   :  { %p6383_p9 = pnand %p6382_p8, %p6376_p5 }
  0x17   :  { %6386 = shalt.err (!%p6383_p9)
}
  0x18   :  { %65 = dma.hbm_to_vmem [thread:$0]  %s7516_s3, 512, %s60_s30, [#allocation11], %s6519_s10, %s6519_s10, %s6520_s11  }
  0x19   :  { %s6521_s17 = smov [#allocation13]   ;;  %s6522_s19 = smov [#allocation4]  }
  0x1a   :  { %s83_s18 = sshll.u32 %s6521_s17, 4  ;;  %s23_s20 = sshll.u32 %s6522_s19, 4  ;;  %s84_s18 = int_to_ptr.vmem [resolvable:$true] %s83_s18  ;;  %s24_s20 = int_to_ptr.vmem [resolvable:$true] %s23_s20 }
  0x1b   :  { %s6395_s1 = scalar_lea.vmem %s84_s18, 512  ;;  %p6400_p11 = scmp.lt.s32.totalorder %s84_s18, %s84_s18 }
  0x1c   :  { %p6396_p10 = scmp.ne.s32.totalorder %s84_s18, %s6395_s1  ;;  %p6401_p12 = scmp.lt.s32.totalorder %s6395_s1, %s6395_s1 }
  0x1e   :  { %p6402_p13 = por %p6401_p12, %p6400_p11 }
  0x20   :  { %p6403_p0 = pnand %p6402_p13, %p6396_p10 }
  0x22   :  { %6406 = shalt.err (!%p6403_p0)
}
  0x23   :  { %89 = dma.hbm_to_vmem [thread:$0]  %s7518_s5, 512, %s84_s18, [#allocation14], %s6519_s10, %s6519_s10, %s6520_s11  }
  0x24   :  { %s6415_s3 = scalar_lea.vmem %s24_s20, 256  ;;  %p6420_p2 = scmp.lt.s32.totalorder %s24_s20, %s24_s20 }
  0x25   :  { %p6416_p1 = scmp.ne.s32.totalorder %s24_s20, %s6415_s3  ;;  %p6421_p3 = scmp.lt.s32.totalorder %s6415_s3, %s6415_s3 }
  0x27   :  { %p6422_p4 = por %p6421_p3, %p6420_p2 }
  0x29   :  { %p6423_p5 = pnand %p6422_p4, %p6416_p1 }
  0x2b   :  { %6426 = shalt.err (!%p6423_p5)
}
  0x2c   :  { %29 = dma.hbm_to_vmem [thread:$0]  %s7513_s0, 256, %s24_s20, [#allocation5], %s6519_s10, %s6519_s10, %s6520_s11  }
  0x2d   :  { %s6523_s25 = smov [#allocation9]   ;;  %s6524_s27 = smov [#allocation12]  }
  0x2e   :  { %s47_s26 = sshll.u32 %s6523_s25, 4  ;;  %s71_s28 = sshll.u32 %s6524_s27, 4  ;;  %s48_s26 = int_to_ptr.vmem [resolvable:$true] %s47_s26  ;;  %s72_s28 = int_to_ptr.vmem [resolvable:$true] %s71_s28 }
  0x2f   :  { %s6435_s5 = scalar_lea.vmem %s48_s26, 256  ;;  %p6440_p7 = scmp.lt.s32.totalorder %s48_s26, %s48_s26 }
  0x30   :  { %p6436_p6 = scmp.ne.s32.totalorder %s48_s26, %s6435_s5  ;;  %p6441_p8 = scmp.lt.s32.totalorder %s6435_s5, %s6435_s5 }
  0x32   :  { %p6442_p9 = por %p6441_p8, %p6440_p7 }
  0x34   :  { %p6443_p10 = pnand %p6442_p9, %p6436_p6 }
  0x36   :  { %6446 = shalt.err (!%p6443_p10)
}
  0x37   :  { %53 = dma.hbm_to_vmem [thread:$0]  %s7515_s2, 256, %s48_s26, [#allocation8], %s6519_s10, %s6519_s10, %s6520_s11  }
  0x38   :  { %s6455_s0 = scalar_lea.vmem %s72_s28, 512  ;;  %p6460_p12 = scmp.lt.s32.totalorder %s72_s28, %s72_s28 }
  0x39   :  { %p6456_p11 = scmp.ne.s32.totalorder %s72_s28, %s6455_s0  ;;  %p6461_p13 = scmp.lt.s32.totalorder %s6455_s0, %s6455_s0 }
  0x3b   :  { %p6462_p0 = por %p6461_p13, %p6460_p12 }
  0x3d   :  { %p6463_p1 = pnand %p6462_p0, %p6456_p11 }
  0x3f   :  { %6466 = shalt.err (!%p6463_p1)
}
  0x40   :  { %77 = dma.hbm_to_vmem [thread:$0]  %s7517_s4, 512, %s72_s28, [#allocation11], %s6519_s10, %s6519_s10, %s6520_s11  }
  0x41   :  { %s6525_s13 = smov [#allocation15]  }
  0x42   :  { %s97_s14 = sshll.u32 %s6525_s13, 4  ;;  %s98_s14 = int_to_ptr.vmem [resolvable:$true] %s97_s14 }
  0x43   :  { %s6475_s15 = scalar_lea.vmem %s98_s14, 256  ;;  %p6480_p3 = scmp.lt.s32.totalorder %s98_s14, %s98_s14 }
  0x44   :  { %p6476_p2 = scmp.ne.s32.totalorder %s98_s14, %s6475_s15  ;;  %p6481_p4 = scmp.lt.s32.totalorder %s6475_s15, %s6475_s15 }
  0x46   :  { %p6482_p5 = por %p6481_p4, %p6480_p3 }
  0x48   :  { %p6483_p6 = pnand %p6482_p5, %p6476_p2 }
  0x4a   :  { %6486 = shalt.err (!%p6483_p6)
}
  0x4b   :  { %103 = dma.hbm_to_vmem [thread:$0]  %s7520_s7, 256, %s98_s14, [#allocation14], %s6519_s10, %s6519_s10, %s6520_s11  }
  0x4c   :  { %6507 = dma.done.wait [#allocation5], 256  }
  0x4d   :  { %6508 = vsyncadd [#allocation5], 4294967040 }
  0x4e   :  { %6509 = dma.done.wait [#allocation8], 512  }
  0x4f   :  { %6510 = vsyncadd [#allocation8], 4294966784 }
  0x50   :  { %6511 = dma.done.wait [#allocation11], 1024  }
  0x51   :  { %6512 = vsyncadd [#allocation11], 4294966272 }
  0x52   :  { %6513 = dma.done.wait [#allocation14], 768  }
  0x53   :  { %6514 = vsyncadd [#allocation14], 4294966528  ;;  %v134_v0 = vld [vmem:[#allocation10 + $0x18] sm:$0xff]  ;;  %v133_v2 = vld [vmem:[#allocation10 + $0x10] sm:$0xff]  ;;  %vm135_vm0 = vcmask 261120   ;;  %vm462_vm1 = vcmask 31744  }
  0x54   :  { %v222_v1 = vld [vmem:[#allocation12 + $0x18] sm:$0xff]  ;;  %5795 = vmatprep.subr.mxu0 %v134_v0  ;;  %v221_v3 = vld [vmem:[#allocation12 + $0x10] sm:$0xff]  ;;  %v132_v4 = vld [vmem:[#allocation10 + $0x8] sm:$0xff]  ;;  %vm712_vm2 = vcmask 130048   ;;  %s6526_s4 = smov 96   ;;  %s6527_s7 = smov 124  }
  0x55   :  { %5806 = vmatprep.subr.mxu1 %v222_v1  ;;  %5796 = vmatpush3.msra.mxu0 %v134_v0  ;;  %v220_v5 = vld [vmem:[#allocation12 + $0x8] sm:$0xff]  ;;  %v131_v6 = vld [vmem:[#allocation10] sm:$0xff]  ;;  %v125_v8 = vld [vmem:[#allocation4] sm:$0xff]  ;;  %s6528_s17 = smov 92   ;;  %s6529_s18 = smov 120   ;;  %vm5185_vm3 = vcmask 64544  }
  0x56   :  { %5807 = vmatpush3.msra.mxu1 %v222_v1  ;;  %5797 = vmatprep.subr.mxu0 %v133_v2  ;;  %v219_v7 = vld [vmem:[#allocation12] sm:$0xff]  ;;  %v126_v9 = vld [vmem:[#allocation4 + $0x8] sm:$0xff]  ;;  %v129_v11 = vld [vmem:[#allocation9] sm:$0xff]  ;;  %s6530_s19 = smov 88   ;;  %s6531_s20 = smov 116   ;;  %vm5204_vm4 = vcmask 97344  }
  0x57   :  { %5808 = vmatprep.subr.mxu1 %v221_v3  ;;  %5798 = vmatpush3.msra.mxu0 %v133_v2  ;;  %v127_v10 = vld [vmem:[#allocation7] sm:$0xff]  ;;  %v128_v12 = vld [vmem:[#allocation7 + $0x8] sm:$0xff]  ;;  %v130_v13 = vld [vmem:[#allocation9 + $0x8] sm:$0xff]  ;;  %s6532_s1 = smov 84   ;;  %s6533_s21 = smov 112   ;;  %vm5223_vm5 = vcmask 130144  }
  0x58   :  { %5809 = vmatpush3.msra.mxu1 %v221_v3  ;;  %5799 = vmatprep.subr.mxu0 %v132_v4  ;;  %v6695_v24 = vld [vmem:[#allocation15 + $0x8] sm:$0xff]  ;;  %v6697_v26 = vld [vmem:[#allocation15] sm:$0xff]  ;;  %s6534_s22 = smov 80   ;;  %s6535_s3 = smov 108   ;;  %vm5242_vm6 = vcmask 162944   ;;  %vm5261_vm7 = vcmask 195744  }
  0x59   :  { %5810 = vmatprep.subr.mxu1 %v220_v5  ;;  %5800 = vmatpush3.msra.mxu0 %v132_v4  ;;  %s6536_s23 = smov 76   ;;  %s6537_s24 = smov 104   ;;  %vm5280_vm8 = vcmask 228544   ;;  %vm5299_vm9 = vcmask 261344  }
  0x5a   :  { %5811 = vmatpush3.msra.mxu1 %v220_v5  ;;  %5801 = vmatprep.subr.mxu0 %v131_v6  ;;  %s6538_s25 = smov 72   ;;  %s6539_s26 = smov 100  }
  0x5b   :  { %5812 = vmatprep.subr.mxu1 %v219_v7  ;;  %5802 = vmatpush3.msra.mxu0 %v131_v6  ;;  %s6540_s27 = smov 68   ;;  %s6541_s28 = smov 4  }
  0x5c   :  { %5803 = vmatprep.mubr.msk.f32.mxu0 %vm135_vm0, %v125_v8  ;;  %5813 = vmatpush3.msra.mxu1 %v219_v7  ;;  %s6542_s5 = smov 12   ;;  %s6543_s29 = smov 16  }
  0x5d   :  { %5814 = vmatprep.mubr.msk.f32.mxu1 %vm135_vm0, %v125_v8  ;;  %5804 = vmatmul.mubr.msk.f32.vlgmr.msra.gmra.mxu0 %vm135_vm0, %v126_v9  ;;  %s6544_s30 = smov 20   ;;  %s6545_s0 = smov 24  }
  0x5e   :  { %5815 = vmatmul.mubr.msk.f32.vlgmr.msra.gmra.mxu1 %vm135_vm0, %v126_v9  ;;  %5817 = vmatprep.subr.mxu0 %v222_v1  ;;  %s6546_s9 = smov 28   ;;  %s6547_s14 = smov [#allocation16]  }
  0x5f   :  { %5828 = vmatprep.subr.mxu1 %v222_v1  ;;  %5818 = vmatpush3.msra.mxu0 %v222_v1  ;;  %s5403_s15 = sshll.u32 %s6547_s14, 4  ;;  %s5404_s15 = int_to_ptr.vmem [resolvable:$true] %s5403_s15 }
  0x60   :  { %5829 = vmatpush3.msra.mxu1 %v222_v1  ;;  %5819 = vmatprep.subr.mxu0 %v221_v3  ;;  %s6487_s2 = scalar_lea.vmem %s5404_s15, 256  ;;  %p6492_p8 = scmp.lt.s32.totalorder %s5404_s15, %s5404_s15 }
  0x61   :  { %5830 = vmatprep.subr.mxu1 %v221_v3  ;;  %5820 = vmatpush3.msra.mxu0 %v221_v3  ;;  %p6488_p7 = scmp.ne.s32.totalorder %s5404_s15, %s6487_s2  ;;  %p6493_p9 = scmp.lt.s32.totalorder %s6487_s2, %s6487_s2 }
  0x62   :  { %5831 = vmatpush3.msra.mxu1 %v221_v3  ;;  %5821 = vmatprep.subr.mxu0 %v220_v5 }
  0x63   :  { %5832 = vmatprep.subr.mxu1 %v220_v5  ;;  %5822 = vmatpush3.msra.mxu0 %v220_v5  ;;  %p6494_p10 = por %p6493_p9, %p6492_p8 }
  0x64   :  { %5833 = vmatpush3.msra.mxu1 %v220_v5  ;;  %5823 = vmatprep.subr.mxu0 %v219_v7 }
  0x65   :  { %5834 = vmatprep.subr.mxu1 %v219_v7  ;;  %5824 = vmatpush3.msra.mxu0 %v219_v7  ;;  %p6495_p11 = pnand %p6494_p10, %p6488_p7 }
  0x66   :  { %5825 = vmatprep.mubr.msk.f32.mxu0 %vm135_vm0, %v127_v10  ;;  %5835 = vmatpush3.msra.mxu1 %v219_v7 }
  0x67   :  { %5836 = vmatprep.mubr.msk.f32.mxu1 %vm135_vm0, %v129_v11  ;;  %5826 = vmatmul.mubr.msk.f32.vlgmr.msra.gmra.mxu0 %vm135_vm0, %v128_v12 }
  0x68   :  { %5837 = vmatmul.mubr.msk.f32.vlgmr.msra.gmra.mxu1 %vm135_vm0, %v130_v13 }
 0x11d   :  { %v5805_v14 = vpop.f32.mrf.mxu0 }
 0x11e   :  { %v6643_v15 = vpop.f32.mrf.mxu1  ;;  %v6661_v19 = vmul.f32 0.5, %v5805_v14 }
 0x11f   :  { %5839 = vmatprep.subr.msk.mxu0 %vm462_vm1, %v6643_v15  ;;  %v208_v16 = vpop.f32.mrf.mxu0 }
 0x120   :  { %5840 = vmatpush3.xpose.msk.msra.mxu0 %vm462_vm1, %v6643_v15  ;;  %v6649_v17 = vpop.f32.mrf.mxu1  ;;  %v6651_v18 = vmul.f32 0.5, %v208_v16 }
 0x121   :  { %5841 = vmatprep.subr.msk.mxu0 %vm462_vm1, %v6649_v17 }
 0x122   :  { %5843 = vmatprep.mubr.msk.f32.mxu0 %vm462_vm1, %v6651_v18  ;;  %5850 = vmatprep.mubr.msk.f32.mxu1 %vm462_vm1, %v6651_v18 }
 0x124   :  { %5842 = vmatpush3.xpose.msk.msra.mxu0 %vm462_vm1, %v6649_v17 }
 0x127   :  { %5844 = vmatmul.mubr.msk.f32.vlgmr.msra.gmra.mxu0 %vm462_vm1, %v6661_v19  ;;  %v6665_v20 = vpop.f32.mrf.mxu0 }
 0x128   :  { %v6667_v21 = vpop.f32.mrf.mxu1  ;;  %5857 = vmatprep.mubr.msk.f32.mxu0 %vm462_vm1, %v6651_v18  ;;  %5846 = vmatprep.subr.msk.mxu1 %vm462_vm1, %v6665_v20 }
 0x129   :  { %5853 = vmatprep.subr.msk.mxu0 %vm462_vm1, %v6667_v21  ;;  %v6675_v22 = vpop.f32.mrf.mxu0  ;;  %5847 = vmatpush3.xpose.msk.msra.mxu1 %vm462_vm1, %v6665_v20 }
 0x12a   :  { %5854 = vmatpush3.xpose.msk.msra.mxu0 %vm462_vm1, %v6667_v21  ;;  %v6681_v23 = vpop.f32.mrf.mxu1  ;;  %5848 = vmatprep.subr.msk.mxu1 %vm462_vm1, %v6675_v22 }
 0x12b   :  { %5855 = vmatprep.subr.msk.mxu0 %vm462_vm1, %v6681_v23 }
 0x12d   :  { %5849 = vmatpush3.xpose.msk.msra.mxu1 %vm462_vm1, %v6675_v22 }
 0x12e   :  { %5856 = vmatpush3.xpose.msk.msra.mxu0 %vm462_vm1, %v6681_v23 }
 0x130   :  { %5851 = vmatmul.mubr.msk.f32.vlgmr.msra.gmra.mxu1 %vm462_vm1, %v6661_v19 }
 0x131   :  { %5858 = vmatmul.mubr.msk.f32.vlgmr.msra.gmra.mxu0 %vm462_vm1, %v6661_v19 }
 0x1e7   :  { %v5845_v25 = vpop.f32.mrf.mxu0 }
 0x1e8   :  { %v6700_v27 = vadd.f32 %v5845_v25, %v6695_v24 }
 0x1e9   :  { %v541_v28 = vpop.f32.mrf.mxu0 }
 0x1ea   :  { %v6703_v29 = vadd.f32 %v541_v28, %v6697_v26  ;;  %v716_v30 = vsel %vm712_vm2, %v6700_v27, -inf }
 0x1eb   :  { %717 = vmax.xlane.f32.xlu1 %v716_v30 }
 0x1ec   :  { %v713_v31 = vsel %vm712_vm2, %v6703_v29, -inf }
 0x1ed   :  { %714 = vmax.xlane.f32.xlu0 %v713_v31 }
 0x1f0   :  { %v5852_v32 = vpop.f32.mrf.mxu1 }
 0x1f1   :  { %v5859_v33 = vpop.f32.mrf.mxu0  ;;  %v628_v34 = vadd.f32 %v5852_v32, %v6695_v24 }
 0x1f2   :  { %v622_v35 = vpop.f32.mrf.mxu1  ;;  %v6711_v37 = vadd.f32 %v5859_v33, %v6695_v24 }
 0x1f3   :  { %v703_v36 = vpop.f32.mrf.mxu0  ;;  %v623_v38 = vadd.f32 %v622_v35, %v6697_v26  ;;  %v722_v39 = vsel %vm712_vm2, %v628_v34, -inf }
 0x1f4   :  { %723 = vmax.xlane.f32.xlu1 %v722_v39  ;;  %v704_v40 = vadd.f32 %v703_v36, %v6697_v26  ;;  %v730_v42 = vsel %vm712_vm2, %v6711_v37, -inf }
 0x1f5   :  { %v719_v41 = vsel %vm712_vm2, %v623_v38, -inf }
 0x1f6   :  { %720 = vmax.xlane.f32.xlu0 %v719_v41  ;;  %v727_v43 = vsel %vm712_vm2, %v704_v40, -inf }
 0x1f8   :  { %731 = vmax.xlane.f32.xlu1 %v730_v42 }
 0x1fa   :  { %728 = vmax.xlane.f32.xlu0 %v727_v43 }
 0x209   :  { %775 = vrot.lane.b32.xlu1 %v6675_v22, %s6526_s4 }
 0x20d   :  { %864 = vrot.lane.b32.xlu1 %v6643_v15, %s6526_s4 }
 0x210   :  { %777 = vrot.lane.b32.xlu0 %v6665_v20, %s6526_s4 }
 0x211   :  { %862 = vrot.lane.b32.xlu1 %v6649_v17, %s6526_s4 }
 0x214   :  { %951 = vrot.lane.b32.xlu0 %v6667_v21, %s6526_s4 }
 0x215   :  { %949 = vrot.lane.b32.xlu1 %v6681_v23, %s6526_s4 }
 0x218   :  { %1050 = vrot.lane.b32.xlu0 %v6643_v15, %s6527_s7 }
 0x219   :  { %1048 = vrot.lane.b32.xlu1 %v6649_v17, %s6527_s7 }
 0x21c   :  { %1137 = vrot.lane.b32.xlu0 %v6665_v20, %s6527_s7 }
 0x21d   :  { %1044 = vrot.lane.b32.xlu1 %v6651_v18, %s6527_s7 }
 0x220   :  { %1220 = vrot.lane.b32.xlu0 %v6667_v21, %s6527_s7 }
 0x221   :  { %1046 = vrot.lane.b32.xlu1 %v6661_v19, %s6527_s7 }
 0x224   :  { %1135 = vrot.lane.b32.xlu0 %v6675_v22, %s6527_s7 }
 0x225   :  { %1218 = vrot.lane.b32.xlu1 %v6681_v23, %s6527_s7 }
 0x228   :  { %1365 = vrot.lane.b32.xlu0 %v6665_v20, %s6528_s17 }
 0x229   :  { %1363 = vrot.lane.b32.xlu1 %v6675_v22, %s6528_s17 }
 0x22d   :  { %1452 = vrot.lane.b32.xlu1 %v6643_v15, %s6528_s17 }
 0x231   :  { %1450 = vrot.lane.b32.xlu1 %v6649_v17, %s6528_s17 }
 0x274   :  { %v718_v44 = vpop.xlane.xlu1 %717 }
 0x276   :  { %v715_v45 = vpop.xlane.xlu0 %714 }
 0x27d   :  { %v724_v46 = vpop.xlane.xlu1 %723 }
 0x27e   :  { %v726_v48 = vmax.f32 %v718_v44, %v724_v46 }
 0x27f   :  { %v721_v47 = vpop.xlane.xlu0 %720 }
 0x280   :  { %v725_v50 = vmax.f32 %v715_v45, %v721_v47 }
 0x281   :  { %v732_v49 = vpop.xlane.xlu1 %731 }
 0x282   :  { %v734_v51 = vmax.f32 %v726_v48, %v732_v49 }
 0x283   :  { %v729_v52 = vpop.xlane.xlu0 %728 }
 0x284   :  { %v733_v53 = vmax.f32 %v725_v50, %v729_v52  ;;  %v742_v54 = vsub.f32 %v628_v34, %v734_v51  ;;  %v736_v59 = vsub.f32 %v6700_v27, %v734_v51  ;;  %v748_v3 = vsub.f32 %v6711_v37, %v734_v51 }
 0x285   :  { %v776_v55 = vpop.permute.xlu1 %775 }
 0x286   :  { %v735_v56 = vsub.f32 %v6703_v29, %v733_v53  ;;  %v741_v57 = vsub.f32 %v623_v38, %v733_v53  ;;  %v745_v60 = vmul.f32 1.442695, %v742_v54  ;;  %v747_v0 = vsub.f32 %v704_v40, %v733_v53 }
 0x287   :  { %v778_v58 = vpop.permute.xlu0 %777  ;;  %v739_v2 = vmul.f32 1.442695, %v736_v59  ;;  %v751_v7 = vmul.f32 1.442695, %v748_v3 }
 0x288   :  { %5860 = vmatprep.subr.mxu1 %v778_v58  ;;  %v743_v61 = vmul.f32 1.442695, %v741_v57  ;;  %v737_v63 = vmul.f32 1.442695, %v735_v56  ;;  %v749_v5 = vmul.f32 1.442695, %v747_v0 }
 0x289   :  { %v865_v62 = vpop.permute.xlu1 %864  ;;  %5861 = vmatpush3.msra.mxu1 %v778_v58 }
 0x28a   :  { %5862 = vmatprep.subr.mxu1 %v776_v55  ;;  %6217 = vpow2.f32 %v743_v61 }
 0x28b   :  { %5863 = vmatpush3.msra.mxu1 %v776_v55  ;;  %v952_v1 = vpop.permute.xlu0 %951  ;;  %6219 = vpow2.f32 %v745_v60 }
 0x28c   :  { %5867 = vmatprep.subr.mxu1 %v865_v62  ;;  %6221 = vpow2.f32 %v737_v63 }
 0x28d   :  { %v863_v4 = vpop.permute.xlu1 %862  ;;  %6223 = vpow2.f32 %v739_v2 }
 0x28e   :  { %6225 = vpow2.f32 %v749_v5 }
 0x28f   :  { %v1051_v6 = vpop.permute.xlu0 %1050  ;;  %6227 = vpow2.f32 %v751_v7 }
 0x291   :  { %v950_v8 = vpop.permute.xlu1 %949 }
 0x293   :  { %v1138_v9 = vpop.permute.xlu0 %1137 }
 0x294   :  { %5888 = vmatprep.subr.msk.mxu0 %vm462_vm1, %v1138_v9 }
 0x295   :  { %v1049_v10 = vpop.permute.xlu1 %1048  ;;  %5889 = vmatpush3.xpose.msk.msra.mxu0 %vm462_vm1, %v1138_v9 }
 0x297   :  { %v1221_v11 = vpop.permute.xlu0 %1220  ;;  %v6747_v12 = vpop.eup %6217 }
 0x298   :  { %v6749_v14 = vpop.eup %6219  ;;  %5864 = vmatprep.mubr.msk.f32.mxu1 %vm712_vm2, %v6747_v12 }
 0x299   :  { %v1045_v13 = vpop.permute.xlu1 %1044  ;;  %v6754_v16 = vpop.eup %6221  ;;  %5865 = vmatmul.mubr.msk.f32.vlgmr.msra.gmra.mxu1 %vm712_vm2, %v6749_v14 }
 0x29a   :  { %5892 = vmatprep.mubr.msk.f32.mxu0 %vm462_vm1, %v1045_v13  ;;  %5868 = vmatpush3.msra.mxu1 %v865_v62  ;;  %v6761_v28 = vpop.eup %6223 }
 0x29b   :  { %v1136_v25 = vpop.permute.xlu0 %1135  ;;  %5871 = vmatprep.mubr.msk.f32.mxu1 %vm712_vm2, %v6754_v16  ;;  %5869 = vmatprep.subr.mxu1 %v863_v4  ;;  %v6764_v29 = vpop.eup %6225 }
 0x29c   :  { %5890 = vmatprep.subr.msk.mxu0 %vm462_vm1, %v1136_v25  ;;  %5870 = vmatpush3.msra.mxu1 %v863_v4  ;;  %v6771_v32 = vpop.eup %6227 }
 0x29d   :  { %v1047_v27 = vpop.permute.xlu1 %1046  ;;  %5891 = vmatpush3.xpose.msk.msra.mxu0 %vm462_vm1, %v1136_v25  ;;  %5874 = vmatprep.subr.mxu1 %v952_v1 }
 0x29e   :  { %5872 = vmatmul.mubr.msk.f32.vlgmr.msra.gmra.mxu1 %vm712_vm2, %v6761_v28 }
 0x29f   :  { %v1366_v30 = vpop.permute.xlu0 %1365  ;;  %5875 = vmatpush3.msra.mxu1 %v952_v1  ;;  %5878 = vmatprep.mubr.msk.f32.mxu1 %vm712_vm2, %v6764_v29 }
 0x2a0   :  { %5876 = vmatprep.subr.mxu1 %v950_v8  ;;  %5893 = vmatmul.mubr.msk.f32.vlgmr.msra.gmra.mxu0 %vm462_vm1, %v1047_v27 }
 0x2a1   :  { %v1219_v31 = vpop.permute.xlu1 %1218  ;;  %5877 = vmatpush3.msra.mxu1 %v950_v8  ;;  %5902 = vmatprep.subr.mxu0 %v1366_v30 }
 0x2a2   :  { %5881 = vmatprep.subr.msk.mxu1 %vm462_vm1, %v1051_v6  ;;  %5879 = vmatmul.mubr.msk.f32.vlgmr.msra.gmra.mxu1 %vm712_vm2, %v6771_v32 }
 0x2a3   :  { %5882 = vmatpush3.xpose.msk.msra.mxu1 %vm462_vm1, %v1051_v6  ;;  %5903 = vmatpush3.msra.mxu0 %v1366_v30 }
 0x2a4   :  { %5883 = vmatprep.subr.msk.mxu1 %vm462_vm1, %v1049_v10  ;;  %5885 = vmatprep.mubr.msk.f32.mxu1 %vm462_vm1, %v1045_v13 }
 0x2a5   :  { %v1364_v33 = vpop.permute.xlu1 %1363 }
 0x2a6   :  { %5904 = vmatprep.subr.mxu0 %v1364_v33 }
 0x2a7   :  { %5905 = vmatpush3.msra.mxu0 %v1364_v33  ;;  %5884 = vmatpush3.xpose.msk.msra.mxu1 %vm462_vm1, %v1049_v10 }
 0x2a8   :  { %5895 = vmatprep.subr.msk.mxu1 %vm462_vm1, %v1221_v11 }
 0x2a9   :  { %v6781_v34 = vpop.permute.xlu1 %1452 }
 0x2aa   :  { %5909 = vmatprep.subr.mxu0 %v6781_v34  ;;  %5886 = vmatmul.mubr.msk.f32.vlgmr.msra.gmra.mxu1 %vm462_vm1, %v1047_v27 }
 0x2ab   :  { %5896 = vmatpush3.xpose.msk.msra.mxu1 %vm462_vm1, %v1221_v11  ;;  %5899 = vmatprep.mubr.msk.f32.mxu1 %vm462_vm1, %v1045_v13 }
 0x2ac   :  { %5897 = vmatprep.subr.msk.mxu1 %vm462_vm1, %v1219_v31 }
 0x2ad   :  { %v1451_v0 = vpop.permute.xlu1 %1450 }
 0x2af   :  { %5898 = vmatpush3.xpose.msk.msra.mxu1 %vm462_vm1, %v1219_v31 }
 0x2b2   :  { %5900 = vmatmul.mubr.msk.f32.vlgmr.msra.gmra.mxu1 %vm462_vm1, %v1047_v27 }
 0x359   :  { %v5866_v35 = vpop.f32.mrf.mxu1 }
 0x35b   :  { %v853_v36 = vpop.f32.mrf.mxu1 }
 0x35e   :  { %v5873_v37 = vpop.f32.mrf.mxu1 }
 0x35f   :  { %v946_v38 = vadd.f32 %v5873_v37, %v5866_v35 }
 0x360   :  { %v940_v39 = vpop.f32.mrf.mxu1  ;;  %v5894_v40 = vpop.f32.mrf.mxu0 }
 0x361   :  { %v941_v41 = vadd.f32 %v940_v39, %v853_v36  ;;  %v1215_v42 = vadd.f32 %v5894_v40, %v6695_v24 }
 0x362   :  { %v5880_v43 = vpop.f32.mrf.mxu1  ;;  %v1209_v44 = vpop.f32.mrf.mxu0 }
 0x363   :  { %v6791_v45 = vadd.f32 %v5880_v43, %v946_v38  ;;  %v1210_v46 = vadd.f32 %v1209_v44, %v6697_v26  ;;  %v1310_v47 = vsel %vm712_vm2, %v1215_v42, -inf }
 0x364   :  { %v1027_v48 = vpop.f32.mrf.mxu1  ;;  %1311 = vmax.xlane.f32.xlu0 %v1310_v47 }
 0x365   :  { %7532 = vst [vmem:[#allocation22_spill] sm:$0xff] %v6791_v45  ;;  %v6795_v49 = vadd.f32 %v1027_v48, %v941_v41  ;;  %v1307_v50 = vsel %vm712_vm2, %v1210_v46, -inf }
 0x366   :  { %1308 = vmax.xlane.f32.xlu1 %v1307_v50 }
 0x367   :  { %7533 = vst [vmem:[#allocation23_spill] sm:$0xff] %v6795_v49 }
 0x36a   :  { %v5887_v51 = vpop.f32.mrf.mxu1 }
 0x36b   :  { %v6799_v52 = vadd.f32 %v5887_v51, %v6695_v24 }
 0x36c   :  { %v1126_v53 = vpop.f32.mrf.mxu1 }
 0x36d   :  { %v1127_v54 = vadd.f32 %v1126_v53, %v6697_v26  ;;  %v1304_v55 = vsel %vm712_vm2, %v6799_v52, -inf }
 0x36e   :  { %1305 = vmax.xlane.f32.xlu0 %v1304_v55 }
 0x36f   :  { %v1301_v56 = vsel %vm712_vm2, %v1127_v54, -inf }
 0x372   :  { %v5901_v57 = vpop.f32.mrf.mxu1  ;;  %1302 = vmax.xlane.f32.xlu0 %v1301_v56 }
 0x373   :  { %v1298_v58 = vadd.f32 %v5901_v57, %v6695_v24 }
 0x374   :  { %v1292_v59 = vpop.f32.mrf.mxu1 }
 0x375   :  { %v1293_v60 = vadd.f32 %v1292_v59, %v6697_v26  ;;  %v1318_v61 = vsel %vm712_vm2, %v1298_v58, -inf }
 0x376   :  { %1319 = vmax.xlane.f32.xlu1 %v1318_v61 }
 0x377   :  { %v1315_v62 = vsel %vm712_vm2, %v1293_v60, -inf }
 0x378   :  { %1316 = vmax.xlane.f32.xlu0 %v1315_v62 }
 0x387   :  { %1539 = vrot.lane.b32.xlu1 %v6667_v21, %s6528_s17 }
 0x38b   :  { %1636 = vrot.lane.b32.xlu1 %v6649_v17, %s6529_s18 }
 0x38e   :  { %1638 = vrot.lane.b32.xlu0 %v6643_v15, %s6529_s18 }
 0x38f   :  { %1632 = vrot.lane.b32.xlu1 %v6651_v18, %s6529_s18 }
 0x392   :  { %1537 = vrot.lane.b32.xlu0 %v6681_v23, %s6528_s17 }
 0x393   :  { %1634 = vrot.lane.b32.xlu1 %v6661_v19, %s6529_s18 }
 0x396   :  { %1725 = vrot.lane.b32.xlu0 %v6665_v20, %s6529_s18 }
 0x397   :  { %1806 = vrot.lane.b32.xlu1 %v6681_v23, %s6529_s18 }
 0x39a   :  { %1808 = vrot.lane.b32.xlu0 %v6667_v21, %s6529_s18 }
 0x39b   :  { %1951 = vrot.lane.b32.xlu1 %v6675_v22, %s6530_s19 }
 0x39e   :  { %1723 = vrot.lane.b32.xlu0 %v6675_v22, %s6529_s18 }
 0x39f   :  { %2040 = vrot.lane.b32.xlu1 %v6643_v15, %s6530_s19 }
 0x3a2   :  { %1953 = vrot.lane.b32.xlu0 %v6665_v20, %s6530_s19 }
 0x3a3   :  { %2038 = vrot.lane.b32.xlu1 %v6649_v17, %s6530_s19 }
 0x3ed   :  { %v1312_v63 = vpop.xlane.xlu0 %1311 }
 0x3ef   :  { %v1309_v2 = vpop.xlane.xlu1 %1308 }
 0x3f7   :  { %v1306_v1 = vpop.xlane.xlu0 %1305 }
 0x3f8   :  { %v1314_v4 = vmax.f32 %v1306_v1, %v1312_v63 }
 0x3fb   :  { %v1303_v3 = vpop.xlane.xlu0 %1302 }
 0x3fc   :  { %v1313_v6 = vmax.f32 %v1303_v3, %v1309_v2 }
 0x3ff   :  { %v1320_v5 = vpop.xlane.xlu1 %1319 }
 0x400   :  { %v1322_v7 = vmax.f32 %v1314_v4, %v1320_v5 }
 0x401   :  { %v1317_v8 = vpop.xlane.xlu0 %1316 }
 0x402   :  { %v1330_v9 = vsub.f32 %v1215_v42, %v1322_v7  ;;  %v1321_v10 = vmax.f32 %v1313_v6, %v1317_v8  ;;  %v1336_v13 = vsub.f32 %v1298_v58, %v1322_v7  ;;  %v1324_v38 = vsub.f32 %v6799_v52, %v1322_v7 }
 0x403   :  { %v1540_v11 = vpop.permute.xlu1 %1539 }
 0x404   :  { %5916 = vmatprep.subr.mxu1 %v1540_v11  ;;  %v1333_v25 = vmul.f32 1.442695, %v1330_v9  ;;  %v1329_v27 = vsub.f32 %v1210_v46, %v1321_v10  ;;  %v1335_v30 = vsub.f32 %v1293_v60, %v1321_v10  ;;  %v1323_v33 = vsub.f32 %v1127_v54, %v1321_v10 }
 0x405   :  { %5917 = vmatpush3.msra.mxu1 %v1540_v11  ;;  %v1639_v31 = vpop.permute.xlu0 %1638  ;;  %v1339_v39 = vmul.f32 1.442695, %v1336_v13  ;;  %v1327_v42 = vmul.f32 1.442695, %v1324_v38 }
 0x406   :  { %v1331_v35 = vmul.f32 1.442695, %v1329_v27  ;;  %v1337_v36 = vmul.f32 1.442695, %v1335_v30  ;;  %6229 = vpow2.f32 %v1333_v25  ;;  %v1325_v41 = vmul.f32 1.442695, %v1323_v33 }
 0x407   :  { %v1637_v37 = vpop.permute.xlu1 %1636 }
 0x408   :  { %6231 = vpow2.f32 %v1331_v35 }
 0x409   :  { %v1538_v40 = vpop.permute.xlu0 %1537  ;;  %6233 = vpow2.f32 %v1337_v36 }
 0x40a   :  { %5918 = vmatprep.subr.mxu1 %v1538_v40  ;;  %6235 = vpow2.f32 %v1339_v39 }
 0x40b   :  { %5919 = vmatpush3.msra.mxu1 %v1538_v40  ;;  %v1633_v43 = vpop.permute.xlu1 %1632  ;;  %6237 = vpow2.f32 %v1325_v41 }
 0x40c   :  { %6239 = vpow2.f32 %v1327_v42 }
 0x40d   :  { %v1726_v44 = vpop.permute.xlu0 %1725 }
 0x40e   :  { %5930 = vmatprep.subr.msk.mxu1 %vm462_vm1, %v1726_v44 }
 0x40f   :  { %v1635_v46 = vpop.permute.xlu1 %1634 }
 0x411   :  { %v1809_v47 = vpop.permute.xlu0 %1808 }
 0x413   :  { %v6831_v48 = vpop.eup %6229  ;;  %v1807_v53 = vpop.permute.xlu1 %1806 }
 0x415   :  { %v6833_v50 = vpop.eup %6231  ;;  %v1724_v54 = vpop.permute.xlu0 %1723 }
 0x416   :  { %v6835_v51 = vpop.eup %6233  ;;  %5906 = vmatprep.mubr.msk.f32.mxu0 %vm712_vm2, %v6833_v50 }
 0x417   :  { %7534 = vst [vmem:[#allocation24_spill] sm:$0xff] %v6835_v51  ;;  %v6839_v52 = vpop.eup %6235  ;;  %5920 = vmatprep.mubr.msk.f32.mxu1 %vm712_vm2, %v6835_v51  ;;  %5907 = vmatmul.mubr.msk.f32.vlgmr.msra.gmra.mxu0 %vm712_vm2, %v6831_v48 }
 0x418   :  { %7535 = vst [vmem:[#allocation25_spill] sm:$0xff] %v6839_v52  ;;  %5910 = vmatpush3.msra.mxu0 %v6781_v34  ;;  %5921 = vmatmul.mubr.msk.f32.vlgmr.msra.gmra.mxu1 %vm712_vm2, %v6839_v52  ;;  %v6848_v55 = vpop.eup %6237  ;;  %v1952_v34 = vpop.permute.xlu1 %1951 }
 0x419   :  { %5931 = vmatpush3.xpose.msk.msra.mxu1 %vm462_vm1, %v1726_v44  ;;  %5911 = vmatprep.subr.mxu0 %v1451_v0  ;;  %v6854_v56 = vpop.eup %6239  ;;  %v1954_v57 = vpop.permute.xlu0 %1953 }
 0x41a   :  { %5913 = vmatprep.mubr.msk.f32.mxu0 %vm712_vm2, %v6848_v55  ;;  %5932 = vmatprep.subr.msk.mxu1 %vm462_vm1, %v1724_v54 }
 0x41b   :  { %5934 = vmatprep.mubr.msk.f32.mxu1 %vm462_vm1, %v1633_v43  ;;  %5912 = vmatpush3.msra.mxu0 %v1451_v0 }
 0x41c   :  { %5923 = vmatprep.subr.msk.mxu0 %vm462_vm1, %v1639_v31  ;;  %5914 = vmatmul.mubr.msk.f32.vlgmr.msra.gmra.mxu0 %vm712_vm2, %v6854_v56  ;;  %v6867_v58 = vpop.permute.xlu1 %2040 }
 0x41d   :  { %5924 = vmatpush3.xpose.msk.msra.mxu0 %vm462_vm1, %v1639_v31  ;;  %5933 = vmatpush3.xpose.msk.msra.mxu1 %vm462_vm1, %v1724_v54 }
 0x41e   :  { %5925 = vmatprep.subr.msk.mxu0 %vm462_vm1, %v1637_v37  ;;  %5927 = vmatprep.mubr.msk.f32.mxu0 %vm462_vm1, %v1633_v43 }
 0x41f   :  { %5944 = vmatprep.subr.mxu1 %v1954_v57 }
 0x420   :  { %5935 = vmatmul.mubr.msk.f32.vlgmr.msra.gmra.mxu1 %vm462_vm1, %v1635_v46  ;;  %v2039_v41 = vpop.permute.xlu1 %2038 }
 0x421   :  { %5926 = vmatpush3.xpose.msk.msra.mxu0 %vm462_vm1, %v1637_v37  ;;  %5945 = vmatpush3.msra.mxu1 %v1954_v57 }
 0x422   :  { %5937 = vmatprep.subr.msk.mxu0 %vm462_vm1, %v1809_v47  ;;  %5946 = vmatprep.subr.mxu1 %v1952_v34 }
 0x423   :  { %5947 = vmatpush3.msra.mxu1 %v1952_v34 }
 0x424   :  { %5928 = vmatmul.mubr.msk.f32.vlgmr.msra.gmra.mxu0 %vm462_vm1, %v1635_v46  ;;  %5951 = vmatprep.subr.mxu1 %v6867_v58 }
 0x425   :  { %5938 = vmatpush3.xpose.msk.msra.mxu0 %vm462_vm1, %v1809_v47  ;;  %5941 = vmatprep.mubr.msk.f32.mxu0 %vm462_vm1, %v1633_v43 }
 0x426   :  { %5939 = vmatprep.subr.msk.mxu0 %vm462_vm1, %v1807_v53 }
 0x429   :  { %5940 = vmatpush3.xpose.msk.msra.mxu0 %vm462_vm1, %v1807_v53 }
 0x42c   :  { %5942 = vmatmul.mubr.msk.f32.vlgmr.msra.gmra.mxu0 %vm462_vm1, %v1635_v46 }
 0x4d7   :  { %v5908_v59 = vpop.f32.mrf.mxu0 }
 0x4d8   :  { %v5922_v61 = vpop.f32.mrf.mxu1 }
 0x4d9   :  { %v1441_v60 = vpop.f32.mrf.mxu0 }
 0x4da   :  { %v1615_v0 = vpop.f32.mrf.mxu1 }
 0x4dc   :  { %v5915_v62 = vpop.f32.mrf.mxu0 }
 0x4dd   :  { %v1534_v63 = vadd.f32 %v5915_v62, %v5908_v59 }
 0x4de   :  { %v1528_v1 = vpop.f32.mrf.mxu0 }
 0x4df   :  { %v6876_v2 = vadd.f32 %v5922_v61, %v1534_v63  ;;  %v1529_v3 = vadd.f32 %v1528_v1, %v1441_v60 }
 0x4e0   :  { %v5936_v4 = vpop.f32.mrf.mxu1 }
 0x4e1   :  { %7536 = vst [vmem:[#allocation26_spill] sm:$0xff] %v6876_v2  ;;  %v6878_v5 = vadd.f32 %v1615_v0, %v1529_v3  ;;  %v1803_v6 = vadd.f32 %v5936_v4, %v6695_v24 }
 0x4e2   :  { %v1797_v7 = vpop.f32.mrf.mxu1 }
 0x4e3   :  { %7537 = vst [vmem:[#allocation27_spill] sm:$0xff] %v6878_v5  ;;  %v1798_v8 = vadd.f32 %v1797_v7, %v6697_v26  ;;  %v1898_v9 = vsel %vm712_vm2, %v1803_v6, -inf }
 0x4e4   :  { %v5929_v10 = vpop.f32.mrf.mxu0  ;;  %1899 = vmax.xlane.f32.xlu0 %v1898_v9 }
 0x4e5   :  { %v6884_v11 = vadd.f32 %v5929_v10, %v6695_v24  ;;  %v1895_v13 = vsel %vm712_vm2, %v1798_v8, -inf }
 0x4e6   :  { %v1714_v25 = vpop.f32.mrf.mxu0  ;;  %1896 = vmax.xlane.f32.xlu1 %v1895_v13 }
 0x4e7   :  { %v1715_v27 = vadd.f32 %v1714_v25, %v6697_v26  ;;  %v1892_v30 = vsel %vm712_vm2, %v6884_v11, -inf }
 0x4e8   :  { %1893 = vmax.xlane.f32.xlu0 %v1892_v30 }
 0x4e9   :  { %v1889_v31 = vsel %vm712_vm2, %v1715_v27, -inf }
 0x4ec   :  { %v5943_v33 = vpop.f32.mrf.mxu0  ;;  %1890 = vmax.xlane.f32.xlu0 %v1889_v31 }
 0x4ed   :  { %v1886_v35 = vadd.f32 %v5943_v33, %v6695_v24 }
 0x4ee   :  { %v1880_v36 = vpop.f32.mrf.mxu0 }
 0x4ef   :  { %v1881_v37 = vadd.f32 %v1880_v36, %v6697_v26  ;;  %v1906_v38 = vsel %vm712_vm2, %v1886_v35, -inf }
 0x4f0   :  { %1907 = vmax.xlane.f32.xlu1 %v1906_v38 }
 0x4f1   :  { %v1903_v39 = vsel %vm712_vm2, %v1881_v37, -inf }
 0x4f2   :  { %1904 = vmax.xlane.f32.xlu0 %v1903_v39 }
 0x501   :  { %2127 = vrot.lane.b32.xlu1 %v6667_v21, %s6530_s19 }
 0x505   :  { %2224 = vrot.lane.b32.xlu1 %v6649_v17, %s6531_s20 }
 0x508   :  { %2226 = vrot.lane.b32.xlu0 %v6643_v15, %s6531_s20 }
 0x509   :  { %2220 = vrot.lane.b32.xlu1 %v6651_v18, %s6531_s20 }
 0x50c   :  { %2125 = vrot.lane.b32.xlu0 %v6681_v23, %s6530_s19 }
 0x50d   :  { %2222 = vrot.lane.b32.xlu1 %v6661_v19, %s6531_s20 }
 0x510   :  { %2313 = vrot.lane.b32.xlu0 %v6665_v20, %s6531_s20 }
 0x511   :  { %2394 = vrot.lane.b32.xlu1 %v6681_v23, %s6531_s20 }
 0x514   :  { %2396 = vrot.lane.b32.xlu0 %v6667_v21, %s6531_s20 }
 0x515   :  { %2539 = vrot.lane.b32.xlu1 %v6675_v22, %s6532_s1 }
 0x518   :  { %2311 = vrot.lane.b32.xlu0 %v6675_v22, %s6531_s20 }
 0x519   :  { %2628 = vrot.lane.b32.xlu1 %v6643_v15, %s6532_s1 }
 0x51c   :  { %2541 = vrot.lane.b32.xlu0 %v6665_v20, %s6532_s1 }
 0x51d   :  { %2626 = vrot.lane.b32.xlu1 %v6649_v17, %s6532_s1 }
 0x56d   :  { %v1900_v40 = vpop.xlane.xlu0 %1899 }
 0x56f   :  { %v1897_v43 = vpop.xlane.xlu1 %1896 }
 0x571   :  { %v1894_v42 = vpop.xlane.xlu0 %1893 }
 0x572   :  { %v1902_v46 = vmax.f32 %v1894_v42, %v1900_v40 }
 0x575   :  { %v1891_v44 = vpop.xlane.xlu0 %1890 }
 0x576   :  { %v1901_v53 = vmax.f32 %v1891_v44, %v1897_v43 }
 0x579   :  { %v1908_v47 = vpop.xlane.xlu1 %1907 }
 0x57a   :  { %v1910_v54 = vmax.f32 %v1902_v46, %v1908_v47 }
 0x57b   :  { %v1905_v34 = vpop.xlane.xlu0 %1904 }
 0x57c   :  { %v1918_v57 = vsub.f32 %v1803_v6, %v1910_v54  ;;  %v1909_v59 = vmax.f32 %v1901_v53, %v1905_v34  ;;  %v1924_v61 = vsub.f32 %v1886_v35, %v1910_v54  ;;  %v1912_v10 = vsub.f32 %v6884_v11, %v1910_v54 }
 0x57d   :  { %v2128_v60 = vpop.permute.xlu1 %2127 }
 0x57e   :  { %5958 = vmatprep.subr.mxu0 %v2128_v60  ;;  %v1921_v62 = vmul.f32 1.442695, %v1918_v57  ;;  %v1917_v63 = vsub.f32 %v1798_v8, %v1909_v59  ;;  %v1923_v0 = vsub.f32 %v1881_v37, %v1909_v59  ;;  %v1911_v3 = vsub.f32 %v1715_v27, %v1909_v59 }
 0x57f   :  { %5959 = vmatpush3.msra.mxu0 %v2128_v60  ;;  %v2227_v1 = vpop.permute.xlu0 %2226  ;;  %v1927_v13 = vmul.f32 1.442695, %v1924_v61  ;;  %v1915_v6 = vmul.f32 1.442695, %v1912_v10 }
 0x580   :  { %v1919_v4 = vmul.f32 1.442695, %v1917_v63  ;;  %v1925_v7 = vmul.f32 1.442695, %v1923_v0  ;;  %6241 = vpow2.f32 %v1921_v62  ;;  %v1913_v30 = vmul.f32 1.442695, %v1911_v3 }
 0x581   :  { %v2225_v9 = vpop.permute.xlu1 %2224 }
 0x582   :  { %6243 = vpow2.f32 %v1919_v4 }
 0x583   :  { %v2126_v25 = vpop.permute.xlu0 %2125  ;;  %6245 = vpow2.f32 %v1925_v7 }
 0x584   :  { %5960 = vmatprep.subr.mxu0 %v2126_v25  ;;  %6247 = vpow2.f32 %v1927_v13 }
 0x585   :  { %5961 = vmatpush3.msra.mxu0 %v2126_v25  ;;  %v2221_v8 = vpop.permute.xlu1 %2220  ;;  %6249 = vpow2.f32 %v1913_v30 }
 0x586   :  { %6251 = vpow2.f32 %v1915_v6 }
 0x587   :  { %v2314_v31 = vpop.permute.xlu0 %2313 }
 0x588   :  { %5972 = vmatprep.subr.msk.mxu0 %vm462_vm1, %v2314_v31 }
 0x589   :  { %v2223_v27 = vpop.permute.xlu1 %2222 }
 0x58b   :  { %v2397_v33 = vpop.permute.xlu0 %2396 }
 0x58d   :  { %v6917_v35 = vpop.eup %6241  ;;  %v2395_v38 = vpop.permute.xlu1 %2394 }
 0x58f   :  { %v6919_v11 = vpop.eup %6243  ;;  %v2312_v39 = vpop.permute.xlu0 %2311 }
 0x590   :  { %v6921_v36 = vpop.eup %6245  ;;  %5948 = vmatprep.mubr.msk.f32.mxu1 %vm712_vm2, %v6919_v11 }
 0x591   :  { %7538 = vst [vmem:[#allocation28_spill] sm:$0xff] %v6921_v36  ;;  %v6925_v37 = vpop.eup %6247  ;;  %5962 = vmatprep.mubr.msk.f32.mxu0 %vm712_vm2, %v6921_v36  ;;  %5949 = vmatmul.mubr.msk.f32.vlgmr.msra.gmra.mxu1 %vm712_vm2, %v6917_v35 }
 0x592   :  { %7539 = vst [vmem:[#allocation29_spill] sm:$0xff] %v6925_v37  ;;  %5952 = vmatpush3.msra.mxu1 %v6867_v58  ;;  %5963 = vmatmul.mubr.msk.f32.vlgmr.msra.gmra.mxu0 %vm712_vm2, %v6925_v37  ;;  %v6934_v40 = vpop.eup %6249  ;;  %v2540_v58 = vpop.permute.xlu1 %2539 }
 0x593   :  { %5973 = vmatpush3.xpose.msk.msra.mxu0 %vm462_vm1, %v2314_v31  ;;  %5953 = vmatprep.subr.mxu1 %v2039_v41  ;;  %v6940_v42 = vpop.eup %6251  ;;  %v2542_v43 = vpop.permute.xlu0 %2541 }
 0x594   :  { %5955 = vmatprep.mubr.msk.f32.mxu1 %vm712_vm2, %v6934_v40  ;;  %5974 = vmatprep.subr.msk.mxu0 %vm462_vm1, %v2312_v39 }
 0x595   :  { %5976 = vmatprep.mubr.msk.f32.mxu0 %vm462_vm1, %v2221_v8  ;;  %5954 = vmatpush3.msra.mxu1 %v2039_v41 }
 0x596   :  { %5965 = vmatprep.subr.msk.mxu1 %vm462_vm1, %v2227_v1  ;;  %5956 = vmatmul.mubr.msk.f32.vlgmr.msra.gmra.mxu1 %vm712_vm2, %v6940_v42  ;;  %v6953_v41 = vpop.permute.xlu1 %2628 }
 0x597   :  { %5966 = vmatpush3.xpose.msk.msra.mxu1 %vm462_vm1, %v2227_v1  ;;  %5975 = vmatpush3.xpose.msk.msra.mxu0 %vm462_vm1, %v2312_v39 }
 0x598   :  { %5967 = vmatprep.subr.msk.mxu1 %vm462_vm1, %v2225_v9  ;;  %5969 = vmatprep.mubr.msk.f32.mxu1 %vm462_vm1, %v2221_v8 }
 0x599   :  { %5986 = vmatprep.subr.mxu0 %v2542_v43 }
 0x59a   :  { %5977 = vmatmul.mubr.msk.f32.vlgmr.msra.gmra.mxu0 %vm462_vm1, %v2223_v27 }
 0x59b   :  { %5968 = vmatpush3.xpose.msk.msra.mxu1 %vm462_vm1, %v2225_v9  ;;  %5987 = vmatpush3.msra.mxu0 %v2542_v43 }
 0x59c   :  { %5979 = vmatprep.subr.msk.mxu1 %vm462_vm1, %v2397_v33  ;;  %5988 = vmatprep.subr.mxu0 %v2540_v58 }
 0x59d   :  { %5989 = vmatpush3.msra.mxu0 %v2540_v58 }
 0x59e   :  { %5970 = vmatmul.mubr.msk.f32.vlgmr.msra.gmra.mxu1 %vm462_vm1, %v2223_v27  ;;  %5993 = vmatprep.subr.mxu0 %v6953_v41 }
 0x59f   :  { %5980 = vmatpush3.xpose.msk.msra.mxu1 %vm462_vm1, %v2397_v33  ;;  %5983 = vmatprep.mubr.msk.f32.mxu1 %vm462_vm1, %v2221_v8 }
 0x5a0   :  { %5981 = vmatprep.subr.msk.mxu1 %vm462_vm1, %v2395_v38 }
 0x5a3   :  { %5982 = vmatpush3.xpose.msk.msra.mxu1 %vm462_vm1, %v2395_v38 }
 0x5a6   :  { %5984 = vmatmul.mubr.msk.f32.vlgmr.msra.gmra.mxu1 %vm462_vm1, %v2223_v27 }
 0x651   :  { %v5950_v44 = vpop.f32.mrf.mxu1 }
 0x652   :  { %v5964_v47 = vpop.f32.mrf.mxu0 }
 0x653   :  { %v2029_v46 = vpop.f32.mrf.mxu1 }
 0x654   :  { %v2203_v34 = vpop.f32.mrf.mxu0 }
 0x656   :  { %v5957_v53 = vpop.f32.mrf.mxu1 }
 0x657   :  { %v2122_v54 = vadd.f32 %v5957_v53, %v5950_v44 }
 0x658   :  { %v2116_v57 = vpop.f32.mrf.mxu1 }
 0x659   :  { %v6962_v59 = vadd.f32 %v5964_v47, %v2122_v54  ;;  %v2117_v60 = vadd.f32 %v2116_v57, %v2029_v46 }
 0x65a   :  { %v5978_v61 = vpop.f32.mrf.mxu0 }
 0x65b   :  { %7540 = vst [vmem:[#allocation30_spill] sm:$0xff] %v6962_v59  ;;  %v6964_v62 = vadd.f32 %v2203_v34, %v2117_v60  ;;  %v2391_v63 = vadd.f32 %v5978_v61, %v6695_v24 }
 0x65c   :  { %v2385_v0 = vpop.f32.mrf.mxu0 }
 0x65d   :  { %7541 = vst [vmem:[#allocation31_spill] sm:$0xff] %v6964_v62  ;;  %v2386_v1 = vadd.f32 %v2385_v0, %v6697_v26  ;;  %v2486_v3 = vsel %vm712_vm2, %v2391_v63, -inf }
 0x65e   :  { %v5971_v4 = vpop.f32.mrf.mxu1  ;;  %2487 = vmax.xlane.f32.xlu0 %v2486_v3 }
 0x65f   :  { %v6970_v7 = vadd.f32 %v5971_v4, %v6695_v24  ;;  %v2483_v9 = vsel %vm712_vm2, %v2386_v1, -inf }
 0x660   :  { %v2302_v10 = vpop.f32.mrf.mxu1  ;;  %2484 = vmax.xlane.f32.xlu1 %v2483_v9 }
 0x661   :  { %v2303_v13 = vadd.f32 %v2302_v10, %v6697_v26  ;;  %v2480_v25 = vsel %vm712_vm2, %v6970_v7, -inf }
 0x662   :  { %2481 = vmax.xlane.f32.xlu0 %v2480_v25 }
 0x663   :  { %v2477_v30 = vsel %vm712_vm2, %v2303_v13, -inf }
 0x666   :  { %v5985_v6 = vpop.f32.mrf.mxu1  ;;  %2478 = vmax.xlane.f32.xlu0 %v2477_v30 }
 0x667   :  { %v2474_v8 = vadd.f32 %v5985_v6, %v6695_v24 }
 0x668   :  { %v2468_v31 = vpop.f32.mrf.mxu1 }
 0x669   :  { %v2469_v27 = vadd.f32 %v2468_v31, %v6697_v26  ;;  %v2494_v33 = vsel %vm712_vm2, %v2474_v8, -inf  ;;  %v2627_v26 = vpop.permute.xlu1 %2626 }
 0x66a   :  { %2495 = vmax.xlane.f32.xlu1 %v2494_v33 }
 0x66b   :  { %v2491_v38 = vsel %vm712_vm2, %v2469_v27, -inf }
 0x66c   :  { %2492 = vmax.xlane.f32.xlu0 %v2491_v38 }
 0x67b   :  { %2715 = vrot.lane.b32.xlu1 %v6667_v21, %s6532_s1 }
 0x67f   :  { %2812 = vrot.lane.b32.xlu1 %v6649_v17, %s6533_s21 }
 0x682   :  { %2814 = vrot.lane.b32.xlu0 %v6643_v15, %s6533_s21 }
 0x683   :  { %2808 = vrot.lane.b32.xlu1 %v6651_v18, %s6533_s21 }
 0x686   :  { %2713 = vrot.lane.b32.xlu0 %v6681_v23, %s6532_s1 }
 0x687   :  { %2810 = vrot.lane.b32.xlu1 %v6661_v19, %s6533_s21 }
 0x68a   :  { %2901 = vrot.lane.b32.xlu0 %v6665_v20, %s6533_s21 }
 0x68b   :  { %2982 = vrot.lane.b32.xlu1 %v6681_v23, %s6533_s21 }
 0x68e   :  { %2984 = vrot.lane.b32.xlu0 %v6667_v21, %s6533_s21 }
 0x68f   :  { %3127 = vrot.lane.b32.xlu1 %v6675_v22, %s6534_s22 }
 0x692   :  { %2899 = vrot.lane.b32.xlu0 %v6675_v22, %s6533_s21 }
 0x693   :  { %3216 = vrot.lane.b32.xlu1 %v6643_v15, %s6534_s22 }
 0x696   :  { %3129 = vrot.lane.b32.xlu0 %v6665_v20, %s6534_s22 }
 0x697   :  { %3214 = vrot.lane.b32.xlu1 %v6649_v17, %s6534_s22 }
 0x6e7   :  { %v2488_v24 = vpop.xlane.xlu0 %2487 }
 0x6e9   :  { %v2485_v58 = vpop.xlane.xlu1 %2484 }
 0x6eb   :  { %v2482_v39 = vpop.xlane.xlu0 %2481 }
 0x6ec   :  { %v2490_v44 = vmax.f32 %v2482_v39, %v2488_v24 }
 0x6ef   :  { %v2479_v43 = vpop.xlane.xlu0 %2478 }
 0x6f0   :  { %v2489_v47 = vmax.f32 %v2479_v43, %v2485_v58 }
 0x6f3   :  { %v2496_v46 = vpop.xlane.xlu1 %2495 }
 0x6f4   :  { %v2498_v53 = vmax.f32 %v2490_v44, %v2496_v46 }
 0x6f5   :  { %v2493_v54 = vpop.xlane.xlu0 %2492 }
 0x6f6   :  { %v2506_v34 = vsub.f32 %v2391_v63, %v2498_v53  ;;  %v2497_v57 = vmax.f32 %v2489_v47, %v2493_v54  ;;  %v2512_v61 = vsub.f32 %v2474_v8, %v2498_v53  ;;  %v2500_v31 = vsub.f32 %v6970_v7, %v2498_v53 }
 0x6f7   :  { %v2716_v60 = vpop.permute.xlu1 %2715 }
 0x6f8   :  { %6000 = vmatprep.subr.mxu1 %v2716_v60  ;;  %v2509_v0 = vmul.f32 1.442695, %v2506_v34  ;;  %v2505_v3 = vsub.f32 %v2386_v1, %v2497_v57  ;;  %v2511_v4 = vsub.f32 %v2469_v27, %v2497_v57  ;;  %v2499_v10 = vsub.f32 %v2303_v13, %v2497_v57 }
 0x6f9   :  { %6001 = vmatpush3.msra.mxu1 %v2716_v60  ;;  %v2815_v9 = vpop.permute.xlu0 %2814  ;;  %v2515_v33 = vmul.f32 1.442695, %v2512_v61  ;;  %v2503_v63 = vmul.f32 1.442695, %v2500_v31 }
 0x6fa   :  { %v2507_v25 = vmul.f32 1.442695, %v2505_v3  ;;  %v2513_v30 = vmul.f32 1.442695, %v2511_v4  ;;  %6253 = vpow2.f32 %v2509_v0  ;;  %v2501_v24 = vmul.f32 1.442695, %v2499_v10 }
 0x6fb   :  { %v2813_v6 = vpop.permute.xlu1 %2812 }
 0x6fc   :  { %6255 = vpow2.f32 %v2507_v25 }
 0x6fd   :  { %v2714_v38 = vpop.permute.xlu0 %2713  ;;  %6257 = vpow2.f32 %v2513_v30 }
 0x6fe   :  { %6002 = vmatprep.subr.mxu1 %v2714_v38  ;;  %6259 = vpow2.f32 %v2515_v33 }
 0x6ff   :  { %6003 = vmatpush3.msra.mxu1 %v2714_v38  ;;  %v2809_v1 = vpop.permute.xlu1 %2808  ;;  %6261 = vpow2.f32 %v2501_v24  ;;  %v7055_v38 = vld [vmem:[#allocation15] sm:$0xff] }
 0x700   :  { %6263 = vpow2.f32 %v2503_v63 }
 0x701   :  { %v2902_v8 = vpop.permute.xlu0 %2901 }
 0x702   :  { %6014 = vmatprep.subr.msk.mxu1 %vm462_vm1, %v2902_v8 }
 0x703   :  { %v2811_v13 = vpop.permute.xlu1 %2810 }
 0x705   :  { %v2985_v27 = vpop.permute.xlu0 %2984 }
 0x707   :  { %v7003_v39 = vpop.eup %6253  ;;  %v2983_v44 = vpop.permute.xlu1 %2982 }
 0x709   :  { %v7005_v7 = vpop.eup %6255  ;;  %v2900_v46 = vpop.permute.xlu0 %2899 }
 0x70a   :  { %v7007_v58 = vpop.eup %6257  ;;  %5990 = vmatprep.mubr.msk.f32.mxu0 %vm712_vm2, %v7005_v7 }
 0x70b   :  { %7542 = vst [vmem:[#allocation32_spill] sm:$0xff] %v7007_v58  ;;  %v7011_v43 = vpop.eup %6259  ;;  %6004 = vmatprep.mubr.msk.f32.mxu1 %vm712_vm2, %v7007_v58  ;;  %5991 = vmatmul.mubr.msk.f32.vlgmr.msra.gmra.mxu0 %vm712_vm2, %v7003_v39 }
 0x70c   :  { %7543 = vst [vmem:[#allocation33_spill] sm:$0xff] %v7011_v43  ;;  %5994 = vmatpush3.msra.mxu0 %v6953_v41  ;;  %6005 = vmatmul.mubr.msk.f32.vlgmr.msra.gmra.mxu1 %vm712_vm2, %v7011_v43  ;;  %v7020_v47 = vpop.eup %6261  ;;  %v3128_v41 = vpop.permute.xlu1 %3127 }
 0x70d   :  { %6015 = vmatpush3.xpose.msk.msra.mxu1 %vm462_vm1, %v2902_v8  ;;  %5995 = vmatprep.subr.mxu0 %v2627_v26  ;;  %v7026_v53 = vpop.eup %6263  ;;  %v3130_v54 = vpop.permute.xlu0 %3129 }
 0x70e   :  { %5997 = vmatprep.mubr.msk.f32.mxu0 %vm712_vm2, %v7020_v47  ;;  %6016 = vmatprep.subr.msk.mxu1 %vm462_vm1, %v2900_v46 }
 0x70f   :  { %6018 = vmatprep.mubr.msk.f32.mxu1 %vm462_vm1, %v2809_v1  ;;  %5996 = vmatpush3.msra.mxu0 %v2627_v26 }
 0x710   :  { %6007 = vmatprep.subr.msk.mxu0 %vm462_vm1, %v2815_v9  ;;  %5998 = vmatmul.mubr.msk.f32.vlgmr.msra.gmra.mxu0 %vm712_vm2, %v7026_v53  ;;  %v7039_v26 = vpop.permute.xlu1 %3216 }
 0x711   :  { %6008 = vmatpush3.xpose.msk.msra.mxu0 %vm462_vm1, %v2815_v9  ;;  %6017 = vmatpush3.xpose.msk.msra.mxu1 %vm462_vm1, %v2900_v46 }
 0x712   :  { %6009 = vmatprep.subr.msk.mxu0 %vm462_vm1, %v2813_v6  ;;  %6011 = vmatprep.mubr.msk.f32.mxu0 %vm462_vm1, %v2809_v1 }
 0x713   :  { %6028 = vmatprep.subr.mxu1 %v3130_v54 }
 0x714   :  { %6019 = vmatmul.mubr.msk.f32.vlgmr.msra.gmra.mxu1 %vm462_vm1, %v2811_v13 }
 0x715   :  { %6010 = vmatpush3.xpose.msk.msra.mxu0 %vm462_vm1, %v2813_v6  ;;  %6029 = vmatpush3.msra.mxu1 %v3130_v54  ;;  %v7052_v6 = vld [vmem:[#allocation15 + $0x8] sm:$0xff] }
 0x716   :  { %6021 = vmatprep.subr.msk.mxu0 %vm462_vm1, %v2985_v27  ;;  %6030 = vmatprep.subr.mxu1 %v3128_v41 }
 0x717   :  { %6031 = vmatpush3.msra.mxu1 %v3128_v41 }
 0x718   :  { %6012 = vmatmul.mubr.msk.f32.vlgmr.msra.gmra.mxu0 %vm462_vm1, %v2811_v13  ;;  %6035 = vmatprep.subr.mxu1 %v7039_v26 }
 0x719   :  { %6022 = vmatpush3.xpose.msk.msra.mxu0 %vm462_vm1, %v2985_v27  ;;  %6025 = vmatprep.mubr.msk.f32.mxu0 %vm462_vm1, %v2809_v1 }
 0x71a   :  { %6023 = vmatprep.subr.msk.mxu0 %vm462_vm1, %v2983_v44 }
 0x71d   :  { %6024 = vmatpush3.xpose.msk.msra.mxu0 %vm462_vm1, %v2983_v44 }
 0x720   :  { %6026 = vmatmul.mubr.msk.f32.vlgmr.msra.gmra.mxu0 %vm462_vm1, %v2811_v13 }
 0x7cb   :  { %v5992_v34 = vpop.f32.mrf.mxu0 }
 0x7cc   :  { %v6006_v60 = vpop.f32.mrf.mxu1 }
 0x7cd   :  { %v2617_v57 = vpop.f32.mrf.mxu0 }
 0x7ce   :  { %v2791_v3 = vpop.f32.mrf.mxu1 }
 0x7d0   :  { %v5999_v61 = vpop.f32.mrf.mxu0 }
 0x7d1   :  { %v2710_v0 = vadd.f32 %v5999_v61, %v5992_v34 }
 0x7d2   :  { %v2704_v4 = vpop.f32.mrf.mxu0 }
 0x7d3   :  { %v7048_v9 = vadd.f32 %v6006_v60, %v2710_v0  ;;  %v2705_v10 = vadd.f32 %v2704_v4, %v2617_v57  ;;  %v3215_v4 = vpop.permute.xlu1 %3214 }
 0x7d4   :  { %v6020_v25 = vpop.f32.mrf.mxu1 }
 0x7d5   :  { %7544 = vst [vmem:[#allocation34_spill] sm:$0xff] %v7048_v9  ;;  %v7050_v30 = vadd.f32 %v2791_v3, %v2705_v10  ;;  %v2979_v31 = vadd.f32 %v7052_v6, %v6020_v25 }
 0x7d6   :  { %v2973_v33 = vpop.f32.mrf.mxu1 }
 0x7d7   :  { %7545 = vst [vmem:[#allocation35_spill] sm:$0xff] %v7050_v30  ;;  %v2974_v24 = vadd.f32 %v7055_v38, %v2973_v33  ;;  %v3074_v63 = vsel %vm712_vm2, %v2979_v31, -inf }
 0x7d8   :  { %v6013_v1 = vpop.f32.mrf.mxu0  ;;  %3075 = vmax.xlane.f32.xlu0 %v3074_v63 }
 0x7d9   :  { %v7060_v8 = vadd.f32 %v7052_v6, %v6013_v1  ;;  %v3071_v13 = vsel %vm712_vm2, %v2974_v24, -inf }
 0x7da   :  { %v2890_v27 = vpop.f32.mrf.mxu0  ;;  %3072 = vmax.xlane.f32.xlu1 %v3071_v13 }
 0x7db   :  { %v2891_v44 = vadd.f32 %v7055_v38, %v2890_v27  ;;  %v3068_v46 = vsel %vm712_vm2, %v7060_v8, -inf }
 0x7dc   :  { %3069 = vmax.xlane.f32.xlu0 %v3068_v46 }
 0x7dd   :  { %v3065_v41 = vsel %vm712_vm2, %v2891_v44, -inf }
 0x7e0   :  { %v6027_v54 = vpop.f32.mrf.mxu0  ;;  %3066 = vmax.xlane.f32.xlu0 %v3065_v41 }
 0x7e1   :  { %v3062_v34 = vadd.f32 %v7052_v6, %v6027_v54 }
 0x7e2   :  { %v3056_v57 = vpop.f32.mrf.mxu0 }
 0x7e3   :  { %v3057_v60 = vadd.f32 %v7055_v38, %v3056_v57  ;;  %v3082_v61 = vsel %vm712_vm2, %v3062_v34, -inf }
 0x7e4   :  { %3083 = vmax.xlane.f32.xlu1 %v3082_v61 }
 0x7e5   :  { %v3079_v0 = vsel %vm712_vm2, %v3057_v60, -inf }
 0x7e6   :  { %3080 = vmax.xlane.f32.xlu0 %v3079_v0 }
 0x7f5   :  { %3303 = vrot.lane.b32.xlu1 %v6667_v21, %s6534_s22 }
 0x7f9   :  { %3400 = vrot.lane.b32.xlu1 %v6649_v17, %s6535_s3 }
 0x7fc   :  { %3402 = vrot.lane.b32.xlu0 %v6643_v15, %s6535_s3 }
 0x7fd   :  { %3396 = vrot.lane.b32.xlu1 %v6651_v18, %s6535_s3 }
 0x800   :  { %3301 = vrot.lane.b32.xlu0 %v6681_v23, %s6534_s22 }
 0x801   :  { %3398 = vrot.lane.b32.xlu1 %v6661_v19, %s6535_s3 }
 0x804   :  { %3489 = vrot.lane.b32.xlu0 %v6665_v20, %s6535_s3 }
 0x805   :  { %3570 = vrot.lane.b32.xlu1 %v6681_v23, %s6535_s3 }
 0x808   :  { %3572 = vrot.lane.b32.xlu0 %v6667_v21, %s6535_s3 }
 0x809   :  { %3715 = vrot.lane.b32.xlu1 %v6675_v22, %s6536_s23 }
 0x80c   :  { %3487 = vrot.lane.b32.xlu0 %v6675_v22, %s6535_s3 }
 0x80d   :  { %3804 = vrot.lane.b32.xlu1 %v6643_v15, %s6536_s23 }
 0x810   :  { %3717 = vrot.lane.b32.xlu0 %v6665_v20, %s6536_s23 }
 0x811   :  { %3802 = vrot.lane.b32.xlu1 %v6649_v17, %s6536_s23 }
 0x861   :  { %v3076_v3 = vpop.xlane.xlu0 %3075 }
 0x863   :  { %v3073_v25 = vpop.xlane.xlu1 %3072 }
 0x865   :  { %v3070_v10 = vpop.xlane.xlu0 %3069 }
 0x866   :  { %v3078_v63 = vmax.f32 %v3070_v10, %v3076_v3 }
 0x869   :  { %v3067_v33 = vpop.xlane.xlu0 %3066 }
 0x86a   :  { %v3077_v13 = vmax.f32 %v3067_v33, %v3073_v25 }
 0x86d   :  { %v3084_v1 = vpop.xlane.xlu1 %3083 }
 0x86e   :  { %v3086_v27 = vmax.f32 %v3078_v63, %v3084_v1 }
 0x86f   :  { %v3081_v46 = vpop.xlane.xlu0 %3080 }
 0x870   :  { %v3094_v41 = vsub.f32 %v2979_v31, %v3086_v27  ;;  %v3085_v54 = vmax.f32 %v3077_v13, %v3081_v46  ;;  %v3100_v61 = vsub.f32 %v3062_v34, %v3086_v27  ;;  %v3088_v3 = vsub.f32 %v7060_v8, %v3086_v27 }
 0x871   :  { %v3304_v57 = vpop.permute.xlu1 %3303 }
 0x872   :  { %6042 = vmatprep.subr.mxu0 %v3304_v57  ;;  %v3097_v0 = vmul.f32 1.442695, %v3094_v41  ;;  %v3093_v30 = vsub.f32 %v2974_v24, %v3085_v54  ;;  %v3099_v9 = vsub.f32 %v3057_v60, %v3085_v54  ;;  %v3087_v59 = vsub.f32 %v2891_v44, %v3085_v54 }
 0x873   :  { %6043 = vmatpush3.msra.mxu0 %v3304_v57  ;;  %v3403_v62 = vpop.permute.xlu0 %3402  ;;  %v3103_v10 = vmul.f32 1.442695, %v3100_v61  ;;  %v3091_v31 = vmul.f32 1.442695, %v3088_v3 }
 0x874   :  { %v3095_v5 = vmul.f32 1.442695, %v3093_v30  ;;  %v3101_v2 = vmul.f32 1.442695, %v3099_v9  ;;  %6265 = vpow2.f32 %v3097_v0  ;;  %v3089_v33 = vmul.f32 1.442695, %v3087_v59 }
 0x875   :  { %v3401_v49 = vpop.permute.xlu1 %3400 }
 0x876   :  { %6267 = vpow2.f32 %v3095_v5 }
 0x877   :  { %v3302_v25 = vpop.permute.xlu0 %3301  ;;  %6269 = vpow2.f32 %v3101_v2 }
 0x878   :  { %6044 = vmatprep.subr.mxu0 %v3302_v25  ;;  %6271 = vpow2.f32 %v3103_v10 }
 0x879   :  { %6045 = vmatpush3.msra.mxu0 %v3302_v25  ;;  %v3397_v24 = vpop.permute.xlu1 %3396  ;;  %6273 = vpow2.f32 %v3089_v33 }
 0x87a   :  { %6275 = vpow2.f32 %v3091_v31 }
 0x87b   :  { %v3490_v34 = vpop.permute.xlu0 %3489 }
 0x87c   :  { %6056 = vmatprep.subr.msk.mxu0 %vm462_vm1, %v3490_v34 }
 0x87d   :  { %v3399_v9 = vpop.permute.xlu1 %3398 }
 0x87f   :  { %v3573_v30 = vpop.permute.xlu0 %3572 }
 0x881   :  { %v7093_v44 = vpop.eup %6265  ;;  %v3571_v5 = vpop.permute.xlu1 %3570 }
 0x883   :  { %v7095_v8 = vpop.eup %6267  ;;  %v3488_v59 = vpop.permute.xlu0 %3487 }
 0x884   :  { %v7097_v60 = vpop.eup %6269  ;;  %6032 = vmatprep.mubr.msk.f32.mxu1 %vm712_vm2, %v7095_v8 }
 0x885   :  { %7546 = vst [vmem:[#allocation36_spill] sm:$0xff] %v7097_v60  ;;  %v7101_v2 = vpop.eup %6271  ;;  %6046 = vmatprep.mubr.msk.f32.mxu0 %vm712_vm2, %v7097_v60  ;;  %6033 = vmatmul.mubr.msk.f32.vlgmr.msra.gmra.mxu1 %vm712_vm2, %v7093_v44 }
 0x886   :  { %7547 = vst [vmem:[#allocation37_spill] sm:$0xff] %v7101_v2  ;;  %6036 = vmatpush3.msra.mxu1 %v7039_v26  ;;  %6047 = vmatmul.mubr.msk.f32.vlgmr.msra.gmra.mxu0 %vm712_vm2, %v7101_v2  ;;  %v7110_v63 = vpop.eup %6273  ;;  %v3716_v26 = vpop.permute.xlu1 %3715 }
 0x887   :  { %6057 = vmatpush3.xpose.msk.msra.mxu0 %vm462_vm1, %v3490_v34  ;;  %6037 = vmatprep.subr.mxu1 %v3215_v4  ;;  %v7116_v1 = vpop.eup %6275  ;;  %v3718_v13 = vpop.permute.xlu0 %3717 }
 0x888   :  { %6039 = vmatprep.mubr.msk.f32.mxu1 %vm712_vm2, %v7110_v63  ;;  %6058 = vmatprep.subr.msk.mxu0 %vm462_vm1, %v3488_v59 }
 0x889   :  { %6060 = vmatprep.mubr.msk.f32.mxu0 %vm462_vm1, %v3397_v24  ;;  %6038 = vmatpush3.msra.mxu1 %v3215_v4 }
 0x88a   :  { %6049 = vmatprep.subr.msk.mxu1 %vm462_vm1, %v3403_v62  ;;  %6040 = vmatmul.mubr.msk.f32.vlgmr.msra.gmra.mxu1 %vm712_vm2, %v7116_v1  ;;  %v7129_v4 = vpop.permute.xlu1 %3804 }
 0x88b   :  { %6050 = vmatpush3.xpose.msk.msra.mxu1 %vm462_vm1, %v3403_v62  ;;  %6059 = vmatpush3.xpose.msk.msra.mxu0 %vm462_vm1, %v3488_v59 }
 0x88c   :  { %6051 = vmatprep.subr.msk.mxu1 %vm462_vm1, %v3401_v49  ;;  %6053 = vmatprep.mubr.msk.f32.mxu1 %vm462_vm1, %v3397_v24 }
 0x88d   :  { %6070 = vmatprep.subr.mxu0 %v3718_v13 }
 0x88e   :  { %6061 = vmatmul.mubr.msk.f32.vlgmr.msra.gmra.mxu0 %vm462_vm1, %v3399_v9 }
 0x88f   :  { %6052 = vmatpush3.xpose.msk.msra.mxu1 %vm462_vm1, %v3401_v49  ;;  %6071 = vmatpush3.msra.mxu0 %v3718_v13 }
 0x890   :  { %6063 = vmatprep.subr.msk.mxu1 %vm462_vm1, %v3573_v30  ;;  %6072 = vmatprep.subr.mxu0 %v3716_v26 }
 0x891   :  { %6073 = vmatpush3.msra.mxu0 %v3716_v26 }
 0x892   :  { %6054 = vmatmul.mubr.msk.f32.vlgmr.msra.gmra.mxu1 %vm462_vm1, %v3399_v9  ;;  %6077 = vmatprep.subr.mxu0 %v7129_v4 }
 0x893   :  { %6064 = vmatpush3.xpose.msk.msra.mxu1 %vm462_vm1, %v3573_v30  ;;  %6067 = vmatprep.mubr.msk.f32.mxu1 %vm462_vm1, %v3397_v24 }
 0x894   :  { %6065 = vmatprep.subr.msk.mxu1 %vm462_vm1, %v3571_v5 }
 0x897   :  { %6066 = vmatpush3.xpose.msk.msra.mxu1 %vm462_vm1, %v3571_v5 }
 0x89a   :  { %6068 = vmatmul.mubr.msk.f32.vlgmr.msra.gmra.mxu1 %vm462_vm1, %v3399_v9 }
 0x945   :  { %v6034_v49 = vpop.f32.mrf.mxu1 }
 0x946   :  { %v6048_v27 = vpop.f32.mrf.mxu0 }
 0x947   :  { %v3205_v62 = vpop.f32.mrf.mxu1 }
 0x948   :  { %v3379_v54 = vpop.f32.mrf.mxu0 }
 0x94a   :  { %v6041_v46 = vpop.f32.mrf.mxu1 }
 0x94b   :  { %v3298_v41 = vadd.f32 %v6041_v46, %v6034_v49 }
 0x94c   :  { %v3292_v57 = vpop.f32.mrf.mxu1 }
 0x94d   :  { %v7138_v61 = vadd.f32 %v6048_v27, %v3298_v41  ;;  %v3293_v0 = vadd.f32 %v3292_v57, %v3205_v62 }
 0x94e   :  { %v6062_v3 = vpop.f32.mrf.mxu0 }
 0x94f   :  { %7548 = vst [vmem:[#allocation38_spill] sm:$0xff] %v7138_v61  ;;  %v7140_v10 = vadd.f32 %v3379_v54, %v3293_v0  ;;  %v3567_v25 = vadd.f32 %v7052_v6, %v6062_v3  ;;  %v3803_v0 = vpop.permute.xlu1 %3802 }
 0x950   :  { %v3561_v33 = vpop.f32.mrf.mxu0 }
 0x951   :  { %7549 = vst [vmem:[#allocation39_spill] sm:$0xff] %v7140_v10  ;;  %v3562_v31 = vadd.f32 %v7055_v38, %v3561_v33  ;;  %v3662_v24 = vsel %vm712_vm2, %v3567_v25, -inf }
 0x952   :  { %v6055_v34 = vpop.f32.mrf.mxu1  ;;  %3663 = vmax.xlane.f32.xlu0 %v3662_v24 }
 0x953   :  { %v7146_v9 = vadd.f32 %v7052_v6, %v6055_v34  ;;  %v3659_v30 = vsel %vm712_vm2, %v3562_v31, -inf }
 0x954   :  { %v3478_v5 = vpop.f32.mrf.mxu1  ;;  %3660 = vmax.xlane.f32.xlu1 %v3659_v30 }
 0x955   :  { %v3479_v59 = vadd.f32 %v7055_v38, %v3478_v5  ;;  %v3656_v26 = vsel %vm712_vm2, %v7146_v9, -inf }
 0x956   :  { %3657 = vmax.xlane.f32.xlu0 %v3656_v26 }
 0x957   :  { %v3653_v13 = vsel %vm712_vm2, %v3479_v59, -inf }
 0x95a   :  { %v6069_v49 = vpop.f32.mrf.mxu1  ;;  %3654 = vmax.xlane.f32.xlu0 %v3653_v13 }
 0x95b   :  { %v3650_v62 = vadd.f32 %v7052_v6, %v6069_v49 }
 0x95c   :  { %v3644_v27 = vpop.f32.mrf.mxu1 }
 0x95d   :  { %v3645_v46 = vadd.f32 %v7055_v38, %v3644_v27  ;;  %v3670_v41 = vsel %vm712_vm2, %v3650_v62, -inf }
 0x95e   :  { %3671 = vmax.xlane.f32.xlu1 %v3670_v41 }
 0x95f   :  { %v3667_v54 = vsel %vm712_vm2, %v3645_v46, -inf }
 0x960   :  { %3668 = vmax.xlane.f32.xlu0 %v3667_v54 }
 0x96f   :  { %3891 = vrot.lane.b32.xlu1 %v6667_v21, %s6536_s23 }
 0x973   :  { %3988 = vrot.lane.b32.xlu1 %v6649_v17, %s6537_s24 }
 0x976   :  { %3990 = vrot.lane.b32.xlu0 %v6643_v15, %s6537_s24 }
 0x977   :  { %3984 = vrot.lane.b32.xlu1 %v6651_v18, %s6537_s24 }
 0x97a   :  { %3889 = vrot.lane.b32.xlu0 %v6681_v23, %s6536_s23 }
 0x97b   :  { %3986 = vrot.lane.b32.xlu1 %v6661_v19, %s6537_s24 }
 0x97e   :  { %4077 = vrot.lane.b32.xlu0 %v6665_v20, %s6537_s24 }
 0x97f   :  { %4158 = vrot.lane.b32.xlu1 %v6681_v23, %s6537_s24 }
 0x982   :  { %4160 = vrot.lane.b32.xlu0 %v6667_v21, %s6537_s24 }
 0x983   :  { %4303 = vrot.lane.b32.xlu1 %v6675_v22, %s6538_s25 }
 0x986   :  { %4075 = vrot.lane.b32.xlu0 %v6675_v22, %s6537_s24 }
 0x987   :  { %4392 = vrot.lane.b32.xlu1 %v6643_v15, %s6538_s25 }
 0x98a   :  { %4305 = vrot.lane.b32.xlu0 %v6665_v20, %s6538_s25 }
 0x98b   :  { %4390 = vrot.lane.b32.xlu1 %v6649_v17, %s6538_s25 }
 0x9db   :  { %v3664_v57 = vpop.xlane.xlu0 %3663 }
 0x9dd   :  { %v3661_v33 = vpop.xlane.xlu1 %3660 }
 0x9df   :  { %v3658_v3 = vpop.xlane.xlu0 %3657 }
 0x9e0   :  { %v3666_v34 = vmax.f32 %v3658_v3, %v3664_v57 }
 0x9e3   :  { %v3655_v24 = vpop.xlane.xlu0 %3654 }
 0x9e4   :  { %v3665_v5 = vmax.f32 %v3655_v24, %v3661_v33 }
 0x9e7   :  { %v3672_v30 = vpop.xlane.xlu1 %3671 }
 0x9e8   :  { %v3674_v26 = vmax.f32 %v3666_v34, %v3672_v30 }
 0x9e9   :  { %v3669_v13 = vpop.xlane.xlu0 %3668 }
 0x9ea   :  { %v3682_v49 = vsub.f32 %v3567_v25, %v3674_v26  ;;  %v3673_v27 = vmax.f32 %v3665_v5, %v3669_v13  ;;  %v3688_v54 = vsub.f32 %v3650_v62, %v3674_v26  ;;  %v3676_v57 = vsub.f32 %v7146_v9, %v3674_v26 }
 0x9eb   :  { %v3892_v41 = vpop.permute.xlu1 %3891 }
 0x9ec   :  { %6084 = vmatprep.subr.mxu1 %v3892_v41  ;;  %v3685_v10 = vmul.f32 1.442695, %v3682_v49  ;;  %v3681_v61 = vsub.f32 %v3562_v31, %v3673_v27  ;;  %v3687_v45 = vsub.f32 %v3645_v46, %v3673_v27  ;;  %v3675_v2 = vsub.f32 %v3479_v59, %v3673_v27 }
 0x9ed   :  { %6085 = vmatpush3.msra.mxu1 %v3892_v41  ;;  %v3991_v60 = vpop.permute.xlu0 %3990  ;;  %v3691_v3 = vmul.f32 1.442695, %v3688_v54  ;;  %v3679_v25 = vmul.f32 1.442695, %v3676_v57 }
 0x9ee   :  { %v3683_v58 = vmul.f32 1.442695, %v3681_v61  ;;  %v3689_v43 = vmul.f32 1.442695, %v3687_v45  ;;  %6277 = vpow2.f32 %v3685_v10  ;;  %v3677_v24 = vmul.f32 1.442695, %v3675_v2 }
 0x9ef   :  { %v3989_v36 = vpop.permute.xlu1 %3988 }
 0x9f0   :  { %6279 = vpow2.f32 %v3683_v58 }
 0x9f1   :  { %v3890_v33 = vpop.permute.xlu0 %3889  ;;  %6281 = vpow2.f32 %v3689_v43 }
 0x9f2   :  { %6086 = vmatprep.subr.mxu1 %v3890_v33  ;;  %6283 = vpow2.f32 %v3691_v3 }
 0x9f3   :  { %6087 = vmatpush3.msra.mxu1 %v3890_v33  ;;  %v3985_v31 = vpop.permute.xlu1 %3984  ;;  %6285 = vpow2.f32 %v3677_v24 }
 0x9f4   :  { %6287 = vpow2.f32 %v3679_v25 }
 0x9f5   :  { %v4078_v62 = vpop.permute.xlu0 %4077 }
 0x9f6   :  { %6098 = vmatprep.subr.msk.mxu1 %vm462_vm1, %v4078_v62 }
 0x9f7   :  { %v3987_v45 = vpop.permute.xlu1 %3986 }
 0x9f9   :  { %v4161_v61 = vpop.permute.xlu0 %4160 }
 0x9fb   :  { %v7179_v59 = vpop.eup %6277  ;;  %v4159_v43 = vpop.permute.xlu1 %4158 }
 0x9fd   :  { %v7181_v9 = vpop.eup %6279  ;;  %v4076_v2 = vpop.permute.xlu0 %4075 }
 0x9fe   :  { %v7183_v10 = vpop.eup %6281  ;;  %6074 = vmatprep.mubr.msk.f32.mxu0 %vm712_vm2, %v7181_v9 }
 0x9ff   :  { %7550 = vst [vmem:[#allocation40_spill] sm:$0xff] %v7183_v10  ;;  %v7187_v58 = vpop.eup %6283  ;;  %6088 = vmatprep.mubr.msk.f32.mxu1 %vm712_vm2, %v7183_v10  ;;  %6075 = vmatmul.mubr.msk.f32.vlgmr.msra.gmra.mxu0 %vm712_vm2, %v7179_v59 }
 0xa00   :  { %7551 = vst [vmem:[#allocation41_spill] sm:$0xff] %v7187_v58  ;;  %6078 = vmatpush3.msra.mxu0 %v7129_v4  ;;  %6089 = vmatmul.mubr.msk.f32.vlgmr.msra.gmra.mxu1 %vm712_vm2, %v7187_v58  ;;  %v7196_v46 = vpop.eup %6285  ;;  %v4304_v4 = vpop.permute.xlu1 %4303 }
 0xa01   :  { %6099 = vmatpush3.xpose.msk.msra.mxu1 %vm462_vm1, %v4078_v62  ;;  %6079 = vmatprep.subr.mxu0 %v3803_v0  ;;  %v7202_v34 = vpop.eup %6287  ;;  %v4306_v30 = vpop.permute.xlu0 %4305 }
 0xa02   :  { %6081 = vmatprep.mubr.msk.f32.mxu0 %vm712_vm2, %v7196_v46  ;;  %6100 = vmatprep.subr.msk.mxu1 %vm462_vm1, %v4076_v2 }
 0xa03   :  { %6102 = vmatprep.mubr.msk.f32.mxu1 %vm462_vm1, %v3985_v31  ;;  %6080 = vmatpush3.msra.mxu0 %v3803_v0 }
 0xa04   :  { %6091 = vmatprep.subr.msk.mxu0 %vm462_vm1, %v3991_v60  ;;  %6082 = vmatmul.mubr.msk.f32.vlgmr.msra.gmra.mxu0 %vm712_vm2, %v7202_v34  ;;  %v7215_v0 = vpop.permute.xlu1 %4392 }
 0xa05   :  { %6092 = vmatpush3.xpose.msk.msra.mxu0 %vm462_vm1, %v3991_v60  ;;  %6101 = vmatpush3.xpose.msk.msra.mxu1 %vm462_vm1, %v4076_v2 }
 0xa06   :  { %6093 = vmatprep.subr.msk.mxu0 %vm462_vm1, %v3989_v36  ;;  %6095 = vmatprep.mubr.msk.f32.mxu0 %vm462_vm1, %v3985_v31 }
 0xa07   :  { %6112 = vmatprep.subr.mxu1 %v4306_v30 }
 0xa08   :  { %6103 = vmatmul.mubr.msk.f32.vlgmr.msra.gmra.mxu1 %vm462_vm1, %v3987_v45 }
 0xa09   :  { %6094 = vmatpush3.xpose.msk.msra.mxu0 %vm462_vm1, %v3989_v36  ;;  %6113 = vmatpush3.msra.mxu1 %v4306_v30 }
 0xa0a   :  { %6105 = vmatprep.subr.msk.mxu0 %vm462_vm1, %v4161_v61  ;;  %6114 = vmatprep.subr.mxu1 %v4304_v4 }
 0xa0b   :  { %6115 = vmatpush3.msra.mxu1 %v4304_v4 }
 0xa0c   :  { %6096 = vmatmul.mubr.msk.f32.vlgmr.msra.gmra.mxu0 %vm462_vm1, %v3987_v45  ;;  %6119 = vmatprep.subr.mxu1 %v7215_v0 }
 0xa0d   :  { %6106 = vmatpush3.xpose.msk.msra.mxu0 %vm462_vm1, %v4161_v61  ;;  %6109 = vmatprep.mubr.msk.f32.mxu0 %vm462_vm1, %v3985_v31 }
 0xa0e   :  { %6107 = vmatprep.subr.msk.mxu0 %vm462_vm1, %v4159_v43 }
 0xa11   :  { %6108 = vmatpush3.xpose.msk.msra.mxu0 %vm462_vm1, %v4159_v43 }
 0xa14   :  { %6110 = vmatmul.mubr.msk.f32.vlgmr.msra.gmra.mxu0 %vm462_vm1, %v3987_v45 }
 0xabf   :  { %v6076_v36 = vpop.f32.mrf.mxu0 }
 0xac0   :  { %v6090_v5 = vpop.f32.mrf.mxu1 }
 0xac1   :  { %v3793_v60 = vpop.f32.mrf.mxu0 }
 0xac2   :  { %v3967_v49 = vpop.f32.mrf.mxu1 }
 0xac4   :  { %v6083_v26 = vpop.f32.mrf.mxu0 }
 0xac5   :  { %v3886_v13 = vadd.f32 %v6083_v26, %v6076_v36 }
 0xac6   :  { %v3880_v27 = vpop.f32.mrf.mxu0 }
 0xac7   :  { %v7224_v41 = vadd.f32 %v6090_v5, %v3886_v13  ;;  %v3881_v54 = vadd.f32 %v3880_v27, %v3793_v60 }
 0xac8   :  { %v6104_v57 = vpop.f32.mrf.mxu1 }
 0xac9   :  { %7552 = vst [vmem:[#allocation42_spill] sm:$0xff] %v7224_v41  ;;  %v7226_v3 = vadd.f32 %v3967_v49, %v3881_v54  ;;  %v4155_v33 = vadd.f32 %v7052_v6, %v6104_v57  ;;  %v4391_v54 = vpop.permute.xlu1 %4390 }
 0xaca   :  { %v4149_v24 = vpop.f32.mrf.mxu1 }
 0xacb   :  { %7553 = vst [vmem:[#allocation43_spill] sm:$0xff] %v7226_v3  ;;  %v4150_v25 = vadd.f32 %v7055_v38, %v4149_v24  ;;  %v4250_v31 = vsel %vm712_vm2, %v4155_v33, -inf }
 0xacc   :  { %v6097_v62 = vpop.f32.mrf.mxu0  ;;  %4251 = vmax.xlane.f32.xlu0 %v4250_v31 }
 0xacd   :  { %v4072_v45 = vadd.f32 %v7052_v6, %v6097_v62  ;;  %v4247_v61 = vsel %vm712_vm2, %v4150_v25, -inf }
 0xace   :  { %v4066_v43 = vpop.f32.mrf.mxu0  ;;  %4248 = vmax.xlane.f32.xlu1 %v4247_v61 }
 0xacf   :  { %v4067_v2 = vadd.f32 %v7055_v38, %v4066_v43  ;;  %v4244_v4 = vsel %vm712_vm2, %v4072_v45, -inf }
 0xad0   :  { %4245 = vmax.xlane.f32.xlu0 %v4244_v4 }
 0xad1   :  { %v4241_v30 = vsel %vm712_vm2, %v4067_v2, -inf }
 0xad4   :  { %v6111_v36 = vpop.f32.mrf.mxu0  ;;  %4242 = vmax.xlane.f32.xlu0 %v4241_v30 }
 0xad5   :  { %v4238_v60 = vadd.f32 %v7052_v6, %v6111_v36 }
 0xad6   :  { %v4232_v5 = vpop.f32.mrf.mxu0 }
 0xad7   :  { %v4233_v26 = vadd.f32 %v7055_v38, %v4232_v5  ;;  %v4258_v13 = vsel %vm712_vm2, %v4238_v60, -inf }
 0xad8   :  { %4259 = vmax.xlane.f32.xlu1 %v4258_v13 }
 0xad9   :  { %v4255_v49 = vsel %vm712_vm2, %v4233_v26, -inf }
 0xada   :  { %4256 = vmax.xlane.f32.xlu0 %v4255_v49 }
 0xae9   :  { %4479 = vrot.lane.b32.xlu1 %v6667_v21, %s6538_s25 }
 0xaed   :  { %4576 = vrot.lane.b32.xlu1 %v6649_v17, %s6539_s26 }
 0xaf0   :  { %4578 = vrot.lane.b32.xlu0 %v6643_v15, %s6539_s26 }
 0xaf1   :  { %4572 = vrot.lane.b32.xlu1 %v6651_v18, %s6539_s26 }
 0xaf4   :  { %4477 = vrot.lane.b32.xlu0 %v6681_v23, %s6538_s25 }
 0xaf5   :  { %4574 = vrot.lane.b32.xlu1 %v6661_v19, %s6539_s26 }
 0xaf8   :  { %4665 = vrot.lane.b32.xlu0 %v6665_v20, %s6539_s26 }
 0xaf9   :  { %4746 = vrot.lane.b32.xlu1 %v6681_v23, %s6539_s26 }
 0xafc   :  { %4748 = vrot.lane.b32.xlu0 %v6667_v21, %s6539_s26 }
 0xb00   :  { %4663 = vrot.lane.b32.xlu0 %v6675_v22, %s6539_s26 }
 0xb55   :  { %v4252_v27 = vpop.xlane.xlu0 %4251 }
 0xb57   :  { %v4249_v24 = vpop.xlane.xlu1 %4248 }
 0xb59   :  { %v4246_v57 = vpop.xlane.xlu0 %4245 }
 0xb5a   :  { %v4254_v62 = vmax.f32 %v4246_v57, %v4252_v27 }
 0xb5d   :  { %v4243_v31 = vpop.xlane.xlu0 %4242 }
 0xb5e   :  { %v4253_v61 = vmax.f32 %v4243_v31, %v4249_v24 }
 0xb61   :  { %v4260_v18 = vpop.xlane.xlu1 %4259 }
 0xb62   :  { %v4262_v43 = vmax.f32 %v4254_v62, %v4260_v18 }
 0xb63   :  { %v4257_v4 = vpop.xlane.xlu0 %4256 }
 0xb64   :  { %v4270_v30 = vsub.f32 %v4155_v33, %v4262_v43  ;;  %v4261_v19 = vmax.f32 %v4253_v61, %v4257_v4  ;;  %v4276_v5 = vsub.f32 %v4238_v60, %v4262_v43  ;;  %v4264_v51 = vsub.f32 %v4072_v45, %v4262_v43 }
 0xb65   :  { %v4480_v36 = vpop.permute.xlu1 %4479 }
 0xb66   :  { %6126 = vmatprep.subr.mxu0 %v4480_v36  ;;  %v4273_v13 = vmul.f32 1.442695, %v4270_v30  ;;  %v4269_v49 = vsub.f32 %v4150_v25, %v4261_v19  ;;  %v4275_v3 = vsub.f32 %v4233_v26, %v4261_v19  ;;  %v4263_v10 = vsub.f32 %v4067_v2, %v4261_v19 }
 0xb67   :  { %6127 = vmatpush3.msra.mxu0 %v4480_v36  ;;  %v4579_v41 = vpop.permute.xlu0 %4578  ;;  %v4279_v52 = vmul.f32 1.442695, %v4276_v5  ;;  %v4267_v33 = vmul.f32 1.442695, %v4264_v51 }
 0xb68   :  { %v4271_v58 = vmul.f32 1.442695, %v4269_v49  ;;  %v4277_v37 = vmul.f32 1.442695, %v4275_v3  ;;  %6289 = vpow2.f32 %v4273_v13  ;;  %v4265_v57 = vmul.f32 1.442695, %v4263_v10 }
 0xb69   :  { %v4577_v25 = vpop.permute.xlu1 %4576 }
 0xb6a   :  { %6291 = vpow2.f32 %v4271_v58 }
 0xb6b   :  { %v4478_v27 = vpop.permute.xlu0 %4477  ;;  %6293 = vpow2.f32 %v4277_v37 }
 0xb6c   :  { %6128 = vmatprep.subr.mxu0 %v4478_v27  ;;  %6295 = vpow2.f32 %v4279_v52 }
 0xb6d   :  { %6129 = vmatpush3.msra.mxu0 %v4478_v27  ;;  %6297 = vpow2.f32 %v4265_v57  ;;  %v4573_v52 = vpop.permute.xlu1 %4572 }
 0xb6e   :  { %6299 = vpow2.f32 %v4267_v33 }
 0xb6f   :  { %v4666_v60 = vpop.permute.xlu0 %4665 }
 0xb70   :  { %6140 = vmatprep.subr.msk.mxu0 %vm462_vm1, %v4666_v60 }
 0xb73   :  { %v4749_v2 = vpop.permute.xlu0 %4748 }
 0xb75   :  { %v7253_v26 = vpop.eup %6289 }
 0xb77   :  { %v7255_v3 = vpop.eup %6291  ;;  %v4664_v10 = vpop.permute.xlu0 %4663 }
 0xb78   :  { %v7257_v45 = vpop.eup %6293  ;;  %6116 = vmatprep.mubr.msk.f32.mxu1 %vm712_vm2, %v7255_v3 }
 0xb79   :  { %v7261_v37 = vpop.eup %6295  ;;  %6130 = vmatprep.mubr.msk.f32.mxu0 %vm712_vm2, %v7257_v45  ;;  %6117 = vmatmul.mubr.msk.f32.vlgmr.msra.gmra.mxu1 %vm712_vm2, %v7253_v26 }
 0xb7a   :  { %6120 = vmatpush3.msra.mxu1 %v7215_v0  ;;  %6131 = vmatmul.mubr.msk.f32.vlgmr.msra.gmra.mxu0 %vm712_vm2, %v7261_v37  ;;  %v7270_v51 = vpop.eup %6297  ;;  %v4575_v0 = vpop.permute.xlu1 %4574 }
 0xb7b   :  { %6141 = vmatpush3.xpose.msk.msra.mxu0 %vm462_vm1, %v4666_v60  ;;  %6121 = vmatprep.subr.mxu1 %v4391_v54  ;;  %v7276_v58 = vpop.eup %6299 }
 0xb7c   :  { %6123 = vmatprep.mubr.msk.f32.mxu1 %vm712_vm2, %v7270_v51  ;;  %6142 = vmatprep.subr.msk.mxu0 %vm462_vm1, %v4664_v10 }
 0xb7d   :  { %6144 = vmatprep.mubr.msk.f32.mxu0 %vm462_vm1, %v4573_v52  ;;  %6122 = vmatpush3.msra.mxu1 %v4391_v54 }
 0xb7e   :  { %6133 = vmatprep.subr.msk.mxu1 %vm462_vm1, %v4579_v41  ;;  %6124 = vmatmul.mubr.msk.f32.vlgmr.msra.gmra.mxu1 %vm712_vm2, %v7276_v58  ;;  %v4747_v54 = vpop.permute.xlu1 %4746 }
 0xb7f   :  { %6134 = vmatpush3.xpose.msk.msra.mxu1 %vm462_vm1, %v4579_v41  ;;  %6143 = vmatpush3.xpose.msk.msra.mxu0 %vm462_vm1, %v4664_v10 }
 0xb80   :  { %6135 = vmatprep.subr.msk.mxu1 %vm462_vm1, %v4577_v25  ;;  %6137 = vmatprep.mubr.msk.f32.mxu1 %vm462_vm1, %v4573_v52 }
 0xb82   :  { %6145 = vmatmul.mubr.msk.f32.vlgmr.msra.gmra.mxu0 %vm462_vm1, %v4575_v0 }
 0xb83   :  { %6136 = vmatpush3.xpose.msk.msra.mxu1 %vm462_vm1, %v4577_v25 }
 0xb84   :  { %6147 = vmatprep.subr.msk.mxu1 %vm462_vm1, %v4749_v2 }
 0xb86   :  { %6138 = vmatmul.mubr.msk.f32.vlgmr.msra.gmra.mxu1 %vm462_vm1, %v4575_v0 }
 0xb87   :  { %6148 = vmatpush3.xpose.msk.msra.mxu1 %vm462_vm1, %v4749_v2  ;;  %6151 = vmatprep.mubr.msk.f32.mxu1 %vm462_vm1, %v4573_v52 }
 0xb88   :  { %6149 = vmatprep.subr.msk.mxu1 %vm462_vm1, %v4747_v54 }
 0xb8b   :  { %6150 = vmatpush3.xpose.msk.msra.mxu1 %vm462_vm1, %v4747_v54 }
 0xb8e   :  { %6152 = vmatmul.mubr.msk.f32.vlgmr.msra.gmra.mxu1 %vm462_vm1, %v4575_v0 }
 0xc39   :  { %v6118_v41 = vpop.f32.mrf.mxu1 }
 0xc3a   :  { %v6132_v31 = vpop.f32.mrf.mxu0 }
 0xc3b   :  { %v4381_v24 = vpop.f32.mrf.mxu1 }
 0xc3c   :  { %v4555_v61 = vpop.f32.mrf.mxu0 }
 0xc3e   :  { %v6125_v62 = vpop.f32.mrf.mxu1 }
 0xc3f   :  { %v4474_v18 = vadd.f32 %v6125_v62, %v6118_v41 }
 0xc40   :  { %v4468_v43 = vpop.f32.mrf.mxu1 }
 0xc41   :  { %v7295_v4 = vadd.f32 %v6132_v31, %v4474_v18  ;;  %v4469_v30 = vadd.f32 %v4468_v43, %v4381_v24  ;;  %v7558_v43 = vld [vmem:[#allocation33_spill] sm:$0xff] }
 0xc42   :  { %v6146_v19 = vpop.f32.mrf.mxu0 }
 0xc43   :  { %v7297_v36 = vadd.f32 %v4555_v61, %v4469_v30  ;;  %v7300_v5 = vadd.f32 %v7052_v6, %v6146_v19  ;;  %v7557_v61 = vld [vmem:[#allocation28_spill] sm:$0xff] }
 0xc44   :  { %v4737_v13 = vpop.f32.mrf.mxu0  ;;  %v7559_v19 = vld [vmem:[#allocation32_spill] sm:$0xff] }
 0xc45   :  { %v7303_v49 = vadd.f32 %v7055_v38, %v4737_v13  ;;  %v4838_v27 = vsel %vm712_vm2, %v7300_v5, -inf  ;;  %v2531_v13 = vsel %vm712_vm2, %v7559_v19, 0.0 }
 0xc46   :  { %v6139_v57 = vpop.f32.mrf.mxu1  ;;  %4839 = vmax.xlane.f32.xlu0 %v4838_v27  ;;  %v7560_v27 = vld [vmem:[#allocation37_spill] sm:$0xff] }
 0xc47   :  { %v7308_v33 = vadd.f32 %v7052_v6, %v6139_v57  ;;  %v4835_v60 = vsel %vm712_vm2, %v7303_v49, -inf  ;;  %v3122_v57 = vsel %vm712_vm2, %v7560_v27, 0.0 }
 0xc48   :  { %v4654_v25 = vpop.f32.mrf.mxu1  ;;  %4836 = vmax.xlane.f32.xlu1 %v4835_v60 }
 0xc49   :  { %v7313_v2 = vadd.f32 %v7055_v38, %v4654_v25  ;;  %v4832_v52 = vsel %vm712_vm2, %v7308_v33, -inf  ;;  %v7561_v25 = vld [vmem:[#allocation36_spill] sm:$0xff] }
 0xc4a   :  { %4833 = vmax.xlane.f32.xlu0 %v4832_v52  ;;  %v3119_v52 = vsel %vm712_vm2, %v7561_v25, 0.0 }
 0xc4b   :  { %v4829_v10 = vsel %vm712_vm2, %v7313_v2, -inf }
 0xc4e   :  { %v6153_v0 = vpop.f32.mrf.mxu1  ;;  %4830 = vmax.xlane.f32.xlu0 %v4829_v10 }
 0xc4f   :  { %v7320_v54 = vadd.f32 %v7052_v6, %v6153_v0  ;;  %v753_v6 = vsel %vm712_vm2, %v6754_v16, 0.0  ;;  %v1938_v16 = vsel %vm712_vm2, %v6917_v35, 0.0  ;;  %v3108_v35 = vsel %vm712_vm2, %v7116_v1, 0.0 }
 0xc50   :  { %v4820_v41 = vpop.f32.mrf.mxu1  ;;  %v4287_v1 = vsel %vm712_vm2, %v7255_v3, 0.0 }
 0xc51   :  { %v7323_v24 = vadd.f32 %v7055_v38, %v4820_v41  ;;  %v4846_v31 = vsel %vm712_vm2, %v7320_v54, -inf  ;;  %v759_v38 = vsel %vm712_vm2, %v6747_v12, 0.0  ;;  %v1932_v12 = vsel %vm712_vm2, %v6940_v42, 0.0  ;;  %v7562_v41 = vld [vmem:[#allocation41_spill] sm:$0xff] }
 0xc52   :  { %4847 = vmax.xlane.f32.xlu1 %v4846_v31  ;;  %v3111_v42 = vsel %vm712_vm2, %v7095_v8, 0.0  ;;  %v4281_v8 = vsel %vm712_vm2, %v7270_v51, 0.0  ;;  %v7555_v51 = vld [vmem:[#allocation24_spill] sm:$0xff]  ;;  %v3710_v31 = vsel %vm712_vm2, %v7562_v41, 0.0 }
 0xc53   :  { %v4843_v62 = vsel %vm712_vm2, %v7323_v24, -inf }
 0xc54   :  { %4844 = vmax.xlane.f32.xlu0 %v4843_v62 }
 0xc63   :  { %4891 = vrot.lane.b32.xlu1 %v6675_v22, %s6540_s27  ;;  %v756_v22 = vsel %vm712_vm2, %v6761_v28, 0.0  ;;  %v1935_v28 = vsel %vm712_vm2, %v6919_v11, 0.0  ;;  %v3105_v11 = vsel %vm712_vm2, %v7110_v63, 0.0  ;;  %v4290_v63 = vsel %vm712_vm2, %v7253_v26, 0.0 }
 0xc64   :  { %v1355_v26 = vsel %vm712_vm2, %v7555_v51, 0.0 }
 0xc67   :  { %4980 = vrot.lane.b32.xlu1 %v6643_v15, %s6540_s27  ;;  %v762_v15 = vsel %vm712_vm2, %v6749_v14, 0.0  ;;  %v1929_v14 = vsel %vm712_vm2, %v6934_v40, 0.0  ;;  %v3114_v40 = vsel %vm712_vm2, %v7093_v44, 0.0  ;;  %v4284_v44 = vsel %vm712_vm2, %v7276_v58, 0.0  ;;  %v7556_v58 = vld [vmem:[#allocation29_spill] sm:$0xff] }
 0xc68   :  { %v1946_v3 = vsel %vm712_vm2, %v7556_v58, 0.0 }
 0xc6a   :  { %4893 = vrot.lane.b32.xlu0 %v6665_v20, %s6540_s27  ;;  %v1341_v20 = vsel %vm712_vm2, %v6848_v55, 0.0  ;;  %v2526_v55 = vsel %vm712_vm2, %v7003_v39, 0.0  ;;  %v3696_v39 = vsel %vm712_vm2, %v7202_v34, 0.0 }
 0xc6b   :  { %4978 = vrot.lane.b32.xlu1 %v6649_v17, %s6540_s27  ;;  %v1344_v17 = vsel %vm712_vm2, %v6854_v56, 0.0  ;;  %v2523_v56 = vsel %vm712_vm2, %v7005_v7, 0.0  ;;  %v3693_v7 = vsel %vm712_vm2, %v7196_v46, 0.0  ;;  %v7554_v46 = vld [vmem:[#allocation25_spill] sm:$0xff] }
 0xc6c   :  { %v1358_v34 = vsel %vm712_vm2, %v7554_v46, 0.0 }
 0xc6e   :  { %5067 = vrot.lane.b32.xlu0 %v6667_v21, %s6540_s27  ;;  %v1350_v21 = vsel %vm712_vm2, %v6831_v48, 0.0  ;;  %v2520_v48 = vsel %vm712_vm2, %v7026_v53, 0.0  ;;  %v3699_v53 = vsel %vm712_vm2, %v7181_v9, 0.0  ;;  %v767_v9 = vsel %vm712_vm2, %v6764_v29, 0.0 }
 0xc6f   :  { %5065 = vrot.lane.b32.xlu1 %v6681_v23, %s6540_s27  ;;  %v1347_v23 = vsel %vm712_vm2, %v6833_v50, 0.0  ;;  %v2517_v50 = vsel %vm712_vm2, %v7020_v47, 0.0  ;;  %v3702_v47 = vsel %vm712_vm2, %v7179_v59, 0.0  ;;  %v770_v59 = vsel %vm712_vm2, %v6771_v32, 0.0 }
 0xc70   :  { %v1943_v32 = vsel %vm712_vm2, %v7557_v61, 0.0  ;;  %v2534_v29 = vsel %vm712_vm2, %v7558_v43, 0.0 }
 0xc8d   :  { %754 = vadd.xlane.f32.xlu0 %v753_v6 }
 0xc91   :  { %760 = vadd.xlane.f32.xlu0 %v759_v38 }
 0xc93   :  { %757 = vadd.xlane.f32.xlu1 %v756_v22  ;;  %v7563_v22 = vld [vmem:[#allocation40_spill] sm:$0xff] }
 0xc95   :  { %763 = vadd.xlane.f32.xlu0 %v762_v15  ;;  %v3707_v15 = vsel %vm712_vm2, %v7563_v22, 0.0 }
 0xc97   :  { %1345 = vadd.xlane.f32.xlu1 %v1344_v17 }
 0xc99   :  { %1342 = vadd.xlane.f32.xlu0 %v1341_v20 }
 0xc9b   :  { %1351 = vadd.xlane.f32.xlu1 %v1350_v21 }
 0xc9d   :  { %1348 = vadd.xlane.f32.xlu0 %v1347_v23 }
 0xc9f   :  { %1933 = vadd.xlane.f32.xlu1 %v1932_v12  ;;  %v4298_v12 = vsel %vm712_vm2, %v7261_v37, 0.0 }
 0xca1   :  { %1930 = vadd.xlane.f32.xlu0 %v1929_v14 }
 0xca3   :  { %1939 = vadd.xlane.f32.xlu1 %v1938_v16  ;;  %v4295_v16 = vsel %vm712_vm2, %v7257_v45, 0.0 }
 0xca5   :  { %1936 = vadd.xlane.f32.xlu0 %v1935_v28 }
 0xca7   :  { %2521 = vadd.xlane.f32.xlu1 %v2520_v48 }
 0xca9   :  { %2518 = vadd.xlane.f32.xlu0 %v2517_v50 }
 0xcab   :  { %2527 = vadd.xlane.f32.xlu1 %v2526_v55 }
 0xcad   :  { %2524 = vadd.xlane.f32.xlu0 %v2523_v56 }
 0xcaf   :  { %3109 = vadd.xlane.f32.xlu1 %v3108_v35 }
 0xcb1   :  { %3106 = vadd.xlane.f32.xlu0 %v3105_v11 }
 0xcb3   :  { %3115 = vadd.xlane.f32.xlu1 %v3114_v40 }
 0xcb5   :  { %3112 = vadd.xlane.f32.xlu0 %v3111_v42 }
 0xcb7   :  { %3697 = vadd.xlane.f32.xlu1 %v3696_v39 }
 0xcb9   :  { %3694 = vadd.xlane.f32.xlu0 %v3693_v7 }
 0xcbb   :  { %3703 = vadd.xlane.f32.xlu1 %v3702_v47 }
 0xcbd   :  { %3700 = vadd.xlane.f32.xlu0 %v3699_v53 }
 0xcbf   :  { %4285 = vadd.xlane.f32.xlu1 %v4284_v44 }
 0xcc1   :  { %4282 = vadd.xlane.f32.xlu0 %v4281_v8 }
 0xcc3   :  { %4291 = vadd.xlane.f32.xlu1 %v4290_v63 }
 0xcc5   :  { %4288 = vadd.xlane.f32.xlu0 %v4287_v1 }
 0xcc7   :  { %771 = vadd.xlane.f32.xlu1 %v770_v59 }
 0xcc9   :  { %768 = vadd.xlane.f32.xlu0 %v767_v9 }
 0xccb   :  { %1359 = vadd.xlane.f32.xlu1 %v1358_v34 }
 0xccd   :  { %1356 = vadd.xlane.f32.xlu0 %v1355_v26 }
 0xccf   :  { %v4840_v18 = vpop.xlane.xlu0 %4839  ;;  %1947 = vadd.xlane.f32.xlu1 %v1946_v3 }
 0xcd1   :  { %1944 = vadd.xlane.f32.xlu0 %v1943_v32  ;;  %v4837_v60 = vpop.xlane.xlu1 %4836 }
 0xcd3   :  { %v4834_v30 = vpop.xlane.xlu0 %4833  ;;  %2535 = vadd.xlane.f32.xlu1 %v2534_v29 }
 0xcd4   :  { %v4842_v0 = vmax.f32 %v4834_v30, %v4840_v18 }
 0xcd5   :  { %2532 = vadd.xlane.f32.xlu0 %v2531_v13 }
 0xcd7   :  { %3123 = vadd.xlane.f32.xlu1 %v3122_v57  ;;  %v4831_v10 = vpop.xlane.xlu0 %4830 }
 0xcd8   :  { %v4841_v6 = vmax.f32 %v4831_v10, %v4837_v60 }
 0xcd9   :  { %3120 = vadd.xlane.f32.xlu0 %v3119_v52 }
 0xcdb   :  { %3711 = vadd.xlane.f32.xlu1 %v3710_v31  ;;  %v4848_v62 = vpop.xlane.xlu1 %4847 }
 0xcdc   :  { %v4850_v38 = vmax.f32 %v4842_v0, %v4848_v62 }
 0xcdd   :  { %3708 = vadd.xlane.f32.xlu0 %v3707_v15  ;;  %v4845_v17 = vpop.xlane.xlu0 %4844 }
 0xcde   :  { %v4852_v20 = vsub.f32 %v7308_v33, %v4850_v38  ;;  %v4858_v21 = vsub.f32 %v7300_v5, %v4850_v38  ;;  %v4849_v23 = vmax.f32 %v4841_v6, %v4845_v17  ;;  %v4864_v50 = vsub.f32 %v7320_v54, %v4850_v38 }
 0xcdf   :  { %4299 = vadd.xlane.f32.xlu1 %v4298_v12  ;;  %v4892_v14 = vpop.permute.xlu1 %4891 }
 0xce0   :  { %v4855_v28 = vmul.f32 1.442695, %v4852_v20  ;;  %v4861_v48 = vmul.f32 1.442695, %v4858_v21  ;;  %v4851_v55 = vsub.f32 %v7313_v2, %v4849_v23  ;;  %v4857_v56 = vsub.f32 %v7303_v49, %v4849_v23 }
 0xce1   :  { %v4863_v33 = vsub.f32 %v7323_v24, %v4849_v23  ;;  %4296 = vadd.xlane.f32.xlu0 %v4295_v16  ;;  %v4894_v5 = vpop.permute.xlu0 %4893  ;;  %v4867_v45 = vmul.f32 1.442695, %v4864_v50 }
 0xce2   :  { %6301 = vpow2.f32 %v4855_v28  ;;  %v4853_v35 = vmul.f32 1.442695, %v4851_v55  ;;  %6154 = vmatprep.subr.mxu0 %v4894_v5  ;;  %v4859_v37 = vmul.f32 1.442695, %v4857_v56 }
 0xce3   :  { %v4865_v11 = vmul.f32 1.442695, %v4863_v33  ;;  %6155 = vmatpush3.msra.mxu0 %v4894_v5  ;;  %v4981_v40 = vpop.permute.xlu1 %4980  ;;  %6303 = vpow2.f32 %v4861_v48 }
 0xce4   :  { %6156 = vmatprep.subr.mxu0 %v4892_v14  ;;  %6305 = vpow2.f32 %v4853_v35 }
 0xce5   :  { %v5068_v54 = vpop.permute.xlu0 %5067  ;;  %6157 = vmatpush3.msra.mxu0 %v4892_v14  ;;  %6307 = vpow2.f32 %v4859_v37 }
 0xce6   :  { %6161 = vmatprep.subr.mxu0 %v4981_v40  ;;  %6168 = vmatprep.subr.mxu1 %v5068_v54  ;;  %6309 = vpow2.f32 %v4865_v11 }
 0xce7   :  { %6169 = vmatpush3.msra.mxu1 %v5068_v54  ;;  %v4979_v49 = vpop.permute.xlu1 %4978  ;;  %6311 = vpow2.f32 %v4867_v45 }
 0xceb   :  { %v5066_v2 = vpop.permute.xlu1 %5065 }
 0xcec   :  { %6170 = vmatprep.subr.mxu1 %v5066_v2 }
 0xced   :  { %6171 = vmatpush3.msra.mxu1 %v5066_v2 }
 0xcef   :  { %v6302_v24 = vpop.eup %6301 }
 0xcf0   :  { %v4872_v42 = vsel %vm712_vm2, %v6302_v24, 0.0  ;;  %v6304_v39 = vpop.eup %6303 }
 0xcf1   :  { %4873 = vadd.xlane.f32.xlu1 %v4872_v42  ;;  %v6306_v7 = vpop.eup %6305  ;;  %v4878_v63 = vsel %vm712_vm2, %v6304_v39, 0.0 }
 0xcf2   :  { %v6308_v47 = vpop.eup %6307  ;;  %v4869_v53 = vsel %vm712_vm2, %v6306_v7, 0.0 }
 0xcf3   :  { %v6310_v44 = vpop.eup %6309  ;;  %6158 = vmatprep.mubr.msk.f32.mxu0 %vm712_vm2, %v6308_v47  ;;  %4870 = vadd.xlane.f32.xlu0 %v4869_v53  ;;  %v4875_v1 = vsel %vm712_vm2, %v6308_v47, 0.0 }
 0xcf4   :  { %v6312_v8 = vpop.eup %6311  ;;  %6172 = vmatprep.mubr.msk.f32.mxu1 %vm712_vm2, %v6310_v44  ;;  %6159 = vmatmul.mubr.msk.f32.vlgmr.msra.gmra.mxu0 %vm712_vm2, %v6304_v39  ;;  %v4883_v9 = vsel %vm712_vm2, %v6310_v44, 0.0  ;;  %v7564_v44 = vld [vmem:[#allocation22_spill] sm:$0xff] }
 0xcf5   :  { %6162 = vmatpush3.msra.mxu0 %v4981_v40  ;;  %6173 = vmatmul.mubr.msk.f32.vlgmr.msra.gmra.mxu1 %vm712_vm2, %v6312_v8  ;;  %v4886_v59 = vsel %vm712_vm2, %v6312_v8, 0.0 }
 0xcf6   :  { %6163 = vmatprep.subr.mxu0 %v4979_v49  ;;  %6165 = vmatprep.mubr.msk.f32.mxu0 %vm712_vm2, %v6306_v7 }
 0xcf7   :  { %4879 = vadd.xlane.f32.xlu1 %v4878_v63  ;;  %6164 = vmatpush3.msra.mxu0 %v4979_v49 }
 0xcf8   :  { %4876 = vadd.xlane.f32.xlu0 %v4875_v1  ;;  %6166 = vmatmul.mubr.msk.f32.vlgmr.msra.gmra.mxu0 %vm712_vm2, %v6302_v24 }
 0xcfb   :  { %4887 = vadd.xlane.f32.xlu1 %v4886_v59 }
 0xcfc   :  { %4884 = vadd.xlane.f32.xlu0 %v4883_v9 }
 0xd16   :  { %v755_v46 = vpop.xlane.xlu0 %754 }
 0xd1a   :  { %v761_v34 = vpop.xlane.xlu0 %760 }
 0xd1b   :  { %v765_v21 = vadd.f32 %v761_v34, %v755_v46  ;;  %v7565_v46 = vld [vmem:[#allocation23_spill] sm:$0xff] }
 0xd1c   :  { %v758_v51 = vpop.xlane.xlu1 %757 }
 0xd1e   :  { %v764_v26 = vpop.xlane.xlu0 %763 }
 0xd1f   :  { %v766_v17 = vadd.f32 %v764_v26, %v758_v51 }
 0xd20   :  { %v1346_v58 = vpop.xlane.xlu1 %1345 }
 0xd22   :  { %v1343_v3 = vpop.xlane.xlu0 %1342 }
 0xd24   :  { %v1352_v18 = vpop.xlane.xlu1 %1351 }
 0xd25   :  { %v1354_v14 = vadd.f32 %v1352_v18, %v1346_v58  ;;  %v7566_v18 = vld [vmem:[#allocation26_spill] sm:$0xff] }
 0xd26   :  { %v1349_v61 = vpop.xlane.xlu0 %1348 }
 0xd27   :  { %v1353_v48 = vadd.f32 %v1349_v61, %v1343_v3 }
 0xd28   :  { %v1934_v32 = vpop.xlane.xlu1 %1933 }
 0xd2a   :  { %v1931_v43 = vpop.xlane.xlu0 %1930 }
 0xd2c   :  { %v1940_v29 = vpop.xlane.xlu1 %1939 }
 0xd2d   :  { %v1942_v56 = vadd.f32 %v1940_v29, %v1934_v32 }
 0xd2e   :  { %v1937_v30 = vpop.xlane.xlu0 %1936 }
 0xd2f   :  { %v1941_v35 = vadd.f32 %v1937_v30, %v1931_v43 }
 0xd30   :  { %v2522_v19 = vpop.xlane.xlu1 %2521 }
 0xd32   :  { %v2519_v13 = vpop.xlane.xlu0 %2518 }
 0xd34   :  { %v2528_v27 = vpop.xlane.xlu1 %2527 }
 0xd35   :  { %v2530_v40 = vadd.f32 %v2528_v27, %v2522_v19  ;;  %v7567_v19 = vld [vmem:[#allocation27_spill] sm:$0xff] }
 0xd36   :  { %v2525_v57 = vpop.xlane.xlu0 %2524 }
 0xd37   :  { %v2529_v49 = vadd.f32 %v2525_v57, %v2519_v13 }
 0xd38   :  { %v3110_v60 = vpop.xlane.xlu1 %3109 }
 0xd3a   :  { %v3107_v25 = vpop.xlane.xlu0 %3106 }
 0xd3c   :  { %v3116_v52 = vpop.xlane.xlu1 %3115 }
 0xd3d   :  { %v3118_v42 = vadd.f32 %v3116_v52, %v3110_v60  ;;  %v7568_v52 = vld [vmem:[#allocation30_spill] sm:$0xff] }
 0xd3e   :  { %v3113_v10 = vpop.xlane.xlu0 %3112 }
 0xd3f   :  { %v3117_v53 = vadd.f32 %v3113_v10, %v3107_v25 }
 0xd40   :  { %v3698_v0 = vpop.xlane.xlu1 %3697 }
 0xd42   :  { %v3695_v41 = vpop.xlane.xlu0 %3694 }
 0xd44   :  { %v3704_v31 = vpop.xlane.xlu1 %3703 }
 0xd45   :  { %v3706_v9 = vadd.f32 %v3704_v31, %v3698_v0 }
 0xd46   :  { %v3701_v62 = vpop.xlane.xlu0 %3700 }
 0xd47   :  { %v3705_v3 = vadd.f32 %v3701_v62, %v3695_v41  ;;  %v7569_v62 = vld [vmem:[#allocation31_spill] sm:$0xff] }
 0xd48   :  { %v4286_v6 = vpop.xlane.xlu1 %4285 }
 0xd4a   :  { %v7437_v38 = vpop.xlane.xlu0 %4282 }
 0xd4c   :  { %v4292_v22 = vpop.xlane.xlu1 %4291 }
 0xd4d   :  { %v4294_v30 = vadd.f32 %v4292_v22, %v4286_v6 }
 0xd4e   :  { %v4289_v15 = vpop.xlane.xlu0 %4288 }
 0xd4f   :  { %v4293_v25 = vadd.f32 %v4289_v15, %v7437_v38  ;;  %v7571_v15 = vld [vmem:[#allocation35_spill] sm:$0xff] }
 0xd50   :  { %v772_v20 = vpop.xlane.xlu1 %771 }
 0xd51   :  { %v774_v23 = vadd.f32 %v772_v20, %v766_v17  ;;  %v7570_v20 = vld [vmem:[#allocation34_spill] sm:$0xff] }
 0xd52   :  { %v769_v12 = vpop.xlane.xlu0 %768 }
 0xd53   :  { %6313 = vrcp.f32 %v774_v23  ;;  %v773_v16 = vadd.f32 %v769_v12, %v765_v21 }
 0xd54   :  { %v1360_v28 = vpop.xlane.xlu1 %1359 }
 0xd55   :  { %6315 = vrcp.f32 %v773_v16  ;;  %v1362_v50 = vadd.f32 %v1360_v28, %v1354_v14  ;;  %v7572_v14 = vld [vmem:[#allocation38_spill] sm:$0xff] }
 0xd56   :  { %v1357_v55 = vpop.xlane.xlu0 %1356 }
 0xd57   :  { %6317 = vrcp.f32 %v1362_v50  ;;  %v1361_v33 = vadd.f32 %v1357_v55, %v1353_v48  ;;  %v7573_v48 = vld [vmem:[#allocation39_spill] sm:$0xff] }
 0xd58   :  { %v1948_v5 = vpop.xlane.xlu1 %1947 }
 0xd59   :  { %6319 = vrcp.f32 %v1361_v33  ;;  %v1950_v37 = vadd.f32 %v1948_v5, %v1942_v56  ;;  %v7574_v56 = vld [vmem:[#allocation42_spill] sm:$0xff] }
 0xd5a   :  { %v1945_v11 = vpop.xlane.xlu0 %1944 }
 0xd5b   :  { %6321 = vrcp.f32 %v1950_v37  ;;  %v1949_v45 = vadd.f32 %v1945_v11, %v1941_v35  ;;  %v7575_v35 = vld [vmem:[#allocation43_spill] sm:$0xff] }
 0xd5c   :  { %v2536_v54 = vpop.xlane.xlu1 %2535 }
 0xd5d   :  { %6323 = vrcp.f32 %v1949_v45  ;;  %v2538_v2 = vadd.f32 %v2536_v54, %v2530_v40 }
 0xd5e   :  { %v2533_v24 = vpop.xlane.xlu0 %2532 }
 0xd5f   :  { %6325 = vrcp.f32 %v2538_v2  ;;  %v2537_v39 = vadd.f32 %v2533_v24, %v2529_v49 }
 0xd60   :  { %v6314_v7 = vpop.eup %6313  ;;  %v3124_v47 = vpop.xlane.xlu1 %3123 }
 0xd61   :  { %v1041_v8 = vmul.f32 %v6314_v7, %v7564_v44  ;;  %6327 = vrcp.f32 %v2537_v39  ;;  %v3126_v63 = vadd.f32 %v3124_v47, %v3118_v42 }
 0xd62   :  { %v6316_v1 = vpop.eup %6315  ;;  %v3121_v59 = vpop.xlane.xlu0 %3120 }
 0xd63   :  { %1043 = vst.msk [vmem:[#allocation2 + $0x8] sm:$0xff] %vm462_vm1, %v1041_v8  ;;  %v1040_v34 = vmul.f32 %v6316_v1, %v7565_v46  ;;  %6329 = vrcp.f32 %v3126_v63  ;;  %v3125_v51 = vadd.f32 %v3121_v59, %v3117_v53 }
 0xd64   :  { %v6318_v26 = vpop.eup %6317  ;;  %v3712_v58 = vpop.xlane.xlu1 %3711 }
 0xd65   :  { %1042 = vst.msk [vmem:[#allocation2] sm:$0xff] %vm462_vm1, %v1040_v34  ;;  %v1629_v61 = vmul.f32 %v6318_v26, %v7566_v18  ;;  %6331 = vrcp.f32 %v3125_v51  ;;  %v3714_v32 = vadd.f32 %v3712_v58, %v3706_v9 }
 0xd66   :  { %v6320_v43 = vpop.eup %6319  ;;  %v3709_v29 = vpop.xlane.xlu0 %3708 }
 0xd67   :  { %1631 = vst.msk [vmem:[#allocation2 + $0x18] sm:$0xff] %vm462_vm1, %v1629_v61  ;;  %v1628_v13 = vmul.f32 %v6320_v43, %v7567_v19  ;;  %6333 = vrcp.f32 %v3714_v32  ;;  %v3713_v27 = vadd.f32 %v3709_v29, %v3705_v3 }
 0xd68   :  { %v6322_v57 = vpop.eup %6321  ;;  %v4300_v60 = vpop.xlane.xlu1 %4299 }
 0xd69   :  { %1630 = vst.msk [vmem:[#allocation2 + $0x10] sm:$0xff] %vm462_vm1, %v1628_v13  ;;  %v2217_v10 = vmul.f32 %v6322_v57, %v7568_v52  ;;  %6335 = vrcp.f32 %v3713_v27  ;;  %v4302_v0 = vadd.f32 %v4300_v60, %v4294_v30 }
 0xd6a   :  { %v6324_v41 = vpop.eup %6323  ;;  %v4297_v31 = vpop.xlane.xlu0 %4296 }
 0xd6b   :  { %2219 = vst.msk [vmem:[#allocation2 + $0x28] sm:$0xff] %vm462_vm1, %v2217_v10  ;;  %v2216_v6 = vmul.f32 %v6324_v41, %v7569_v62  ;;  %6337 = vrcp.f32 %v4302_v0  ;;  %v4301_v22 = vadd.f32 %v4297_v31, %v4293_v25 }
 0xd6c   :  { %v6326_v17 = vpop.eup %6325 }
 0xd6d   :  { %2218 = vst.msk [vmem:[#allocation2 + $0x20] sm:$0xff] %vm462_vm1, %v2216_v6  ;;  %v2805_v21 = vmul.f32 %v6326_v17, %v7570_v20  ;;  %6339 = vrcp.f32 %v4301_v22 }
 0xd6e   :  { %v6328_v38 = vpop.eup %6327 }
 0xd6f   :  { %2807 = vst.msk [vmem:[#allocation2 + $0x38] sm:$0xff] %vm462_vm1, %v2805_v21  ;;  %v2804_v23 = vmul.f32 %v6328_v38, %v7571_v15 }
 0xd70   :  { %v6330_v12 = vpop.eup %6329  ;;  %v5189_v11 = vld [vmem:[#allocation2 + $0x2] ss:$8 sm:$0xf]  ;;  %v5170_v40 = vld [vmem:[#allocation2 + $0x1] ss:$8 sm:$0xf] }
 0xd71   :  { %2806 = vst.msk [vmem:[#allocation2 + $0x30] sm:$0xff] %vm462_vm1, %v2804_v23  ;;  %v3393_v16 = vmul.f32 %v6330_v12, %v7572_v14  ;;  %v5160_v53 = vld [vmem:[#allocation2] ss:$8 sm:$0xf] }
 0xd72   :  { %v6332_v28 = vpop.eup %6331  ;;  %v5208_v8 = vld [vmem:[#allocation2 + $0x3] ss:$8 sm:$0xf]  ;;  %v5227_v59 = vld [vmem:[#allocation2 + $0x4] ss:$8 sm:$0xf] }
 0xd73   :  { %3395 = vst.msk [vmem:[#allocation2 + $0x48] sm:$0xff] %vm462_vm1, %v3393_v16  ;;  %v3392_v50 = vmul.f32 %v6332_v28, %v7573_v48  ;;  %v5246_v46 = vld [vmem:[#allocation2 + $0x5] ss:$8 sm:$0xf] }
 0xd74   :  { %v6334_v55 = vpop.eup %6333  ;;  %v5265_v26 = vld [vmem:[#allocation2 + $0x6] ss:$8 sm:$0xf]  ;;  %v5284_v18 = vld [vmem:[#allocation2 + $0x7] ss:$8 sm:$0xf] }
 0xd75   :  { %3394 = vst.msk [vmem:[#allocation2 + $0x40] sm:$0xff] %vm462_vm1, %v3392_v50  ;;  %v3981_v33 = vmul.f32 %v6334_v55, %v7574_v56 }
 0xd76   :  { %v6336_v5 = vpop.eup %6335 }
 0xd77   :  { %3983 = vst.msk [vmem:[#allocation2 + $0x58] sm:$0xff] %vm462_vm1, %v3981_v33  ;;  %v3980_v37 = vmul.f32 %v6336_v5, %v7575_v35 }
 0xd78   :  { %v6338_v45 = vpop.eup %6337  ;;  %v5190_v54 = vld [vmem:[#allocation2 + $0x2] ss:$8 sm:$0xf0]  ;;  %v5171_v49 = vld [vmem:[#allocation2 + $0x1] ss:$8 sm:$0xf0] }
 0xd79   :  { %3982 = vst.msk [vmem:[#allocation2 + $0x50] sm:$0xff] %vm462_vm1, %v3980_v37  ;;  %v4569_v2 = vmul.f32 %v6338_v45, %v7295_v4  ;;  %v5191_v24 = vor.u32 %v5190_v54, %v5189_v11  ;;  %v5172_v42 = vor.u32 %v5171_v49, %v5170_v40  ;;  %v5209_v7 = vld [vmem:[#allocation2 + $0x3] ss:$8 sm:$0xf0] }
 0xd7a   :  { %v6340_v39 = vpop.eup %6339  ;;  %v5161_v44 = vld [vmem:[#allocation2] ss:$8 sm:$0xf0]  ;;  %v5210_v4 = vor.u32 %v5209_v7, %v5208_v8  ;;  %v5228_v1 = vld [vmem:[#allocation2 + $0x4] ss:$8 sm:$0xf0]  ;;  %v4874_v32 = vpop.xlane.xlu1 %4873 }
 0xd7b   :  { %4571 = vst.msk [vmem:[#allocation2 + $0x68] sm:$0xff] %vm462_vm1, %v4569_v2  ;;  %v4568_v47 = vmul.f32 %v6340_v39, %v7297_v36  ;;  %5198 = vrot.lane.b32.xlu1 %v5191_v24, %s6520_s11  ;;  %5179 = vrot.lane.b32.xlu0 %v5172_v42, %s6541_s28  ;;  %v5162_v63 = vor.u32 %v5161_v44, %v5160_v53  ;;  %v5247_v9 = vld [vmem:[#allocation2 + $0x5] ss:$8 sm:$0xf0] }
 0xd7c   :  { %v5229_v36 = vor.u32 %v5228_v1, %v5227_v59  ;;  %v5248_v34 = vor.u32 %v5247_v9, %v5246_v46  ;;  %v5266_v51 = vld [vmem:[#allocation2 + $0x6] ss:$8 sm:$0xf0]  ;;  %v5285_v3 = vld [vmem:[#allocation2 + $0x7] ss:$8 sm:$0xf0]  ;;  %v4871_v43 = vpop.xlane.xlu0 %4870 }
 0xd7d   :  { %4570 = vst.msk [vmem:[#allocation2 + $0x60] sm:$0xff] %vm462_vm1, %v4568_v47  ;;  %5167 = vst.msk [vmem:[#allocation3] sm:$0xff] %vm462_vm1, %v5162_v63  ;;  %v5267_v58 = vor.u32 %v5266_v51, %v5265_v26  ;;  %v5286_v61 = vor.u32 %v5285_v3, %v5284_v18  ;;  %v5307_v49 = vld [vmem:[#allocation13 + $0x18] sm:$0xff]  ;;  %v5306_v2 = vld [vmem:[#allocation13 + $0x10] sm:$0xff] }
 0xd7e   :  { %6175 = vmatprep.subr.mxu0 %v5307_v49  ;;  %v5305_v42 = vld [vmem:[#allocation13 + $0x8] sm:$0xff]  ;;  %v5304_v47 = vld [vmem:[#allocation13] sm:$0xff] }
 0xd7f   :  { %5217 = vrot.lane.b32.xlu0 %v5210_v4, %s6542_s5  ;;  %6176 = vmatpush3.msra.mxu0 %v5307_v49 }
 0xd80   :  { %v4880_v29 = vpop.xlane.xlu1 %4879  ;;  %v5174_v12 = vld [vmem:[#allocation2 + $0x41] ss:$8 sm:$0xf]  ;;  %v5164_v48 = vld [vmem:[#allocation2 + $0x40] ss:$8 sm:$0xf]  ;;  %6177 = vmatprep.subr.mxu0 %v5306_v2 }
 0xd81   :  { %v4877_v30 = vpop.xlane.xlu0 %4876  ;;  %v4882_v13 = vadd.f32 %v4880_v29, %v4874_v32  ;;  %v5193_v55 = vld [vmem:[#allocation2 + $0x42] ss:$8 sm:$0xf]  ;;  %v5212_v35 = vld [vmem:[#allocation2 + $0x43] ss:$8 sm:$0xf]  ;;  %6178 = vmatpush3.msra.mxu0 %v5306_v2 }
 0xd82   :  { %v4881_v57 = vadd.f32 %v4877_v30, %v4871_v43  ;;  %v5231_v40 = vld [vmem:[#allocation2 + $0x44] ss:$8 sm:$0xf]  ;;  %v5250_v24 = vld [vmem:[#allocation2 + $0x45] ss:$8 sm:$0xf]  ;;  %6179 = vmatprep.subr.mxu0 %v5305_v42 }
 0xd83   :  { %5236 = vrot.lane.b32.xlu0 %v5229_v36, %s6543_s29  ;;  %v5269_v53 = vld [vmem:[#allocation2 + $0x46] ss:$8 sm:$0xf]  ;;  %6180 = vmatpush3.msra.mxu0 %v5305_v42  ;;  %v5288_v63 = vld [vmem:[#allocation2 + $0x47] ss:$8 sm:$0xf] }
 0xd84   :  { %v4888_v19 = vpop.xlane.xlu1 %4887  ;;  %6181 = vmatprep.subr.mxu0 %v5304_v47 }
 0xd85   :  { %v4885_v27 = vpop.xlane.xlu0 %4884  ;;  %v4890_v60 = vadd.f32 %v4888_v19, %v4882_v13  ;;  %6182 = vmatpush3.msra.mxu0 %v5304_v47  ;;  %v5570_v19 = vld [vmem:[%s7519_s6] ss:$0 sm:$0xff] }
 0xd86   :  { %v4889_v25 = vadd.f32 %v4885_v27, %v4881_v57 }
 0xd87   :  { %5255 = vrot.lane.b32.xlu0 %v5248_v34, %s6544_s30  ;;  %6341 = vrcp.f32 %v4890_v60 }
 0xd88   :  { %6343 = vrcp.f32 %v4889_v25 }
 0xd8b   :  { %5274 = vrot.lane.b32.xlu0 %v5267_v58, %s6545_s0 }
 0xd8f   :  { %5293 = vrot.lane.b32.xlu0 %v5286_v61, %s6546_s9 }
 0xd94   :  { %v6342_v17 = vpop.eup %6341 }
 0xd95   :  { %v6344_v15 = vpop.eup %6343 }
 0xdb4   :  { %v6160_v52 = vpop.f32.mrf.mxu0 }
 0xdb5   :  { %v6174_v0 = vpop.f32.mrf.mxu1 }
 0xdb6   :  { %v4969_v10 = vpop.f32.mrf.mxu0 }
 0xdb7   :  { %v5143_v20 = vpop.f32.mrf.mxu1 }
 0xdb8   :  { %v6167_v41 = vpop.f32.mrf.mxu0 }
 0xdb9   :  { %v5062_v31 = vadd.f32 %v6167_v41, %v6160_v52 }
 0xdba   :  { %v5056_v62 = vpop.f32.mrf.mxu0 }
 0xdbb   :  { %v5153_v6 = vadd.f32 %v6174_v0, %v5062_v31  ;;  %v5057_v22 = vadd.f32 %v5056_v62, %v4969_v10 }
 0xdbd   :  { %v5157_v21 = vmul.f32 %v6342_v17, %v5153_v6  ;;  %v5152_v38 = vadd.f32 %v5143_v20, %v5057_v22 }
 0xdbf   :  { %5159 = vst.msk [vmem:[#allocation2 + $0x78] sm:$0xff] %vm462_vm1, %v5157_v21  ;;  %v5156_v23 = vmul.f32 %v6344_v15, %v5152_v38 }
 0xdc1   :  { %5158 = vst.msk [vmem:[#allocation2 + $0x70] sm:$0xff] %vm462_vm1, %v5156_v23 }
 0xdc8   :  { %v5175_v14 = vld [vmem:[#allocation2 + $0x41] ss:$8 sm:$0xf0]  ;;  %v5194_v28 = vld [vmem:[#allocation2 + $0x42] ss:$8 sm:$0xf0] }
 0xdc9   :  { %v5176_v16 = vor.u32 %v5175_v14, %v5174_v12  ;;  %v5165_v50 = vld [vmem:[#allocation2 + $0x40] ss:$8 sm:$0xf0]  ;;  %v5195_v33 = vor.u32 %v5194_v28, %v5193_v55  ;;  %v5213_v5 = vld [vmem:[#allocation2 + $0x43] ss:$8 sm:$0xf0] }
 0xdca   :  { %v5166_v56 = vor.u32 %v5165_v50, %v5164_v48  ;;  %v5214_v37 = vor.u32 %v5213_v5, %v5212_v35  ;;  %v5232_v11 = vld [vmem:[#allocation2 + $0x44] ss:$8 sm:$0xf0]  ;;  %v5251_v54 = vld [vmem:[#allocation2 + $0x45] ss:$8 sm:$0xf0] }
 0xdcb   :  { %5181 = vrot.lane.b32.xlu1 %v5176_v16, %s6541_s28  ;;  %v5233_v45 = vor.u32 %v5232_v11, %v5231_v40  ;;  %v5252_v39 = vor.u32 %v5251_v54, %v5250_v24  ;;  %v5270_v7 = vld [vmem:[#allocation2 + $0x46] ss:$8 sm:$0xf0]  ;;  %v5289_v8 = vld [vmem:[#allocation2 + $0x47] ss:$8 sm:$0xf0] }
 0xdcc   :  { %5168 = vst.msk [vmem:[#allocation3 + $0x8] sm:$0xff] %vm462_vm1, %v5166_v56  ;;  %v5271_v44 = vor.u32 %v5270_v7, %v5269_v53  ;;  %v5290_v4 = vor.u32 %v5289_v8, %v5288_v63 }
 0xdcf   :  { %5200 = vrot.lane.b32.xlu1 %v5195_v33, %s6520_s11 }
 0xdd3   :  { %5219 = vrot.lane.b32.xlu1 %v5214_v37, %s6542_s5 }
 0xdd7   :  { %5238 = vrot.lane.b32.xlu1 %v5233_v45, %s6543_s29 }
 0xddb   :  { %5257 = vrot.lane.b32.xlu1 %v5252_v39, %s6544_s30 }
 0xddf   :  { %5276 = vrot.lane.b32.xlu1 %v5271_v44, %s6545_s0 }
 0xde3   :  { %5295 = vrot.lane.b32.xlu1 %v5290_v4, %s6546_s9 }
 0xded   :  { %v5180_v1 = vpop.permute.xlu0 %5179  ;;  %v5199_v59 = vpop.permute.xlu1 %5198 }
 0xdee   :  { %5186 = vst.msk [vmem:[#allocation3] sm:$0xff] %vm5185_vm3, %v5180_v1 }
 0xdef   :  { %5205 = vst.msk [vmem:[#allocation3] sm:$0xff] %vm5204_vm4, %v5199_v59 }
 0xdf1   :  { %v5218_v36 = vpop.permute.xlu0 %5217 }
 0xdf2   :  { %5224 = vst.msk [vmem:[#allocation3] sm:$0xff] %vm5223_vm5, %v5218_v36 }
 0xdf5   :  { %v5237_v9 = vpop.permute.xlu0 %5236 }
 0xdf6   :  { %5243 = vst.msk [vmem:[#allocation3] sm:$0xff] %vm5242_vm6, %v5237_v9 }
 0xdf9   :  { %v5256_v46 = vpop.permute.xlu0 %5255 }
 0xdfa   :  { %5262 = vst.msk [vmem:[#allocation3] sm:$0xff] %vm5261_vm7, %v5256_v46 }
 0xdfd   :  { %v5275_v34 = vpop.permute.xlu0 %5274 }
 0xdfe   :  { %5281 = vst.msk [vmem:[#allocation3] sm:$0xff] %vm5280_vm8, %v5275_v34 }
 0xe01   :  { %v5294_v51 = vpop.permute.xlu0 %5293 }
 0xe02   :  { %5300 = vst.msk [vmem:[#allocation3] sm:$0xff] %vm5299_vm9, %v5294_v51 }
 0xe09   :  { %v5302_v26 = vld [vmem:[#allocation3] sm:$0xff] }
 0xe0a   :  { %6183 = vmatprep.mubr.msk.f32.mxu0 %vm135_vm0, %v5302_v26 }
 0xe3d   :  { %v5182_v58 = vpop.permute.xlu1 %5181 }
 0xe3e   :  { %5187 = vst.msk [vmem:[#allocation3 + $0x8] sm:$0xff] %vm5185_vm3, %v5182_v58 }
 0xe41   :  { %v5201_v3 = vpop.permute.xlu1 %5200 }
 0xe42   :  { %5206 = vst.msk [vmem:[#allocation3 + $0x8] sm:$0xff] %vm5204_vm4, %v5201_v3 }
 0xe45   :  { %v5220_v18 = vpop.permute.xlu1 %5219 }
 0xe46   :  { %5225 = vst.msk [vmem:[#allocation3 + $0x8] sm:$0xff] %vm5223_vm5, %v5220_v18 }
 0xe49   :  { %v5239_v61 = vpop.permute.xlu1 %5238 }
 0xe4a   :  { %5244 = vst.msk [vmem:[#allocation3 + $0x8] sm:$0xff] %vm5242_vm6, %v5239_v61 }
 0xe4d   :  { %v5258_v32 = vpop.permute.xlu1 %5257 }
 0xe4e   :  { %5263 = vst.msk [vmem:[#allocation3 + $0x8] sm:$0xff] %vm5261_vm7, %v5258_v32 }
 0xe51   :  { %v5277_v43 = vpop.permute.xlu1 %5276 }
 0xe52   :  { %5282 = vst.msk [vmem:[#allocation3 + $0x8] sm:$0xff] %vm5280_vm8, %v5277_v43 }
 0xe55   :  { %v5296_v29 = vpop.permute.xlu1 %5295 }
 0xe56   :  { %5301 = vst.msk [vmem:[#allocation3 + $0x8] sm:$0xff] %vm5299_vm9, %v5296_v29 }
 0xe5d   :  { %v5303_v30 = vld [vmem:[#allocation3 + $0x8] sm:$0xff] }
 0xe5e   :  { %6184 = vmatmul.mubr.msk.f32.vlgmr.msra.gmra.mxu0 %vm135_vm0, %v5303_v30 }
 0xf1e   :  { %v6185_v13 = vpop.f32.mrf.mxu0 }
 0xf1f   :  { %v5393_v27 = vadd.f32 %v6185_v13, %v5570_v19 }
 0xf20   :  { %v5387_v57 = vpop.f32.mrf.mxu0 }
 0xf21   :  { %5397 = vst.msk [vmem:[#allocation16 + $0x8] sm:$0xff] %vm135_vm0, %v5393_v27  ;;  %v5388_v60 = vadd.f32 %v5570_v19, %v5387_v57 }
 0xf23   :  { %5396 = vst.msk [vmem:[#allocation16] sm:$0xff] %vm135_vm0, %v5388_v60 }
 0xf24   :  { %6498 = shalt.err (!%p6495_p11)
}
 0xf25   :  { %5409 = dma.vmem_to_hbm [thread:$0]  %s5404_s15, 256, %s7521_s8, [#allocation6], %s6519_s10, %s6519_s10, %s6520_s11  }
 0xf26   :  { %6515 = dma.done.wait [#allocation6], 256  }
 0xf27   :  { %6516 = vsyncadd [#allocation6], 4294967040 }
 0xf28   :  { %5413 = vsyncpa [#allocation5], 1 }
 0xf29   :  { %5414 = vsyncpa [#allocation8], 1 }
 0xf2a   :  { %5415 = vsyncpa [#allocation11], 1 }
 0xf2b   :  { %5416 = vsyncpa [#allocation14], 1 }
 0xf2c   :  { %5417 = vsyncpa [#allocation6], 1 }

</bundles_post_ra>
